<compile_context>
chip_gen: v6e
topology: v6e:2x2x1
jax: 0.10.0
libtpu: 0.0.40
codegen_flags: <defaults>
</compile_context>

<pallas_src>
import numpy as np
import jax
import jax.numpy as jnp
from jax.experimental import pallas as pl
from jax.experimental.pallas import tpu as pltpu

LANES = 128     # channel lanes (all channel dims padded to 128)
BP = 8          # batch rows padded to 8 sublanes for the FC / softmax stage


# ---------------------------------------------------------------------------
# The single fused kernel
# ---------------------------------------------------------------------------
def _cnn_kernel(p1_ref, w1_ref, b1_ref,
                s2_ref, w2_ref, b2_ref,
                s3_ref, w3_ref, b3_ref,
                wf1_ref, bf1_ref, wf2_ref, bf2_ref,
                logits_ref, feat_ref):
    f32, bf16 = jnp.float32, jnp.bfloat16

    # ---- conv1 + folded-BN + ReLU:  (B*144, 9) @ (9, 128) ------------------
    a1 = jnp.dot(p1_ref[...], w1_ref[...], preferred_element_type=f32)
    a1 = jnp.maximum(a1 + b1_ref[...], 0.0).astype(bf16)            # (R1, 128)

    # ---- conv2 + BN + ReLU: 9 taps, one-hot row-selection matmuls ----------
    r2 = s2_ref.shape[1]
    acc2 = jnp.zeros((r2, LANES), f32)
    for t in range(s2_ref.shape[0]):
        g = jnp.dot(s2_ref[t], a1, preferred_element_type=f32).astype(bf16)
        acc2 = acc2 + jnp.dot(g, w2_ref[t], preferred_element_type=f32)
    a2 = jnp.maximum(acc2 + b2_ref[...], 0.0).astype(bf16)          # (R2, 128)

    # ---- conv3 + BN + ReLU: 4 taps; output rows ordered (hw * BP + b) ------
    r3 = s3_ref.shape[1]
    acc3 = jnp.zeros((r3, LANES), f32)
    for t in range(s3_ref.shape[0]):
        g = jnp.dot(s3_ref[t], a2, preferred_element_type=f32).astype(bf16)
        acc3 = acc3 + jnp.dot(g, w3_ref[t], preferred_element_type=f32)
    a3 = jnp.maximum(acc3 + b3_ref[...], 0.0)                       # (R3, 128) f32
    feat_ref[...] = a3                                              # lane-dense feat slab

    # ---- FC1 (no activation in the reference model): sum over hw blocks ----
    bp = r3 // 9
    accf = jnp.zeros((bp, LANES), f32)
    for hw in range(9):
        accf = accf + jnp.dot(a3[hw * bp:(hw + 1) * bp, :], wf1_ref[hw],
                              preferred_element_type=f32)
    h1 = accf + bf1_ref[...]                                        # (BP, 128)

    # ---- FC2 + masked softmax over the 10 valid lanes -----------------------
    logits = jnp.dot(h1, wf2_ref[...], preferred_element_type=f32) + bf2_ref[...]
    lane = jax.lax.broadcasted_iota(jnp.int32, logits.shape, 1)
    logits = jnp.where(lane < 10, logits, -1e30)
    m = jnp.max(logits, axis=-1, keepdims=True)
    e = jnp.exp(logits - m)
    denom = jnp.sum(e, axis=-1, keepdims=True)
    logits_ref[...] = e * pl.reciprocal(denom, approx=True)


def _full_spec(shape):
    zeros = (0,) * len(shape)
    return pl.BlockSpec(shape, lambda *_: zeros)


# ---------------------------------------------------------------------------
# Wrapper: conv1 im2col (only remaining XLA glue) + one pallas_call
# ---------------------------------------------------------------------------
def im2col(x, kh, kw, stride, pad):
    """x: (B, C, H, W) -> patches (B*OH*OW, C*kh*kw), K ordered (C, kh, kw)."""
    B, C, H, W = x.shape
    xp = jnp.pad(x, ((0, 0), (0, 0), (pad, pad), (pad, pad)))
    OH = (H + 2 * pad - kh) // stride + 1
    OW = (W + 2 * pad - kw) // stride + 1
    cols = []
    for i in range(kh):
        for j in range(kw):
            cols.append(xp[:, :, i:i + stride * OH:stride, j:j + stride * OW:stride])
    p = jnp.stack(cols, axis=2)            # (B, C, kh*kw, OH, OW)
    p = p.transpose(0, 3, 4, 1, 2)         # (B, OH, OW, C, kh*kw)
    return p.reshape(B * OH * OW, C * kh * kw), OH, OW


def cnn_forward(x, packed):
    """x: (B, 1, 24, 24) NCHW f32 -> (softmax probs (B, 10), feat (B, 576))."""
    B = x.shape[0]
    p1, _, _ = im2col(x, 3, 3, 2, 1)                    # (B*144, 9) conv1 patches
    p1 = p1.astype(jnp.bfloat16)

    args = (p1,
            packed["w1"], packed["b1"],
            packed["s2"], packed["w2"], packed["b2"],
            packed["s3"], packed["w3"], packed["b3"],
            packed["wf1"], packed["bf1"], packed["wf2"], packed["bf2"])

    r3 = packed["s3"].shape[1]          # = 9 * BP
    bp = r3 // 9
    out_shape = (jax.ShapeDtypeStruct((bp, LANES), jnp.float32),    # padded softmax
                 jax.ShapeDtypeStruct((r3, LANES), jnp.float32))    # padded conv3 act
    out_specs = (_full_spec((bp, LANES)), _full_spec((r3, LANES)))
    in_specs = [_full_spec(a.shape) for a in args]

    logits_pad, a3 = pl.pallas_call(
        _cnn_kernel,
        out_shape=out_shape,
        in_specs=in_specs,
        out_specs=out_specs,
        compiler_params=pltpu.CompilerParams(vmem_limit_bytes=32 * 1024 * 1024),
    )(*args)

    logits = logits_pad[:B, :10]
    # a3 rows are (hw * BP + b), lanes are channels -> reorder to torch NCHW flatten.
    feat = a3.reshape(9, bp, LANES)[:, :B, :64].transpose(1, 2, 0).reshape(B, 576)
    return logits, feat


# ---------------------------------------------------------------------------
# One-time parameter packing (outside the jitted forward)
# ---------------------------------------------------------------------------
def _selection_matrices(batch):
    """Per-tap one-hot row-selection matrices for conv2 / conv3 (zero rows = padding)."""
    assert batch <= BP
    # conv2: 12x12 (pad 1) -> 6x6, kernel 3, stride 2.  input rows: b*144 + h*12 + w
    s2 = np.zeros((9, batch * 36, batch * 144), np.float32)
    for b in range(batch):
        for oh in range(6):
            for ow in range(6):
                ro = b * 36 + oh * 6 + ow
                for i in range(3):
                    for j in range(3):
                        h, w = 2 * oh + i - 1, 2 * ow + j - 1
                        if 0 <= h < 12 and 0 <= w < 12:
                            s2[i * 3 + j, ro, b * 144 + h * 12 + w] = 1.0
    # conv3: 6x6 (pad 0) -> 3x3, kernel 2, stride 2.
    #   input rows: b*36 + h*6 + w ; output rows: (oh*3+ow)*BP + b (batch padded to BP)
    s3 = np.zeros((4, 9 * BP, batch * 36), np.float32)
    for b in range(batch):
        for oh in range(3):
            for ow in range(3):
                ro = (oh * 3 + ow) * BP + b
                for i in range(2):
                    for j in range(2):
                        h, w = 2 * oh + i, 2 * ow + j
                        s3[i * 2 + j, ro, b * 36 + h * 6 + w] = 1.0
    return jnp.asarray(s2, jnp.bfloat16), jnp.asarray(s3, jnp.bfloat16)


def prepare_params(params, batch):
    """Fold BN into conv weights/bias, reorder + pad everything lane-dense."""
    def fold(w, b, gamma, beta, mean, var):
        s = gamma / jnp.sqrt(var + 1e-5)
        return w * s[:, None, None, None], (b - mean) * s + beta

    def pad2(m, rows, cols):
        return jnp.pad(m, ((0, rows - m.shape[0]), (0, cols - m.shape[1])))

    def pad3(m, rows, cols):
        return jnp.pad(m, ((0, 0), (0, rows - m.shape[1]), (0, cols - m.shape[2])))

    def padb(v):
        return jnp.pad(v, (0, LANES - v.shape[0])).reshape(1, LANES).astype(jnp.float32)

    w1f, bias1 = fold(*params["conv1"])                              # (16,1,3,3)
    w1 = pad2(w1f.reshape(16, 9).T, 9, LANES).astype(jnp.bfloat16)   # (9,128)

    w2f, bias2 = fold(*params["conv2"])                              # (32,16,3,3)
    w2 = pad3(w2f.transpose(2, 3, 1, 0).reshape(9, 16, 32),
              LANES, LANES).astype(jnp.bfloat16)                     # (9,128,128)

    w3f, bias3 = fold(*params["conv3"])                              # (64,32,2,2)
    w3 = pad3(w3f.transpose(2, 3, 1, 0).reshape(4, 32, 64),
              LANES, LANES).astype(jnp.bfloat16)                     # (4,128,128)

    wfc1, bfc1 = params["fc1"]                                       # (100, 576)
    wf1 = wfc1.reshape(100, 64, 9).transpose(2, 1, 0)                # (hw, cin, n)
    wf1 = pad3(wf1, LANES, LANES).astype(jnp.float32)                # (9,128,128)

    wfc2, bfc2 = params["fc2"]                                       # (10, 100)
    wf2 = pad2(wfc2.T, LANES, LANES).astype(jnp.float32)             # (128,128)

    s2, s3 = _selection_matrices(batch)
    return {
        "w1": w1, "b1": padb(bias1),
        "s2": s2, "w2": w2, "b2": padb(bias2),
        "s3": s3, "w3": w3, "b3": padb(bias3),
        "wf1": wf1, "bf1": padb(bfc1),
        "wf2": wf2, "bf2": padb(bfc2),
    }


# ---------------------------------------------------------------------------
# Plain-JAX f32 reference (for a self-check) + deterministic init
# ---------------------------------------------------------------------------
def _reference_forward(x, params):
    def conv_bn_relu(x, p, kh, kw, stride, pad):
        w, b, gamma, beta, mean, var = p
        B, C, H, W = x.shape
        Cout = w.shape[0]
        a, OH, OW = im2col(x, kh, kw, stride, pad)
        wmat = w.reshape(Cout, C * kh * kw).T
        s = gamma / jnp.sqrt(var + 1e-5)
        y = (a @ wmat) * s + ((b - mean) * s + beta)
        y = jnp.maximum(y, 0.0)
        return y.reshape(B, OH, OW, Cout).transpose(0, 3, 1, 2)

    x1 = conv_bn_relu(x, params["conv1"], 3, 3, 2, 1)
    x2 = conv_bn_relu(x1, params["conv2"], 3, 3, 2, 1)
    x3 = conv_bn_relu(x2, params["conv3"], 2, 2, 2, 0)
    feat = x3.reshape(x.shape[0], -1)
    w1, b1 = params["fc1"]
    w2, b2 = params["fc2"]
    h = feat @ w1.T + b1
    logits = jax.nn.softmax(h @ w2.T + b2, axis=-1)
    return logits, feat


def init_params(key):
    ks = jax.random.split(key, 16)

    def conv_params(kw_, kh_, cin, cout, k0, k1, k2, k3):
        w = 0.1 * jax.random.normal(k0, (cout, cin, kh_, kw_), jnp.float32)
        b = 0.1 * jax.random.normal(k1, (cout,), jnp.float32)
        gamma = 1.0 + 0.1 * jax.random.normal(k2, (cout,), jnp.float32)
        beta = 0.1 * jax.random.normal(k3, (cout,), jnp.float32)
        mean = 0.05 * jax.random.normal(k3, (cout,), jnp.float32)
        var = 0.5 + jax.random.uniform(k2, (cout,), jnp.float32)
        return (w, b, gamma, beta, mean, var)

    return {
        "conv1": conv_params(3, 3, 1, 16, ks[0], ks[1], ks[2], ks[3]),
        "conv2": conv_params(3, 3, 16, 32, ks[4], ks[5], ks[6], ks[7]),
        "conv3": conv_params(2, 2, 32, 64, ks[8], ks[9], ks[10], ks[11]),
        "fc1": (0.05 * jax.random.normal(ks[12], (100, 576), jnp.float32),
                0.05 * jax.random.normal(ks[13], (100,), jnp.float32)),
        "fc2": (0.05 * jax.random.normal(ks[14], (10, 100), jnp.float32),
                0.05 * jax.random.normal(ks[15], (10,), jnp.float32)),
    }


if __name__ == "__main__":
    key = jax.random.PRNGKey(0)
    k_x, k_p = jax.random.split(key)
    # 24 -> 12 -> 6 -> 3 spatial, flatten = 64*3*3 = 576 (matches Linear(576, 100)).
    x = jax.random.normal(k_x, (2, 1, 24, 24), jnp.float32)
    params = init_params(k_p)
    packed = prepare_params(params, batch=x.shape[0])   # folded/packed once, outside jit

    fwd = jax.jit(cnn_forward)
    logits, feat = fwd(x, packed)
    jax.block_until_ready((logits, feat))

    assert logits.shape == (2, 10)
    assert feat.shape == (2, 576)
    assert bool(jnp.all(jnp.isfinite(logits)))
    assert bool(jnp.allclose(jnp.sum(logits, axis=-1), 1.0, atol=1e-2))

    # Cross-check against the plain-JAX f32 reference (bf16 MXU inputs -> loose tol).
    ref_logits, ref_feat = jax.jit(_reference_forward)(x, params)
    assert bool(jnp.allclose(feat, ref_feat, atol=3e-2, rtol=5e-2))
    assert bool(jnp.allclose(logits, ref_logits, atol=3e-2))

    print("KERNEL_OK")
</pallas_src>

<mosaic_0001>
module attributes {stable_mosaic.version = 11 : i64} {
  func.func @_cnn_kernel(%arg0: memref<288x9xbf16, #tpu.memory_space<vmem>>, %arg1: memref<9x128xbf16, #tpu.memory_space<vmem>>, %arg2: memref<1x128xf32, #tpu.memory_space<vmem>>, %arg3: memref<9x72x288xbf16, #tpu.memory_space<vmem>>, %arg4: memref<9x128x128xbf16, #tpu.memory_space<vmem>>, %arg5: memref<1x128xf32, #tpu.memory_space<vmem>>, %arg6: memref<4x72x72xbf16, #tpu.memory_space<vmem>>, %arg7: memref<4x128x128xbf16, #tpu.memory_space<vmem>>, %arg8: memref<1x128xf32, #tpu.memory_space<vmem>>, %arg9: memref<9x128x128xf32, #tpu.memory_space<vmem>>, %arg10: memref<1x128xf32, #tpu.memory_space<vmem>>, %arg11: memref<128x128xf32, #tpu.memory_space<vmem>>, %arg12: memref<1x128xf32, #tpu.memory_space<vmem>>, %arg13: memref<8x128xf32, #tpu.memory_space<vmem>>, %arg14: memref<72x128xf32, #tpu.memory_space<vmem>>) attributes {dimension_semantics = [], scalar_prefetch = 0 : i64, scratch_operands = 0 : i64, tpu.core_type = #tpu.core_type<tc>} {
    %c0 = arith.constant 0 : index
    %c0_0 = arith.constant 0 : index
    %0 = vector.load %arg0[%c0, %c0_0] : memref<288x9xbf16, #tpu.memory_space<vmem>>, vector<288x9xbf16>
    %c0_1 = arith.constant 0 : index
    %c0_2 = arith.constant 0 : index
    %1 = vector.load %arg1[%c0_1, %c0_2] : memref<9x128xbf16, #tpu.memory_space<vmem>>, vector<9x128xbf16>
    %cst = arith.constant dense<0.000000e+00> : vector<288x128xf32>
    %2 = tpu.matmul %0, %1, %cst {dimension_numbers = #tpu.dot_dimension_numbers<[1], [0], [0], [1], [0, 0, 1, 1], [], []>} : vector<288x9xbf16>, vector<9x128xbf16>, vector<288x128xf32> -> vector<288x128xf32>
    %c0_3 = arith.constant 0 : index
    %c0_4 = arith.constant 0 : index
    %3 = vector.load %arg2[%c0_3, %c0_4] : memref<1x128xf32, #tpu.memory_space<vmem>>, vector<1x128xf32>
    %4 = vector.broadcast %3 : vector<1x128xf32> to vector<288x128xf32>
    %5 = arith.addf %2, %4 : vector<288x128xf32>
    %cst_5 = arith.constant 0.000000e+00 : f32
    %6 = vector.broadcast %cst_5 : f32 to vector<288x128xf32>
    %7 = arith.maximumf %5, %6 : vector<288x128xf32>
    %8 = arith.truncf %7 : vector<288x128xf32> to vector<288x128xbf16>
    %cst_6 = arith.constant 0.000000e+00 : f32
    %9 = vector.broadcast %cst_6 : f32 to vector<72x128xf32>
    %c0_7 = arith.constant 0 : index
    %c0_8 = arith.constant 0 : index
    %c0_9 = arith.constant 0 : index
    %10 = vector.load %arg3[%c0_7, %c0_8, %c0_9] : memref<9x72x288xbf16, #tpu.memory_space<vmem>>, vector<1x72x288xbf16>
    %11 = vector.shape_cast %10 : vector<1x72x288xbf16> to vector<72x288xbf16>
    %cst_10 = arith.constant dense<0.000000e+00> : vector<72x128xf32>
    %12 = tpu.matmul %11, %8, %cst_10 {dimension_numbers = #tpu.dot_dimension_numbers<[1], [0], [0], [1], [0, 0, 1, 1], [], []>} : vector<72x288xbf16>, vector<288x128xbf16>, vector<72x128xf32> -> vector<72x128xf32>
    %13 = arith.truncf %12 : vector<72x128xf32> to vector<72x128xbf16>
    %c0_11 = arith.constant 0 : index
    %c0_12 = arith.constant 0 : index
    %c0_13 = arith.constant 0 : index
    %14 = vector.load %arg4[%c0_11, %c0_12, %c0_13] : memref<9x128x128xbf16, #tpu.memory_space<vmem>>, vector<1x128x128xbf16>
    %15 = vector.shape_cast %14 : vector<1x128x128xbf16> to vector<128x128xbf16>
    %cst_14 = arith.constant dense<0.000000e+00> : vector<72x128xf32>
    %16 = tpu.matmul %13, %15, %cst_14 {dimension_numbers = #tpu.dot_dimension_numbers<[1], [0], [0], [1], [0, 0, 1, 1], [], []>} : vector<72x128xbf16>, vector<128x128xbf16>, vector<72x128xf32> -> vector<72x128xf32>
    %17 = arith.addf %9, %16 : vector<72x128xf32>
    %c1 = arith.constant 1 : index
    %c0_15 = arith.constant 0 : index
    %c0_16 = arith.constant 0 : index
    %18 = vector.load %arg3[%c1, %c0_15, %c0_16] : memref<9x72x288xbf16, #tpu.memory_space<vmem>>, vector<1x72x288xbf16>
    %19 = vector.shape_cast %18 : vector<1x72x288xbf16> to vector<72x288xbf16>
    %cst_17 = arith.constant dense<0.000000e+00> : vector<72x128xf32>
    %20 = tpu.matmul %19, %8, %cst_17 {dimension_numbers = #tpu.dot_dimension_numbers<[1], [0], [0], [1], [0, 0, 1, 1], [], []>} : vector<72x288xbf16>, vector<288x128xbf16>, vector<72x128xf32> -> vector<72x128xf32>
    %21 = arith.truncf %20 : vector<72x128xf32> to vector<72x128xbf16>
    %c1_18 = arith.constant 1 : index
    %c0_19 = arith.constant 0 : index
    %c0_20 = arith.constant 0 : index
    %22 = vector.load %arg4[%c1_18, %c0_19, %c0_20] : memref<9x128x128xbf16, #tpu.memory_space<vmem>>, vector<1x128x128xbf16>
    %23 = vector.shape_cast %22 : vector<1x128x128xbf16> to vector<128x128xbf16>
    %cst_21 = arith.constant dense<0.000000e+00> : vector<72x128xf32>
    %24 = tpu.matmul %21, %23, %cst_21 {dimension_numbers = #tpu.dot_dimension_numbers<[1], [0], [0], [1], [0, 0, 1, 1], [], []>} : vector<72x128xbf16>, vector<128x128xbf16>, vector<72x128xf32> -> vector<72x128xf32>
    %25 = arith.addf %17, %24 : vector<72x128xf32>
    %c2 = arith.constant 2 : index
    %c0_22 = arith.constant 0 : index
    %c0_23 = arith.constant 0 : index
    %26 = vector.load %arg3[%c2, %c0_22, %c0_23] : memref<9x72x288xbf16, #tpu.memory_space<vmem>>, vector<1x72x288xbf16>
    %27 = vector.shape_cast %26 : vector<1x72x288xbf16> to vector<72x288xbf16>
    %cst_24 = arith.constant dense<0.000000e+00> : vector<72x128xf32>
    %28 = tpu.matmul %27, %8, %cst_24 {dimension_numbers = #tpu.dot_dimension_numbers<[1], [0], [0], [1], [0, 0, 1, 1], [], []>} : vector<72x288xbf16>, vector<288x128xbf16>, vector<72x128xf32> -> vector<72x128xf32>
    %29 = arith.truncf %28 : vector<72x128xf32> to vector<72x128xbf16>
    %c2_25 = arith.constant 2 : index
    %c0_26 = arith.constant 0 : index
    %c0_27 = arith.constant 0 : index
    %30 = vector.load %arg4[%c2_25, %c0_26, %c0_27] : memref<9x128x128xbf16, #tpu.memory_space<vmem>>, vector<1x128x128xbf16>
    %31 = vector.shape_cast %30 : vector<1x128x128xbf16> to vector<128x128xbf16>
    %cst_28 = arith.constant dense<0.000000e+00> : vector<72x128xf32>
    %32 = tpu.matmul %29, %31, %cst_28 {dimension_numbers = #tpu.dot_dimension_numbers<[1], [0], [0], [1], [0, 0, 1, 1], [], []>} : vector<72x128xbf16>, vector<128x128xbf16>, vector<72x128xf32> -> vector<72x128xf32>
    %33 = arith.addf %25, %32 : vector<72x128xf32>
    %c3 = arith.constant 3 : index
    %c0_29 = arith.constant 0 : index
    %c0_30 = arith.constant 0 : index
    %34 = vector.load %arg3[%c3, %c0_29, %c0_30] : memref<9x72x288xbf16, #tpu.memory_space<vmem>>, vector<1x72x288xbf16>
    %35 = vector.shape_cast %34 : vector<1x72x288xbf16> to vector<72x288xbf16>
    %cst_31 = arith.constant dense<0.000000e+00> : vector<72x128xf32>
    %36 = tpu.matmul %35, %8, %cst_31 {dimension_numbers = #tpu.dot_dimension_numbers<[1], [0], [0], [1], [0, 0, 1, 1], [], []>} : vector<72x288xbf16>, vector<288x128xbf16>, vector<72x128xf32> -> vector<72x128xf32>
    %37 = arith.truncf %36 : vector<72x128xf32> to vector<72x128xbf16>
    %c3_32 = arith.constant 3 : index
    %c0_33 = arith.constant 0 : index
    %c0_34 = arith.constant 0 : index
    %38 = vector.load %arg4[%c3_32, %c0_33, %c0_34] : memref<9x128x128xbf16, #tpu.memory_space<vmem>>, vector<1x128x128xbf16>
    %39 = vector.shape_cast %38 : vector<1x128x128xbf16> to vector<128x128xbf16>
    %cst_35 = arith.constant dense<0.000000e+00> : vector<72x128xf32>
    %40 = tpu.matmul %37, %39, %cst_35 {dimension_numbers = #tpu.dot_dimension_numbers<[1], [0], [0], [1], [0, 0, 1, 1], [], []>} : vector<72x128xbf16>, vector<128x128xbf16>, vector<72x128xf32> -> vector<72x128xf32>
    %41 = arith.addf %33, %40 : vector<72x128xf32>
    %c4 = arith.constant 4 : index
    %c0_36 = arith.constant 0 : index
    %c0_37 = arith.constant 0 : index
    %42 = vector.load %arg3[%c4, %c0_36, %c0_37] : memref<9x72x288xbf16, #tpu.memory_space<vmem>>, vector<1x72x288xbf16>
    %43 = vector.shape_cast %42 : vector<1x72x288xbf16> to vector<72x288xbf16>
    %cst_38 = arith.constant dense<0.000000e+00> : vector<72x128xf32>
    %44 = tpu.matmul %43, %8, %cst_38 {dimension_numbers = #tpu.dot_dimension_numbers<[1], [0], [0], [1], [0, 0, 1, 1], [], []>} : vector<72x288xbf16>, vector<288x128xbf16>, vector<72x128xf32> -> vector<72x128xf32>
    %45 = arith.truncf %44 : vector<72x128xf32> to vector<72x128xbf16>
    %c4_39 = arith.constant 4 : index
    %c0_40 = arith.constant 0 : index
    %c0_41 = arith.constant 0 : index
    %46 = vector.load %arg4[%c4_39, %c0_40, %c0_41] : memref<9x128x128xbf16, #tpu.memory_space<vmem>>, vector<1x128x128xbf16>
    %47 = vector.shape_cast %46 : vector<1x128x128xbf16> to vector<128x128xbf16>
    %cst_42 = arith.constant dense<0.000000e+00> : vector<72x128xf32>
    %48 = tpu.matmul %45, %47, %cst_42 {dimension_numbers = #tpu.dot_dimension_numbers<[1], [0], [0], [1], [0, 0, 1, 1], [], []>} : vector<72x128xbf16>, vector<128x128xbf16>, vector<72x128xf32> -> vector<72x128xf32>
    %49 = arith.addf %41, %48 : vector<72x128xf32>
    %c5 = arith.constant 5 : index
    %c0_43 = arith.constant 0 : index
    %c0_44 = arith.constant 0 : index
    %50 = vector.load %arg3[%c5, %c0_43, %c0_44] : memref<9x72x288xbf16, #tpu.memory_space<vmem>>, vector<1x72x288xbf16>
    %51 = vector.shape_cast %50 : vector<1x72x288xbf16> to vector<72x288xbf16>
    %cst_45 = arith.constant dense<0.000000e+00> : vector<72x128xf32>
    %52 = tpu.matmul %51, %8, %cst_45 {dimension_numbers = #tpu.dot_dimension_numbers<[1], [0], [0], [1], [0, 0, 1, 1], [], []>} : vector<72x288xbf16>, vector<288x128xbf16>, vector<72x128xf32> -> vector<72x128xf32>
    %53 = arith.truncf %52 : vector<72x128xf32> to vector<72x128xbf16>
    %c5_46 = arith.constant 5 : index
    %c0_47 = arith.constant 0 : index
    %c0_48 = arith.constant 0 : index
    %54 = vector.load %arg4[%c5_46, %c0_47, %c0_48] : memref<9x128x128xbf16, #tpu.memory_space<vmem>>, vector<1x128x128xbf16>
    %55 = vector.shape_cast %54 : vector<1x128x128xbf16> to vector<128x128xbf16>
    %cst_49 = arith.constant dense<0.000000e+00> : vector<72x128xf32>
    %56 = tpu.matmul %53, %55, %cst_49 {dimension_numbers = #tpu.dot_dimension_numbers<[1], [0], [0], [1], [0, 0, 1, 1], [], []>} : vector<72x128xbf16>, vector<128x128xbf16>, vector<72x128xf32> -> vector<72x128xf32>
    %57 = arith.addf %49, %56 : vector<72x128xf32>
    %c6 = arith.constant 6 : index
    %c0_50 = arith.constant 0 : index
    %c0_51 = arith.constant 0 : index
    %58 = vector.load %arg3[%c6, %c0_50, %c0_51] : memref<9x72x288xbf16, #tpu.memory_space<vmem>>, vector<1x72x288xbf16>
    %59 = vector.shape_cast %58 : vector<1x72x288xbf16> to vector<72x288xbf16>
    %cst_52 = arith.constant dense<0.000000e+00> : vector<72x128xf32>
    %60 = tpu.matmul %59, %8, %cst_52 {dimension_numbers = #tpu.dot_dimension_numbers<[1], [0], [0], [1], [0, 0, 1, 1], [], []>} : vector<72x288xbf16>, vector<288x128xbf16>, vector<72x128xf32> -> vector<72x128xf32>
    %61 = arith.truncf %60 : vector<72x128xf32> to vector<72x128xbf16>
    %c6_53 = arith.constant 6 : index
    %c0_54 = arith.constant 0 : index
    %c0_55 = arith.constant 0 : index
    %62 = vector.load %arg4[%c6_53, %c0_54, %c0_55] : memref<9x128x128xbf16, #tpu.memory_space<vmem>>, vector<1x128x128xbf16>
    %63 = vector.shape_cast %62 : vector<1x128x128xbf16> to vector<128x128xbf16>
    %cst_56 = arith.constant dense<0.000000e+00> : vector<72x128xf32>
    %64 = tpu.matmul %61, %63, %cst_56 {dimension_numbers = #tpu.dot_dimension_numbers<[1], [0], [0], [1], [0, 0, 1, 1], [], []>} : vector<72x128xbf16>, vector<128x128xbf16>, vector<72x128xf32> -> vector<72x128xf32>
    %65 = arith.addf %57, %64 : vector<72x128xf32>
    %c7 = arith.constant 7 : index
    %c0_57 = arith.constant 0 : index
    %c0_58 = arith.constant 0 : index
    %66 = vector.load %arg3[%c7, %c0_57, %c0_58] : memref<9x72x288xbf16, #tpu.memory_space<vmem>>, vector<1x72x288xbf16>
    %67 = vector.shape_cast %66 : vector<1x72x288xbf16> to vector<72x288xbf16>
    %cst_59 = arith.constant dense<0.000000e+00> : vector<72x128xf32>
    %68 = tpu.matmul %67, %8, %cst_59 {dimension_numbers = #tpu.dot_dimension_numbers<[1], [0], [0], [1], [0, 0, 1, 1], [], []>} : vector<72x288xbf16>, vector<288x128xbf16>, vector<72x128xf32> -> vector<72x128xf32>
    %69 = arith.truncf %68 : vector<72x128xf32> to vector<72x128xbf16>
    %c7_60 = arith.constant 7 : index
    %c0_61 = arith.constant 0 : index
    %c0_62 = arith.constant 0 : index
    %70 = vector.load %arg4[%c7_60, %c0_61, %c0_62] : memref<9x128x128xbf16, #tpu.memory_space<vmem>>, vector<1x128x128xbf16>
    %71 = vector.shape_cast %70 : vector<1x128x128xbf16> to vector<128x128xbf16>
    %cst_63 = arith.constant dense<0.000000e+00> : vector<72x128xf32>
    %72 = tpu.matmul %69, %71, %cst_63 {dimension_numbers = #tpu.dot_dimension_numbers<[1], [0], [0], [1], [0, 0, 1, 1], [], []>} : vector<72x128xbf16>, vector<128x128xbf16>, vector<72x128xf32> -> vector<72x128xf32>
    %73 = arith.addf %65, %72 : vector<72x128xf32>
    %c8 = arith.constant 8 : index
    %c0_64 = arith.constant 0 : index
    %c0_65 = arith.constant 0 : index
    %74 = vector.load %arg3[%c8, %c0_64, %c0_65] : memref<9x72x288xbf16, #tpu.memory_space<vmem>>, vector<1x72x288xbf16>
    %75 = vector.shape_cast %74 : vector<1x72x288xbf16> to vector<72x288xbf16>
    %cst_66 = arith.constant dense<0.000000e+00> : vector<72x128xf32>
    %76 = tpu.matmul %75, %8, %cst_66 {dimension_numbers = #tpu.dot_dimension_numbers<[1], [0], [0], [1], [0, 0, 1, 1], [], []>} : vector<72x288xbf16>, vector<288x128xbf16>, vector<72x128xf32> -> vector<72x128xf32>
    %77 = arith.truncf %76 : vector<72x128xf32> to vector<72x128xbf16>
    %c8_67 = arith.constant 8 : index
    %c0_68 = arith.constant 0 : index
    %c0_69 = arith.constant 0 : index
    %78 = vector.load %arg4[%c8_67, %c0_68, %c0_69] : memref<9x128x128xbf16, #tpu.memory_space<vmem>>, vector<1x128x128xbf16>
    %79 = vector.shape_cast %78 : vector<1x128x128xbf16> to vector<128x128xbf16>
    %cst_70 = arith.constant dense<0.000000e+00> : vector<72x128xf32>
    %80 = tpu.matmul %77, %79, %cst_70 {dimension_numbers = #tpu.dot_dimension_numbers<[1], [0], [0], [1], [0, 0, 1, 1], [], []>} : vector<72x128xbf16>, vector<128x128xbf16>, vector<72x128xf32> -> vector<72x128xf32>
    %81 = arith.addf %73, %80 : vector<72x128xf32>
    %c0_71 = arith.constant 0 : index
    %c0_72 = arith.constant 0 : index
    %82 = vector.load %arg5[%c0_71, %c0_72] : memref<1x128xf32, #tpu.memory_space<vmem>>, vector<1x128xf32>
    %83 = vector.broadcast %82 : vector<1x128xf32> to vector<72x128xf32>
    %84 = arith.addf %81, %83 : vector<72x128xf32>
    %cst_73 = arith.constant 0.000000e+00 : f32
    %85 = vector.broadcast %cst_73 : f32 to vector<72x128xf32>
    %86 = arith.maximumf %84, %85 : vector<72x128xf32>
    %87 = arith.truncf %86 : vector<72x128xf32> to vector<72x128xbf16>
    %cst_74 = arith.constant 0.000000e+00 : f32
    %88 = vector.broadcast %cst_74 : f32 to vector<72x128xf32>
    %c0_75 = arith.constant 0 : index
    %c0_76 = arith.constant 0 : index
    %c0_77 = arith.constant 0 : index
    %89 = vector.load %arg6[%c0_75, %c0_76, %c0_77] : memref<4x72x72xbf16, #tpu.memory_space<vmem>>, vector<1x72x72xbf16>
    %90 = vector.shape_cast %89 : vector<1x72x72xbf16> to vector<72x72xbf16>
    %cst_78 = arith.constant dense<0.000000e+00> : vector<72x128xf32>
    %91 = tpu.matmul %90, %87, %cst_78 {dimension_numbers = #tpu.dot_dimension_numbers<[1], [0], [0], [1], [0, 0, 1, 1], [], []>} : vector<72x72xbf16>, vector<72x128xbf16>, vector<72x128xf32> -> vector<72x128xf32>
    %92 = arith.truncf %91 : vector<72x128xf32> to vector<72x128xbf16>
    %c0_79 = arith.constant 0 : index
    %c0_80 = arith.constant 0 : index
    %c0_81 = arith.constant 0 : index
    %93 = vector.load %arg7[%c0_79, %c0_80, %c0_81] : memref<4x128x128xbf16, #tpu.memory_space<vmem>>, vector<1x128x128xbf16>
    %94 = vector.shape_cast %93 : vector<1x128x128xbf16> to vector<128x128xbf16>
    %cst_82 = arith.constant dense<0.000000e+00> : vector<72x128xf32>
    %95 = tpu.matmul %92, %94, %cst_82 {dimension_numbers = #tpu.dot_dimension_numbers<[1], [0], [0], [1], [0, 0, 1, 1], [], []>} : vector<72x128xbf16>, vector<128x128xbf16>, vector<72x128xf32> -> vector<72x128xf32>
    %96 = arith.addf %88, %95 : vector<72x128xf32>
    %c1_83 = arith.constant 1 : index
    %c0_84 = arith.constant 0 : index
    %c0_85 = arith.constant 0 : index
    %97 = vector.load %arg6[%c1_83, %c0_84, %c0_85] : memref<4x72x72xbf16, #tpu.memory_space<vmem>>, vector<1x72x72xbf16>
    %98 = vector.shape_cast %97 : vector<1x72x72xbf16> to vector<72x72xbf16>
    %cst_86 = arith.constant dense<0.000000e+00> : vector<72x128xf32>
    %99 = tpu.matmul %98, %87, %cst_86 {dimension_numbers = #tpu.dot_dimension_numbers<[1], [0], [0], [1], [0, 0, 1, 1], [], []>} : vector<72x72xbf16>, vector<72x128xbf16>, vector<72x128xf32> -> vector<72x128xf32>
    %100 = arith.truncf %99 : vector<72x128xf32> to vector<72x128xbf16>
    %c1_87 = arith.constant 1 : index
    %c0_88 = arith.constant 0 : index
    %c0_89 = arith.constant 0 : index
    %101 = vector.load %arg7[%c1_87, %c0_88, %c0_89] : memref<4x128x128xbf16, #tpu.memory_space<vmem>>, vector<1x128x128xbf16>
    %102 = vector.shape_cast %101 : vector<1x128x128xbf16> to vector<128x128xbf16>
    %cst_90 = arith.constant dense<0.000000e+00> : vector<72x128xf32>
    %103 = tpu.matmul %100, %102, %cst_90 {dimension_numbers = #tpu.dot_dimension_numbers<[1], [0], [0], [1], [0, 0, 1, 1], [], []>} : vector<72x128xbf16>, vector<128x128xbf16>, vector<72x128xf32> -> vector<72x128xf32>
    %104 = arith.addf %96, %103 : vector<72x128xf32>
    %c2_91 = arith.constant 2 : index
    %c0_92 = arith.constant 0 : index
    %c0_93 = arith.constant 0 : index
    %105 = vector.load %arg6[%c2_91, %c0_92, %c0_93] : memref<4x72x72xbf16, #tpu.memory_space<vmem>>, vector<1x72x72xbf16>
    %106 = vector.shape_cast %105 : vector<1x72x72xbf16> to vector<72x72xbf16>
    %cst_94 = arith.constant dense<0.000000e+00> : vector<72x128xf32>
    %107 = tpu.matmul %106, %87, %cst_94 {dimension_numbers = #tpu.dot_dimension_numbers<[1], [0], [0], [1], [0, 0, 1, 1], [], []>} : vector<72x72xbf16>, vector<72x128xbf16>, vector<72x128xf32> -> vector<72x128xf32>
    %108 = arith.truncf %107 : vector<72x128xf32> to vector<72x128xbf16>
    %c2_95 = arith.constant 2 : index
    %c0_96 = arith.constant 0 : index
    %c0_97 = arith.constant 0 : index
    %109 = vector.load %arg7[%c2_95, %c0_96, %c0_97] : memref<4x128x128xbf16, #tpu.memory_space<vmem>>, vector<1x128x128xbf16>
    %110 = vector.shape_cast %109 : vector<1x128x128xbf16> to vector<128x128xbf16>
    %cst_98 = arith.constant dense<0.000000e+00> : vector<72x128xf32>
    %111 = tpu.matmul %108, %110, %cst_98 {dimension_numbers = #tpu.dot_dimension_numbers<[1], [0], [0], [1], [0, 0, 1, 1], [], []>} : vector<72x128xbf16>, vector<128x128xbf16>, vector<72x128xf32> -> vector<72x128xf32>
    %112 = arith.addf %104, %111 : vector<72x128xf32>
    %c3_99 = arith.constant 3 : index
    %c0_100 = arith.constant 0 : index
    %c0_101 = arith.constant 0 : index
    %113 = vector.load %arg6[%c3_99, %c0_100, %c0_101] : memref<4x72x72xbf16, #tpu.memory_space<vmem>>, vector<1x72x72xbf16>
    %114 = vector.shape_cast %113 : vector<1x72x72xbf16> to vector<72x72xbf16>
    %cst_102 = arith.constant dense<0.000000e+00> : vector<72x128xf32>
    %115 = tpu.matmul %114, %87, %cst_102 {dimension_numbers = #tpu.dot_dimension_numbers<[1], [0], [0], [1], [0, 0, 1, 1], [], []>} : vector<72x72xbf16>, vector<72x128xbf16>, vector<72x128xf32> -> vector<72x128xf32>
    %116 = arith.truncf %115 : vector<72x128xf32> to vector<72x128xbf16>
    %c3_103 = arith.constant 3 : index
    %c0_104 = arith.constant 0 : index
    %c0_105 = arith.constant 0 : index
    %117 = vector.load %arg7[%c3_103, %c0_104, %c0_105] : memref<4x128x128xbf16, #tpu.memory_space<vmem>>, vector<1x128x128xbf16>
    %118 = vector.shape_cast %117 : vector<1x128x128xbf16> to vector<128x128xbf16>
    %cst_106 = arith.constant dense<0.000000e+00> : vector<72x128xf32>
    %119 = tpu.matmul %116, %118, %cst_106 {dimension_numbers = #tpu.dot_dimension_numbers<[1], [0], [0], [1], [0, 0, 1, 1], [], []>} : vector<72x128xbf16>, vector<128x128xbf16>, vector<72x128xf32> -> vector<72x128xf32>
    %120 = arith.addf %112, %119 : vector<72x128xf32>
    %c0_107 = arith.constant 0 : index
    %c0_108 = arith.constant 0 : index
    %121 = vector.load %arg8[%c0_107, %c0_108] : memref<1x128xf32, #tpu.memory_space<vmem>>, vector<1x128xf32>
    %122 = vector.broadcast %121 : vector<1x128xf32> to vector<72x128xf32>
    %123 = arith.addf %120, %122 : vector<72x128xf32>
    %cst_109 = arith.constant 0.000000e+00 : f32
    %124 = vector.broadcast %cst_109 : f32 to vector<72x128xf32>
    %125 = arith.maximumf %123, %124 : vector<72x128xf32>
    %c0_110 = arith.constant 0 : index
    %c0_111 = arith.constant 0 : index
    %126 = vector.load %arg14[%c0_110, %c0_111] : memref<72x128xf32, #tpu.memory_space<vmem>>, vector<72x128xf32>
    tpu.vector_store %arg14[%c0_110, %c0_111], %125 {strides = array<i32>} : memref<72x128xf32, #tpu.memory_space<vmem>>, vector<72x128xf32>,
    %cst_112 = arith.constant 0.000000e+00 : f32
    %127 = vector.broadcast %cst_112 : f32 to vector<8x128xf32>
    %128 = vector.extract_strided_slice %125 {offsets = [0, 0], sizes = [8, 128], strides = [1, 1]} : vector<72x128xf32> to vector<8x128xf32>
    %c0_113 = arith.constant 0 : index
    %c0_114 = arith.constant 0 : index
    %c0_115 = arith.constant 0 : index
    %129 = vector.load %arg9[%c0_113, %c0_114, %c0_115] : memref<9x128x128xf32, #tpu.memory_space<vmem>>, vector<1x128x128xf32>
    %130 = vector.shape_cast %129 : vector<1x128x128xf32> to vector<128x128xf32>
    %cst_116 = arith.constant dense<0.000000e+00> : vector<8x128xf32>
    %131 = tpu.matmul %128, %130, %cst_116 {dimension_numbers = #tpu.dot_dimension_numbers<[1], [0], [0], [1], [0, 0, 1, 1], [], []>} : vector<8x128xf32>, vector<128x128xf32>, vector<8x128xf32> -> vector<8x128xf32>
    %132 = arith.addf %127, %131 : vector<8x128xf32>
    %133 = vector.extract_strided_slice %125 {offsets = [8, 0], sizes = [8, 128], strides = [1, 1]} : vector<72x128xf32> to vector<8x128xf32>
    %c1_117 = arith.constant 1 : index
    %c0_118 = arith.constant 0 : index
    %c0_119 = arith.constant 0 : index
    %134 = vector.load %arg9[%c1_117, %c0_118, %c0_119] : memref<9x128x128xf32, #tpu.memory_space<vmem>>, vector<1x128x128xf32>
    %135 = vector.shape_cast %134 : vector<1x128x128xf32> to vector<128x128xf32>
    %cst_120 = arith.constant dense<0.000000e+00> : vector<8x128xf32>
    %136 = tpu.matmul %133, %135, %cst_120 {dimension_numbers = #tpu.dot_dimension_numbers<[1], [0], [0], [1], [0, 0, 1, 1], [], []>} : vector<8x128xf32>, vector<128x128xf32>, vector<8x128xf32> -> vector<8x128xf32>
    %137 = arith.addf %132, %136 : vector<8x128xf32>
    %138 = vector.extract_strided_slice %125 {offsets = [16, 0], sizes = [8, 128], strides = [1, 1]} : vector<72x128xf32> to vector<8x128xf32>
    %c2_121 = arith.constant 2 : index
    %c0_122 = arith.constant 0 : index
    %c0_123 = arith.constant 0 : index
    %139 = vector.load %arg9[%c2_121, %c0_122, %c0_123] : memref<9x128x128xf32, #tpu.memory_space<vmem>>, vector<1x128x128xf32>
    %140 = vector.shape_cast %139 : vector<1x128x128xf32> to vector<128x128xf32>
    %cst_124 = arith.constant dense<0.000000e+00> : vector<8x128xf32>
    %141 = tpu.matmul %138, %140, %cst_124 {dimension_numbers = #tpu.dot_dimension_numbers<[1], [0], [0], [1], [0, 0, 1, 1], [], []>} : vector<8x128xf32>, vector<128x128xf32>, vector<8x128xf32> -> vector<8x128xf32>
    %142 = arith.addf %137, %141 : vector<8x128xf32>
    %143 = vector.extract_strided_slice %125 {offsets = [24, 0], sizes = [8, 128], strides = [1, 1]} : vector<72x128xf32> to vector<8x128xf32>
    %c3_125 = arith.constant 3 : index
    %c0_126 = arith.constant 0 : index
    %c0_127 = arith.constant 0 : index
    %144 = vector.load %arg9[%c3_125, %c0_126, %c0_127] : memref<9x128x128xf32, #tpu.memory_space<vmem>>, vector<1x128x128xf32>
    %145 = vector.shape_cast %144 : vector<1x128x128xf32> to vector<128x128xf32>
    %cst_128 = arith.constant dense<0.000000e+00> : vector<8x128xf32>
    %146 = tpu.matmul %143, %145, %cst_128 {dimension_numbers = #tpu.dot_dimension_numbers<[1], [0], [0], [1], [0, 0, 1, 1], [], []>} : vector<8x128xf32>, vector<128x128xf32>, vector<8x128xf32> -> vector<8x128xf32>
    %147 = arith.addf %142, %146 : vector<8x128xf32>
    %148 = vector.extract_strided_slice %125 {offsets = [32, 0], sizes = [8, 128], strides = [1, 1]} : vector<72x128xf32> to vector<8x128xf32>
    %c4_129 = arith.constant 4 : index
    %c0_130 = arith.constant 0 : index
    %c0_131 = arith.constant 0 : index
    %149 = vector.load %arg9[%c4_129, %c0_130, %c0_131] : memref<9x128x128xf32, #tpu.memory_space<vmem>>, vector<1x128x128xf32>
    %150 = vector.shape_cast %149 : vector<1x128x128xf32> to vector<128x128xf32>
    %cst_132 = arith.constant dense<0.000000e+00> : vector<8x128xf32>
    %151 = tpu.matmul %148, %150, %cst_132 {dimension_numbers = #tpu.dot_dimension_numbers<[1], [0], [0], [1], [0, 0, 1, 1], [], []>} : vector<8x128xf32>, vector<128x128xf32>, vector<8x128xf32> -> vector<8x128xf32>
    %152 = arith.addf %147, %151 : vector<8x128xf32>
    %153 = vector.extract_strided_slice %125 {offsets = [40, 0], sizes = [8, 128], strides = [1, 1]} : vector<72x128xf32> to vector<8x128xf32>
    %c5_133 = arith.constant 5 : index
    %c0_134 = arith.constant 0 : index
    %c0_135 = arith.constant 0 : index
    %154 = vector.load %arg9[%c5_133, %c0_134, %c0_135] : memref<9x128x128xf32, #tpu.memory_space<vmem>>, vector<1x128x128xf32>
    %155 = vector.shape_cast %154 : vector<1x128x128xf32> to vector<128x128xf32>
    %cst_136 = arith.constant dense<0.000000e+00> : vector<8x128xf32>
    %156 = tpu.matmul %153, %155, %cst_136 {dimension_numbers = #tpu.dot_dimension_numbers<[1], [0], [0], [1], [0, 0, 1, 1], [], []>} : vector<8x128xf32>, vector<128x128xf32>, vector<8x128xf32> -> vector<8x128xf32>
    %157 = arith.addf %152, %156 : vector<8x128xf32>
    %158 = vector.extract_strided_slice %125 {offsets = [48, 0], sizes = [8, 128], strides = [1, 1]} : vector<72x128xf32> to vector<8x128xf32>
    %c6_137 = arith.constant 6 : index
    %c0_138 = arith.constant 0 : index
    %c0_139 = arith.constant 0 : index
    %159 = vector.load %arg9[%c6_137, %c0_138, %c0_139] : memref<9x128x128xf32, #tpu.memory_space<vmem>>, vector<1x128x128xf32>
    %160 = vector.shape_cast %159 : vector<1x128x128xf32> to vector<128x128xf32>
    %cst_140 = arith.constant dense<0.000000e+00> : vector<8x128xf32>
    %161 = tpu.matmul %158, %160, %cst_140 {dimension_numbers = #tpu.dot_dimension_numbers<[1], [0], [0], [1], [0, 0, 1, 1], [], []>} : vector<8x128xf32>, vector<128x128xf32>, vector<8x128xf32> -> vector<8x128xf32>
    %162 = arith.addf %157, %161 : vector<8x128xf32>
    %163 = vector.extract_strided_slice %125 {offsets = [56, 0], sizes = [8, 128], strides = [1, 1]} : vector<72x128xf32> to vector<8x128xf32>
    %c7_141 = arith.constant 7 : index
    %c0_142 = arith.constant 0 : index
    %c0_143 = arith.constant 0 : index
    %164 = vector.load %arg9[%c7_141, %c0_142, %c0_143] : memref<9x128x128xf32, #tpu.memory_space<vmem>>, vector<1x128x128xf32>
    %165 = vector.shape_cast %164 : vector<1x128x128xf32> to vector<128x128xf32>
    %cst_144 = arith.constant dense<0.000000e+00> : vector<8x128xf32>
    %166 = tpu.matmul %163, %165, %cst_144 {dimension_numbers = #tpu.dot_dimension_numbers<[1], [0], [0], [1], [0, 0, 1, 1], [], []>} : vector<8x128xf32>, vector<128x128xf32>, vector<8x128xf32> -> vector<8x128xf32>
    %167 = arith.addf %162, %166 : vector<8x128xf32>
    %168 = vector.extract_strided_slice %125 {offsets = [64, 0], sizes = [8, 128], strides = [1, 1]} : vector<72x128xf32> to vector<8x128xf32>
    %c8_145 = arith.constant 8 : index
    %c0_146 = arith.constant 0 : index
    %c0_147 = arith.constant 0 : index
    %169 = vector.load %arg9[%c8_145, %c0_146, %c0_147] : memref<9x128x128xf32, #tpu.memory_space<vmem>>, vector<1x128x128xf32>
    %170 = vector.shape_cast %169 : vector<1x128x128xf32> to vector<128x128xf32>
    %cst_148 = arith.constant dense<0.000000e+00> : vector<8x128xf32>
    %171 = tpu.matmul %168, %170, %cst_148 {dimension_numbers = #tpu.dot_dimension_numbers<[1], [0], [0], [1], [0, 0, 1, 1], [], []>} : vector<8x128xf32>, vector<128x128xf32>, vector<8x128xf32> -> vector<8x128xf32>
    %172 = arith.addf %167, %171 : vector<8x128xf32>
    %c0_149 = arith.constant 0 : index
    %c0_150 = arith.constant 0 : index
    %173 = vector.load %arg10[%c0_149, %c0_150] : memref<1x128xf32, #tpu.memory_space<vmem>>, vector<1x128xf32>
    %174 = vector.broadcast %173 : vector<1x128xf32> to vector<8x128xf32>
    %175 = arith.addf %172, %174 : vector<8x128xf32>
    %c0_151 = arith.constant 0 : index
    %c0_152 = arith.constant 0 : index
    %176 = vector.load %arg11[%c0_151, %c0_152] : memref<128x128xf32, #tpu.memory_space<vmem>>, vector<128x128xf32>
    %cst_153 = arith.constant dense<0.000000e+00> : vector<8x128xf32>
    %177 = tpu.matmul %175, %176, %cst_153 {dimension_numbers = #tpu.dot_dimension_numbers<[1], [0], [0], [1], [0, 0, 1, 1], [], []>} : vector<8x128xf32>, vector<128x128xf32>, vector<8x128xf32> -> vector<8x128xf32>
    %c0_154 = arith.constant 0 : index
    %c0_155 = arith.constant 0 : index
    %178 = vector.load %arg12[%c0_154, %c0_155] : memref<1x128xf32, #tpu.memory_space<vmem>>, vector<1x128xf32>
    %179 = vector.broadcast %178 : vector<1x128xf32> to vector<8x128xf32>
    %180 = arith.addf %177, %179 : vector<8x128xf32>
    %181 = tpu.iota {dimensions = array<i32: 1>} : vector<8x128xi32>
    %c10_i32 = arith.constant 10 : i32
    %182 = vector.broadcast %c10_i32 : i32 to vector<8x128xi32>
    %183 = arith.cmpi slt, %181, %182 : vector<8x128xi32>
    %cst_156 = arith.constant -1.000000e+30 : f32
    %184 = vector.broadcast %cst_156 : f32 to vector<8x128xf32>
    %185 = arith.select %183, %180, %184 : vector<8x128xi1>, vector<8x128xf32>
    %cst_157 = arith.constant dense<0xFF800000> : vector<8xf32>
    %186 = vector.multi_reduction <maximumf>, %185, %cst_157 [1] : vector<8x128xf32> to vector<8xf32>
    %187 = vector.shape_cast %186 : vector<8xf32> to vector<8x1xf32>
    %188 = vector.broadcast %187 : vector<8x1xf32> to vector<8x128xf32>
    %189 = arith.subf %185, %188 : vector<8x128xf32>
    %190 = math.exp %189 : vector<8x128xf32>
    %cst_158 = arith.constant dense<0.000000e+00> : vector<8xf32>
    %191 = vector.multi_reduction <add>, %190, %cst_158 [1] : vector<8x128xf32> to vector<8xf32>
    %192 = vector.shape_cast %191 : vector<8xf32> to vector<8x1xf32>
    %193 = tpu.reciprocal %192 {approx = true} : vector<8x1xf32> -> vector<8x1xf32>
    %194 = vector.broadcast %193 : vector<8x1xf32> to vector<8x128xf32>
    %195 = arith.mulf %190, %194 : vector<8x128xf32>
    %c0_159 = arith.constant 0 : index
    %c0_160 = arith.constant 0 : index
    %196 = vector.load %arg13[%c0_159, %c0_160] : memref<8x128xf32, #tpu.memory_space<vmem>>, vector<8x128xf32>
    tpu.vector_store %arg13[%c0_159, %c0_160], %195 {strides = array<i32>} : memref<8x128xf32, #tpu.memory_space<vmem>>, vector<8x128xf32>,
    return
  }
}

</mosaic_0001>

<bundles_post_ra>
// kernel: cnn_forward.1
= control target key start
LH: loop header
LB: loop body
LE: loop exit
PB: predicated region body
PF: predicated region fallthrough
CT: control target
= control target key end

     0   :  { %20 = vsyncpa [#allocation3], 0  ;;  %s11289_s0 = inlined_call_operand.vmem [shape: bf16[288,9], index: 0, kind: input, shape index: {}]   ;;  %s11290_s1 = inlined_call_operand.vmem [shape: bf16[9,128], index: 1, kind: input, shape index: {}]   ;;  %s11291_s2 = inlined_call_operand.vmem [shape: f32[1,128], index: 2, kind: input, shape index: {}]   ;;  %s11292_s3 = inlined_call_operand.vmem [shape: bf16[9,72,288], index: 3, kind: input, shape index: {}]   ;;  %s11293_s4 = inlined_call_operand.hbm [shape: bf16[9,128,128], index: 4, kind: input, shape index: {}]   ;;  %s11294_s5 = inlined_call_operand.vmem [shape: f32[1,128], index: 5, kind: input, shape index: {}]   ;;  %s11295_s6 = inlined_call_operand.hbm [shape: bf16[4,72,72], index: 6, kind: input, shape index: {}]   ;;  %s11296_s7 = inlined_call_operand.hbm [shape: bf16[4,128,128], index: 7, kind: input, shape index: {}]   ;;  %s11297_s8 = inlined_call_operand.vmem [shape: f32[1,128], index: 8, kind: input, shape index: {}]   ;;  %s11298_s9 = inlined_call_operand.hbm [shape: f32[9,128,128], index: 9, kind: input, shape index: {}]   ;;  %s11299_s10 = inlined_call_operand.vmem [shape: f32[1,128], index: 10, kind: input, shape index: {}]   ;;  %s11300_s11 = inlined_call_operand.hbm [shape: f32[128,128], index: 11, kind: input, shape index: {}]   ;;  %s11301_s12 = inlined_call_operand.vmem [shape: f32[1,128], index: 12, kind: input, shape index: {}]   ;;  %s11302_s13 = inlined_call_operand.vmem [shape: f32[8,128], index: 13, kind: output, shape index: {0}]   ;;  %s11303_s14 = inlined_call_operand.vmem [shape: f32[72,128], index: 14, kind: output, shape index: {1}]  }
   0x1   :  { %21 = vsyncpa [#allocation5], 0 }
   0x2   :  { %22 = vsyncpa [#allocation8], 0  ;;  %s9180_s29 = smov [#allocation4]   ;;  %s9181_s15 = smov [#allocation7]  }
   0x3   :  { %s50_s30 = sshll.u32 %s9180_s29, 4  ;;  %s76_s16 = sshll.u32 %s9181_s15, 4  ;;  %s51_s30 = int_to_ptr.vmem [resolvable:$true] %s50_s30  ;;  %s77_s16 = int_to_ptr.vmem [resolvable:$true] %s76_s16 }
   0x4   :  { %s9082_s17 = scalar_lea.vmem %s51_s30, 2304  ;;  %p9087_p1 = scmp.lt.s32.totalorder %s51_s30, %s51_s30 }
   0x5   :  { %p9083_p0 = scmp.ne.s32.totalorder %s51_s30, %s9082_s17  ;;  %p9088_p2 = scmp.lt.s32.totalorder %s9082_s17, %s9082_s17 }
   0x7   :  { %p9089_p3 = por %p9088_p2, %p9087_p1 }
   0x9   :  { %p9090_p4 = pnand %p9089_p3, %p9083_p0 }
   0xb   :  { %9093 = shalt.err (!%p9090_p4)
}
   0xc   :  { %s9182_s18 = smov 64   ;;  %s9183_s19 = smov 4  }
   0xd   :  { %56 = dma.hbm_to_vmem [thread:$0]  %s11295_s6, 2304, %s51_s30, [#allocation5], %s9182_s18, %s9182_s18, %s9183_s19  }
   0xe   :  { %s9102_s22 = scalar_lea.vmem %s77_s16, 18432  ;;  %p9107_p6 = scmp.lt.s32.totalorder %s77_s16, %s77_s16 }
   0xf   :  { %p9103_p5 = scmp.ne.s32.totalorder %s77_s16, %s9102_s22  ;;  %p9108_p7 = scmp.lt.s32.totalorder %s9102_s22, %s9102_s22 }
  0x11   :  { %p9109_p8 = por %p9108_p7, %p9107_p6 }
  0x13   :  { %p9110_p9 = pnand %p9109_p8, %p9103_p5 }
  0x15   :  { %9113 = shalt.err (!%p9110_p9)
}
  0x16   :  { %s9184_s23 = smov 128   ;;  %s9185_s24 = smov 8  }
  0x17   :  { %82 = dma.hbm_to_vmem [thread:$0]  %s11298_s9, 18432, %s77_s16, [#allocation8], %s9184_s23, %s9184_s23, %s9185_s24  }
  0x18   :  { %s9186_s27 = smov [#allocation2]   ;;  %s9187_s29 = smov [#allocation6]  }
  0x19   :  { %s36_s28 = sshll.u32 %s9186_s27, 4  ;;  %s62_s6 = sshll.u32 %s9187_s29, 4  ;;  %s37_s28 = int_to_ptr.vmem [resolvable:$true] %s36_s28  ;;  %s63_s6 = int_to_ptr.vmem [resolvable:$true] %s62_s6 }
  0x1a   :  { %s9122_s30 = scalar_lea.vmem %s37_s28, 9216  ;;  %p9127_p11 = scmp.lt.s32.totalorder %s37_s28, %s37_s28 }
  0x1b   :  { %p9123_p10 = scmp.ne.s32.totalorder %s37_s28, %s9122_s30  ;;  %p9128_p12 = scmp.lt.s32.totalorder %s9122_s30, %s9122_s30 }
  0x1d   :  { %p9129_p13 = por %p9128_p12, %p9127_p11 }
  0x1f   :  { %p9130_p0 = pnand %p9129_p13, %p9123_p10 }
  0x21   :  { %9133 = shalt.err (!%p9130_p0)
}
  0x22   :  { %42 = dma.hbm_to_vmem [thread:$0]  %s11293_s4, 9216, %s37_s28, [#allocation3], %s9182_s18, %s9182_s18, %s9183_s19  }
  0x23   :  { %s9142_s9 = scalar_lea.vmem %s63_s6, 4096  ;;  %p9147_p2 = scmp.lt.s32.totalorder %s63_s6, %s63_s6 }
  0x24   :  { %p9143_p1 = scmp.ne.s32.totalorder %s63_s6, %s9142_s9  ;;  %p9148_p3 = scmp.lt.s32.totalorder %s9142_s9, %s9142_s9 }
  0x26   :  { %p9149_p4 = por %p9148_p3, %p9147_p2 }
  0x28   :  { %p9150_p5 = pnand %p9149_p4, %p9143_p1 }
  0x2a   :  { %9153 = shalt.err (!%p9150_p5)
}
  0x2b   :  { %68 = dma.hbm_to_vmem [thread:$0]  %s11296_s7, 4096, %s63_s6, [#allocation5], %s9182_s18, %s9182_s18, %s9183_s19  }
  0x2c   :  { %s9188_s21 = smov [#allocation9]  }
  0x2d   :  { %s90_s22 = sshll.u32 %s9188_s21, 4  ;;  %s91_s22 = int_to_ptr.vmem [resolvable:$true] %s90_s22 }
  0x2e   :  { %s9162_s25 = scalar_lea.vmem %s91_s22, 2048  ;;  %p9167_p7 = scmp.lt.s32.totalorder %s91_s22, %s91_s22 }
  0x2f   :  { %p9163_p6 = scmp.ne.s32.totalorder %s91_s22, %s9162_s25  ;;  %p9168_p8 = scmp.lt.s32.totalorder %s9162_s25, %s9162_s25 }
  0x31   :  { %p9169_p9 = por %p9168_p8, %p9167_p7 }
  0x33   :  { %p9170_p10 = pnand %p9169_p9, %p9163_p6 }
  0x35   :  { %9173 = shalt.err (!%p9170_p10)
}
  0x36   :  { %96 = dma.hbm_to_vmem [thread:$0]  %s11300_s11, 2048, %s91_s22, [#allocation8], %s9184_s23, %s9184_s23, %s9185_s24  }
  0x37   :  { %9174 = dma.done.wait [#allocation3], 9216  }
  0x38   :  { %9175 = vsyncadd [#allocation3], 4294958080 }
  0x39   :  { %9176 = dma.done.wait [#allocation5], 6400  }
  0x3a   :  { %9177 = vsyncadd [#allocation5], 4294960896 }
  0x3b   :  { %9178 = dma.done.wait [#allocation8], 20480  }
  0x3c   :  { %9179 = vsyncadd [#allocation8], 4294946816  ;;  %vm310_vm0 = vcmask 1043456   ;;  %vm311_vm1 = vcmask 1044480   ;;  %v9189_v0 = vmov 65535   ;;  %vm255_vm2 = vcmask 72704  }
  0x3d   :  { %v312_v1 = vsel %vm310_vm0, 4294967295, %v9189_v0  ;;  %v8756_v3 = vld [vmem:[%s11290_s1] sm:$0x1f]   ;;  %v8758_v6 = vld [vmem:[%s11289_s0 + $0x8] sm:$0xff]   ;;  %v8759_v7 = vld [vmem:[%s11289_s0 + $0x10] sm:$0xff]   ;;  %vm9191_vm3 = vmmov 0  }
  0x3e   :  { %v313_v2 = vsel %vm311_vm1, %v312_v1, 0  ;;  %v8757_v4 = vld [vmem:[%s11289_s0] sm:$0xff]   ;;  %v8760_v8 = vld [vmem:[%s11289_s0 + $0x18] sm:$0xff]   ;;  %v8762_v10 = vld [vmem:[%s11289_s0 + $0x28] sm:$0xff]   ;;  %vm636_vm4 = vcmask 261120   ;;  %vm4182_vm5 = vcmask 588800  }
  0x3f   :  { %v315_v5 = vand.u32 %v8756_v3, %v313_v2  ;;  %7554 = vmatprep.mubr.msk.bf16.mxu0 %vm255_vm2, %v8757_v4  ;;  %v8761_v9 = vld [vmem:[%s11289_s0 + $0x20] sm:$0xff]   ;;  %v8763_v11 = vld [vmem:[%s11289_s0 + $0x30] sm:$0xff]   ;;  %v8764_v12 = vld [vmem:[%s11289_s0 + $0x38] sm:$0xff]  }
  0x40   :  { %v8765_v13 = vld [vmem:[%s11289_s0 + $0x40] sm:$0xff]   ;;  %v8766_v14 = vld [vmem:[%s11289_s0 + $0x48] sm:$0xff]   ;;  %v8767_v15 = vld [vmem:[%s11289_s0 + $0x50] sm:$0xff]  }
  0x41   :  { %7552 = vmatprep.subr.bf16.mxu0 %v315_v5  ;;  %v8768_v16 = vld [vmem:[%s11289_s0 + $0x58] sm:$0xff]   ;;  %v8769_v17 = vld [vmem:[%s11289_s0 + $0x60] sm:$0xff]   ;;  %v8770_v18 = vld [vmem:[%s11289_s0 + $0x68] sm:$0xff]  }
  0x42   :  { %7553 = vmatpush3.bf16.msra.mxu0 %v315_v5  ;;  %v8771_v19 = vld [vmem:[%s11289_s0 + $0x70] sm:$0xff]   ;;  %v8772_v20 = vld [vmem:[%s11289_s0 + $0x78] sm:$0xff]   ;;  %v8773_v21 = vld [vmem:[%s11289_s0 + $0x80] sm:$0xff]  }
  0x43   :  { %v8774_v22 = vld [vmem:[%s11289_s0 + $0x88] sm:$0xff]   ;;  %v8777_v23 = vld [vmem:[%s11292_s3 + $0x4] ss:$12 sps:$4 sm:$0xff]   ;;  %v9382_v26 = vld [vmem:[%s11291_s2] ss:$0 sm:$0xff] }
  0x44   :  { %v8780_v24 = vld [vmem:[%s11292_s3 + $0x70] ss:$12 sps:$4 sm:$0xff]   ;;  %684 = vmatprep.mubr.bf16.mxu1 %v8777_v23 }
  0x45   :  { %7555 = vmatmul.mubr.msk.bf16.vlgmr.msra.gmra.mxu0 %vm255_vm2, %v8758_v6 }
  0x46   :  { %7558 = vmatprep.mubr.msk.bf16.mxu0 %vm255_vm2, %v8759_v7 }
  0x4d   :  { %7559 = vmatmul.mubr.msk.bf16.gmra.mxu0 %vm255_vm2, %v8760_v8 }
  0x4e   :  { %7562 = vmatprep.mubr.msk.bf16.mxu0 %vm255_vm2, %v8761_v9 }
  0x55   :  { %7563 = vmatmul.mubr.msk.bf16.gmra.mxu0 %vm255_vm2, %v8762_v10 }
  0x56   :  { %7566 = vmatprep.mubr.msk.bf16.mxu0 %vm255_vm2, %v8763_v11 }
  0x5d   :  { %7567 = vmatmul.mubr.msk.bf16.gmra.mxu0 %vm255_vm2, %v8764_v12 }
  0x5e   :  { %7570 = vmatprep.mubr.msk.bf16.mxu0 %vm255_vm2, %v8765_v13 }
  0x65   :  { %7571 = vmatmul.mubr.msk.bf16.gmra.mxu0 %vm255_vm2, %v8766_v14 }
  0x66   :  { %7574 = vmatprep.mubr.msk.bf16.mxu0 %vm255_vm2, %v8767_v15 }
  0x6d   :  { %7575 = vmatmul.mubr.msk.bf16.gmra.mxu0 %vm255_vm2, %v8768_v16 }
  0x6e   :  { %7578 = vmatprep.mubr.msk.bf16.mxu0 %vm255_vm2, %v8769_v17 }
  0x75   :  { %7579 = vmatmul.mubr.msk.bf16.gmra.mxu0 %vm255_vm2, %v8770_v18 }
  0x76   :  { %7582 = vmatprep.mubr.msk.bf16.mxu0 %vm255_vm2, %v8771_v19 }
  0x7d   :  { %7583 = vmatmul.mubr.msk.bf16.gmra.mxu0 %vm255_vm2, %v8772_v20 }
  0x7e   :  { %7586 = vmatprep.mubr.msk.bf16.mxu0 %vm255_vm2, %v8773_v21 }
  0x85   :  { %7587 = vmatmul.mubr.msk.bf16.gmra.mxu0 %vm255_vm2, %v8774_v22 }
  0x86   :  { %953 = vmatprep.mubr.bf16.mxu0 %v8780_v24 }
 0x105   :  { %v7556_v25 = vpop.f32.mrf.mxu0 }
 0x106   :  { %v360_v28 = vadd.f32 %v7556_v25, %v9382_v26 }
 0x107   :  { %v9384_v27 = vpop.f32.mrf.mxu0 }
 0x108   :  { %v496_v32 = vmax.f32 %v360_v28, 0.0 }
 0x109   :  { %v7557_v29 = vpop.f32.mrf.mxu0 }
 0x10a   :  { %v363_v30 = vadd.f32 %v7557_v29, %v9382_v26 }
 0x10b   :  { %v9388_v31 = vpop.f32.mrf.mxu0 }
 0x10c   :  { %v497_v33 = vmax.f32 %v363_v30, 0.0 }
 0x10d   :  { %v7560_v34 = vpop.f32.mrf.mxu0 }
 0x10e   :  { %v9390_v35 = vpack.c.bf16 %v497_v33, %v496_v32  ;;  %v376_v37 = vadd.f32 %v7560_v34, %v9382_v26 }
 0x10f   :  { %v9392_v36 = vpop.f32.mrf.mxu0 }
 0x110   :  { %v500_v41 = vmax.f32 %v376_v37, 0.0 }
 0x111   :  { %v7561_v38 = vpop.f32.mrf.mxu0 }
 0x112   :  { %v379_v39 = vadd.f32 %v7561_v38, %v9382_v26 }
 0x113   :  { %v9396_v40 = vpop.f32.mrf.mxu0 }
 0x114   :  { %v501_v42 = vmax.f32 %v379_v39, 0.0 }
 0x115   :  { %v7564_v43 = vpop.f32.mrf.mxu0 }
 0x116   :  { %v9398_v44 = vpack.c.bf16 %v501_v42, %v500_v41  ;;  %v392_v29 = vadd.f32 %v7564_v43, %v9382_v26 }
 0x117   :  { %v9400_v45 = vpop.f32.mrf.mxu0 }
 0x118   :  { %v504_v43 = vmax.f32 %v392_v29, 0.0  ;;  %v8778_v29 = vld [vmem:[%s11292_s3 + $0x6c] ss:$12 sps:$4 sm:$0xff]  }
 0x119   :  { %v7565_v46 = vpop.f32.mrf.mxu0 }
 0x11a   :  { %v395_v21 = vadd.f32 %v7565_v46, %v9382_v26  ;;  %v384_v46 = vadd.f32 %v9382_v26, %v9400_v45 }
 0x11b   :  { %v386_v47 = vpop.f32.mrf.mxu0 }
 0x11c   :  { %v505_v34 = vmax.f32 %v395_v21, 0.0  ;;  %v387_v37 = vadd.f32 %v9382_v26, %v386_v47  ;;  %v502_v45 = vmax.f32 %v384_v46, 0.0  ;;  %v8785_v46 = vld [vmem:[%s11292_s3 + $0x18] ss:$12 sps:$4 sm:$0xff]  }
 0x11d   :  { %v7568_v48 = vpop.f32.mrf.mxu0 }
 0x11e   :  { %v408_v4 = vadd.f32 %v7568_v48, %v9382_v26  ;;  %v9451_v47 = vpack.c.bf16 %v505_v34, %v504_v43 }
 0x11f   :  { %v399_v49 = vpop.f32.mrf.mxu0 }
 0x120   :  { %v508_v15 = vmax.f32 %v408_v4, 0.0  ;;  %v400_v16 = vadd.f32 %v9382_v26, %v399_v49 }
 0x121   :  { %v7569_v50 = vpop.f32.mrf.mxu0 }
 0x122   :  { %v411_v1 = vadd.f32 %v7569_v50, %v9382_v26  ;;  %v506_v30 = vmax.f32 %v400_v16, 0.0  ;;  %v503_v50 = vmax.f32 %v387_v37, 0.0 }
 0x123   :  { %v402_v51 = vpop.f32.mrf.mxu0 }
 0x124   :  { %v509_v8 = vmax.f32 %v411_v1, 0.0  ;;  %v403_v9 = vadd.f32 %v9382_v26, %v402_v51 }
 0x125   :  { %v9402_v52 = vpop.f32.mrf.mxu0 }
 0x126   :  { %v9425_v22 = vpack.c.bf16 %v509_v8, %v508_v15  ;;  %v507_v23 = vmax.f32 %v403_v9, 0.0  ;;  %v355_v9 = vadd.f32 %v9382_v26, %v9388_v31 }
 0x127   :  { %v9404_v53 = vpop.f32.mrf.mxu0 }
 0x128   :  { %v9439_v38 = vpack.c.bf16 %v507_v23, %v506_v30  ;;  %v495_v15 = vmax.f32 %v355_v9, 0.0  ;;  %v8781_v30 = vld [vmem:[#allocation2 + $0x78] sm:$0xff]   ;;  %v8801_v9 = vld [vmem:[%s11292_s3 + $0x20] ss:$12 sps:$4 sm:$0xff]  }
 0x129   :  { %v9406_v54 = vpop.f32.mrf.mxu0 }
 0x12b   :  { %v9408_v55 = vpop.f32.mrf.mxu0 }
 0x12d   :  { %v7576_v56 = vpop.f32.mrf.mxu0 }
 0x12e   :  { %v440_v48 = vadd.f32 %v7576_v56, %v9382_v26 }
 0x12f   :  { %v9410_v57 = vpop.f32.mrf.mxu0 }
 0x130   :  { %v432_v56 = vadd.f32 %v9382_v26, %v9410_v57  ;;  %v424_v57 = vadd.f32 %v9402_v52, %v9382_v26  ;;  %v416_v52 = vadd.f32 %v9382_v26, %v9404_v53 }
 0x131   :  { %v7577_v58 = vpop.f32.mrf.mxu0 }
 0x132   :  { %v443_v39 = vadd.f32 %v7577_v58, %v9382_v26  ;;  %v512_v8 = vmax.f32 %v424_v57, 0.0  ;;  %v510_v53 = vmax.f32 %v416_v52, 0.0  ;;  %v8795_v57 = vld [vmem:[%s11292_s3 + $0x48] ss:$12 sps:$4 sm:$0xff]  }
 0x133   :  { %v434_v59 = vpop.f32.mrf.mxu0  ;;  %v8800_v52 = vld [vmem:[%s11292_s3 + $0x8] ss:$12 sps:$4 sm:$0xff]  }
 0x134   :  { %v517_v51 = vmax.f32 %v443_v39, 0.0  ;;  %v435_v58 = vadd.f32 %v9382_v26, %v434_v59  ;;  %v8805_v39 = vld [vmem:[%s11292_s3 + $0x88] ss:$12 sps:$4 sm:$0xff]  }
 0x135   :  { %v7580_v60 = vpop.f32.mrf.mxu0 }
 0x136   :  { %v456_v17 = vadd.f32 %v7580_v60, %v9382_v26 }
 0x137   :  { %v447_v61 = vpop.f32.mrf.mxu0 }
 0x138   :  { %v520_v32 = vmax.f32 %v456_v17, 0.0  ;;  %v448_v33 = vadd.f32 %v9382_v26, %v447_v61  ;;  %v516_v61 = vmax.f32 %v440_v48, 0.0  ;;  %v8807_v48 = vld [vmem:[%s11292_s3 + $0x84] ss:$12 sps:$4 sm:$0xff]  }
 0x139   :  { %v7581_v62 = vpop.f32.mrf.mxu0 }
 0x13a   :  { %v459_v11 = vadd.f32 %v7581_v62, %v9382_v26  ;;  %v518_v49 = vmax.f32 %v448_v33, 0.0  ;;  %v371_v62 = vadd.f32 %v9382_v26, %v9396_v40  ;;  %v9468_v1 = vpack.c.bf16 %v517_v51, %v516_v61  ;;  %v8809_v51 = vld [vmem:[%s11292_s3 + $0xa0] ss:$12 sps:$4 sm:$0xff]   ;;  %v8811_v61 = vld [vmem:[%s11292_s3 + $0x9c] ss:$12 sps:$4 sm:$0xff]  }
 0x13b   :  { %v450_v63 = vpop.f32.mrf.mxu0  ;;  %v514_v40 = vmax.f32 %v432_v56, 0.0  ;;  %v8791_v56 = vld [vmem:[#allocation2 + $0x58] sm:$0xff]  }
 0x13c   :  { %v521_v24 = vmax.f32 %v459_v11, 0.0  ;;  %v451_v25 = vadd.f32 %v9382_v26, %v450_v63  ;;  %v9464_v63 = vpack.c.bf16 %v503_v50, %v502_v45  ;;  %v499_v4 = vmax.f32 %v371_v62, 0.0  ;;  %v8788_v50 = vld [vmem:[%s11292_s3 + $0x34] ss:$12 sps:$4 sm:$0xff]   ;;  %v8790_v45 = vld [vmem:[%s11292_s3 + $0x30] ss:$12 sps:$4 sm:$0xff]  }
 0x13d   :  { %v7584_v0 = vpop.f32.mrf.mxu0  ;;  %v8793_v62 = vld [vmem:[%s11292_s3 + $0x4c] ss:$12 sps:$4 sm:$0xff]  }
 0x13e   :  { %v472_v3 = vadd.f32 %v7584_v0, %v9382_v26  ;;  %v9442_v41 = vpack.c.bf16 %v521_v24, %v520_v32  ;;  %v519_v42 = vmax.f32 %v451_v25, 0.0  ;;  %v427_v0 = vadd.f32 %v9406_v54, %v9382_v26  ;;  %v8775_v25 = vld [vmem:[%s11292_s3] ss:$12 sps:$4 sm:$0xff]   ;;  %v8783_v32 = vld [vmem:[%s11292_s3 + $0x1c] ss:$12 sps:$4 sm:$0xff]  }
 0x13f   :  { %v463_v2 = vpop.f32.mrf.mxu0 }
 0x140   :  { %v464_v6 = vadd.f32 %v9382_v26, %v463_v2  ;;  %v524_v12 = vmax.f32 %v472_v3, 0.0  ;;  %v9454_v60 = vpack.c.bf16 %v519_v42, %v518_v49  ;;  %v515_v2 = vmax.f32 %v435_v58, 0.0  ;;  %v8782_v42 = vld [vmem:[#allocation2 + $0x70] sm:$0xff]   ;;  %v8786_v49 = vld [vmem:[#allocation2 + $0x68] sm:$0xff]   ;;  %v8787_v58 = vld [vmem:[#allocation2 + $0x60] sm:$0xff]  }
 0x141   :  { %v7585_v5 = vpop.f32.mrf.mxu0  ;;  %v368_v3 = vadd.f32 %v9382_v26, %v9392_v36 }
 0x142   :  { %v475_v7 = vadd.f32 %v7585_v5, %v9382_v26  ;;  %v522_v18 = vmax.f32 %v464_v6, 0.0  ;;  %v513_v5 = vmax.f32 %v427_v0, 0.0  ;;  %v419_v6 = vadd.f32 %v9382_v26, %v9408_v55  ;;  %v8792_v0 = vld [vmem:[#allocation2 + $0x50] sm:$0xff]  }
 0x143   :  { %v466_v10 = vpop.f32.mrf.mxu0  ;;  %v498_v36 = vmax.f32 %v368_v3, 0.0  ;;  %v6241_v3 = vld [vmem:[%s11292_s3 + $0xcc] sm:$0xff] }
 0x144   :  { %v525_v13 = vmax.f32 %v475_v7, 0.0  ;;  %v467_v14 = vadd.f32 %v9382_v26, %v466_v10  ;;  %v9480_v7 = vpack.c.bf16 %v515_v2, %v514_v40  ;;  %v9492_v11 = vpack.c.bf16 %v513_v5, %v512_v8  ;;  %v564_v2 = vld [vmem:[%s11292_s3 + $0x60] sm:$0xff] }
 0x145   :  { %v7588_v59 = vpop.f32.mrf.mxu0  ;;  %v9490_v10 = vpack.c.bf16 %v499_v4, %v498_v36  ;;  %v8815_v40 = vld [vmem:[%s11292_s3 + $0xb4] ss:$12 sps:$4 sm:$0xff]   ;;  %v8796_v4 = vld [vmem:[#allocation2 + $0x48] sm:$0xff]   ;;  %v6256_v5 = vcombine.high %v6241_v3, %v6241_v3  ;;  %v6217_v36 = vcombine.low %v564_v2, %v564_v2  ;;  %v6255_v8 = vcombine.low %v6241_v3, %v6241_v3 }
 0x146   :  { %v9422_v19 = vpack.c.bf16 %v525_v13, %v524_v12  ;;  %v523_v20 = vmax.f32 %v467_v14, 0.0  ;;  %v511_v12 = vmax.f32 %v419_v6, 0.0  ;;  %v352_v13 = vadd.f32 %v9382_v26, %v9384_v27  ;;  %v8797_v6 = vld [vmem:[#allocation2 + $0x40] sm:$0xff]  }
 0x147   :  { %v479_v54 = vpop.f32.mrf.mxu0  ;;  %v488_v31 = vadd.f32 %v7588_v59, %v9382_v26  ;;  %v8813_v59 = vld [vmem:[%s11292_s3 + $0xb8] ss:$12 sps:$4 sm:$0xff]  }
 0x148   :  { %v9428_v28 = vpack.c.bf16 %v523_v20, %v522_v18  ;;  %6696 = vmatprep.subr.bf16.mxu1 %v9422_v19  ;;  %6749 = vmatprep.subr.bf16.mxu0 %v9422_v19  ;;  %v9502_v17 = vpack.c.bf16 %v511_v12, %v510_v53  ;;  %v494_v18 = vmax.f32 %v352_v13, 0.0  ;;  %v480_v20 = vadd.f32 %v9382_v26, %v479_v54  ;;  %v8803_v12 = vld [vmem:[%s11292_s3 + $0x50] ss:$12 sps:$4 sm:$0xff]   ;;  %v8804_v13 = vld [vmem:[%s11292_s3 + $0x68] ss:$0 sps:$4 sm:$0xff]  }
 0x149   :  { %6697 = vmatpush3.bf16.msra.mxu1 %v9425_v22  ;;  %6750 = vmatpush3.bf16.msra.mxu0 %v9425_v22  ;;  %v7589_v55 = vpop.f32.mrf.mxu0  ;;  %v528_v27 = vmax.f32 %v488_v31, 0.0  ;;  %v6218_v54 = vcombine.high %v564_v2, %v564_v2  ;;  %v8808_v53 = vld [vmem:[%s11292_s3 + $0x74] ss:$12 sps:$4 sm:$0xff]   ;;  %v8821_v31 = vld [vmem:[#allocation2 + $0x38] sm:$0xff]  }
 0x14a   :  { %6698 = vmatprep.subr.bf16.mxu1 %v9428_v28  ;;  %6751 = vmatprep.subr.bf16.mxu0 %v9428_v28  ;;  %v491_v14 = vadd.f32 %v7589_v55, %v9382_v26  ;;  %11310 = vst [vmem:[#allocation13_spill] sm:$0xff] %v9502_v17  ;;  %v9510_v24 = vpack.c.bf16 %v495_v15, %v494_v18  ;;  %v526_v33 = vmax.f32 %v480_v20, 0.0  ;;  %v8802_v55 = vld [vmem:[%s11292_s3 + $0x38] ss:$12 sps:$4 sm:$0xff]   ;;  %v8822_v15 = vld [vmem:[#allocation2 + $0x30] sm:$0xff]  }
 0x14b   :  { %v482_v16 = vpop.f32.mrf.mxu0  ;;  %v8816_v18 = vld [vmem:[%s11292_s3 + $0xa4] ss:$12 sps:$4 sm:$0xff]   ;;  %v8825_v20 = vld [vmem:[#allocation2 + $0x18] sm:$0xff]  }
 0x14c   :  { %v529_v21 = vmax.f32 %v491_v14, 0.0  ;;  %v483_v23 = vadd.f32 %v9382_v26, %v482_v16  ;;  %11311 = vst [vmem:[#allocation14_spill] sm:$0xff] %v9510_v24  ;;  %v11304_v26 = vmov 0.0   ;;  %v8812_v14 = vld [vmem:[%s11292_s3 + $0x8c] ss:$12 sps:$4 sm:$0xff]  }
 0x14d   :  { %6699 = vmatpush3.bf16.msra.mxu1 %v9439_v38  ;;  %6752 = vmatpush3.bf16.msra.mxu0 %v9439_v38  ;;  %v8823_v16 = vld [vmem:[#allocation2 + $0x28] sm:$0xff]  }
 0x14e   :  { %6700 = vmatprep.subr.bf16.mxu1 %v9442_v41  ;;  %6753 = vmatprep.subr.bf16.mxu0 %v9442_v41  ;;  %v9524_v34 = vpack.c.bf16 %v529_v21, %v528_v27  ;;  %v527_v37 = vmax.f32 %v483_v23, 0.0  ;;  %v8824_v27 = vld [vmem:[#allocation2 + $0x20] sm:$0xff]   ;;  %v8817_v21 = vld [vmem:[%s11292_s3 + $0xbc] ss:$12 sps:$4 sm:$0xff]   ;;  %v8826_v23 = vld [vmem:[#allocation2 + $0x10] sm:$0xff]  }
 0x150   :  { %v9531_v43 = vpack.c.bf16 %v527_v37, %v526_v33 }
 0x151   :  { %6701 = vmatpush3.bf16.msra.mxu1 %v9451_v47  ;;  %6754 = vmatpush3.bf16.msra.mxu0 %v9451_v47 }
 0x152   :  { %6702 = vmatprep.subr.bf16.mxu1 %v9454_v60  ;;  %6755 = vmatprep.subr.bf16.mxu0 %v9454_v60 }
 0x155   :  { %6703 = vmatpush3.bf16.msra.mxu1 %v9464_v63  ;;  %6756 = vmatpush3.bf16.msra.mxu0 %v9464_v63 }
 0x156   :  { %6704 = vmatprep.subr.bf16.mxu1 %v9468_v1  ;;  %6757 = vmatprep.subr.bf16.mxu0 %v9468_v1 }
 0x159   :  { %6705 = vmatpush3.bf16.msra.mxu1 %v9398_v44  ;;  %6758 = vmatpush3.bf16.msra.mxu0 %v9398_v44 }
 0x15a   :  { %6706 = vmatprep.subr.bf16.mxu1 %v9480_v7  ;;  %6759 = vmatprep.subr.bf16.mxu0 %v9480_v7 }
 0x15d   :  { %6707 = vmatpush3.bf16.msra.mxu1 %v9490_v10  ;;  %6760 = vmatpush3.bf16.msra.mxu0 %v9490_v10 }
 0x15e   :  { %6708 = vmatprep.subr.bf16.mxu1 %v9492_v11  ;;  %6761 = vmatprep.subr.bf16.mxu0 %v9492_v11 }
 0x161   :  { %6709 = vmatpush3.bf16.msra.mxu1 %v9390_v35  ;;  %6762 = vmatpush3.bf16.msra.mxu0 %v9390_v35 }
 0x162   :  { %6710 = vmatprep.subr.bf16.mxu1 %v9502_v17  ;;  %6763 = vmatprep.subr.bf16.mxu0 %v9502_v17 }
 0x165   :  { %6711 = vmatpush3.bf16.msra.mxu1 %v9510_v24  ;;  %6764 = vmatpush3.bf16.msra.mxu0 %v9510_v24 }
 0x166   :  { %7638 = vmatprep.subr.bf16.mxu0 %v11304_v26  ;;  %7590 = vmatprep.subr.bf16.mxu1 %v11304_v26 }
 0x168   :  { %685 = vmatmul.mubr.bf16.vlgmr.msra.gmra.mxu1 %v8775_v25  ;;  %954 = vmatmul.mubr.bf16.vlgmr.msra.gmra.mxu0 %v8778_v29  ;;  %v8827_v25 = vld [vmem:[#allocation2 + $0x8] sm:$0xff]   ;;  %v8820_v29 = vld [vmem:[%s11292_s3 + $0xd4] ss:$0 sps:$4 sm:$0xff]  }
 0x169   :  { %7639 = vmatpush3.bf16.msra.mxu0 %v8781_v30  ;;  %692 = vmatprep.mubr.bf16.mxu1 %v8783_v32  ;;  %v8828_v30 = vld [vmem:[#allocation2] sm:$0xff]  }
 0x16a   :  { %7640 = vmatprep.subr.bf16.mxu0 %v11304_v26  ;;  %7591 = vmatpush3.bf16.msra.mxu1 %v9524_v34 }
 0x16b   :  { %7592 = vmatprep.subr.bf16.mxu1 %v11304_v26  ;;  %961 = vmatprep.mubr.bf16.mxu0 %v8805_v39 }
 0x16d   :  { %7641 = vmatpush3.bf16.msra.mxu0 %v8782_v42 }
 0x16e   :  { %7642 = vmatprep.subr.bf16.mxu0 %v11304_v26  ;;  %7593 = vmatpush3.bf16.msra.mxu1 %v9531_v43 }
 0x16f   :  { %7614 = vmatprep.subr.bf16.mxu1 %v11304_v26 }
 0x170   :  { %693 = vmatmul.mubr.bf16.gmra.mxu1 %v8785_v46  ;;  %962 = vmatmul.mubr.bf16.gmra.mxu0 %v8807_v48 }
 0x171   :  { %7643 = vmatpush3.bf16.msra.mxu0 %v8786_v49  ;;  %700 = vmatprep.mubr.bf16.mxu1 %v8788_v50 }
 0x172   :  { %7644 = vmatprep.subr.bf16.mxu0 %v11304_v26  ;;  %969 = vmatprep.mubr.bf16.mxu0 %v8809_v51 }
 0x175   :  { %7645 = vmatpush3.bf16.msra.mxu0 %v8787_v58 }
 0x176   :  { %7646 = vmatprep.subr.bf16.mxu0 %v11304_v26 }
 0x178   :  { %701 = vmatmul.mubr.bf16.gmra.mxu1 %v8790_v45  ;;  %970 = vmatmul.mubr.bf16.gmra.mxu0 %v8811_v61 }
 0x179   :  { %7647 = vmatpush3.bf16.msra.mxu0 %v8791_v56  ;;  %708 = vmatprep.mubr.bf16.mxu1 %v8793_v62 }
 0x17a   :  { %7648 = vmatprep.subr.bf16.mxu0 %v11304_v26  ;;  %977 = vmatprep.mubr.bf16.mxu0 %v8813_v59 }
 0x17d   :  { %7649 = vmatpush3.bf16.msra.mxu0 %v8792_v0 }
 0x17e   :  { %7650 = vmatprep.subr.bf16.mxu0 %v11304_v26 }
 0x180   :  { %709 = vmatmul.mubr.bf16.gmra.mxu1 %v8795_v57  ;;  %978 = vmatmul.mubr.bf16.gmra.mxu0 %v8815_v40 }
 0x181   :  { %7651 = vmatpush3.bf16.msra.mxu0 %v8796_v4  ;;  %716 = vmatprep.mubr.bf16.mxu1 %v6218_v54 }
 0x182   :  { %7652 = vmatprep.subr.bf16.mxu0 %v11304_v26  ;;  %985 = vmatprep.mubr.bf16.mxu0 %v6256_v5 }
 0x185   :  { %7653 = vmatpush3.bf16.msra.mxu0 %v8797_v6 }
 0x186   :  { %6828 = vmatprep.subr.bf16.mxu0 %v9422_v19 }
 0x188   :  { %717 = vmatmul.mubr.bf16.gmra.mxu1 %v6217_v36  ;;  %986 = vmatmul.mubr.bf16.gmra.mxu0 %v6255_v8 }
 0x189   :  { %7594 = vmatprep.mubr.msk.bf16.mxu1 %vm9191_vm3, %v11304_v26  ;;  %7654 = vmatprep.mubr.msk.bf16.mxu0 %vm9191_vm3, %v11304_v26 }
 0x190   :  { %7595 = vmatmul.mubr.msk.bf16.vlgmr.msra.gmra.mxu1 %vm636_vm4, %v8800_v52 }
 0x191   :  { %7615 = vmatpush3.bf16.msra.mxu1 %v9524_v34  ;;  %7598 = vmatprep.mubr.msk.bf16.mxu1 %vm9191_vm3, %v11304_v26 }
 0x192   :  { %7616 = vmatprep.subr.bf16.mxu1 %v11304_v26 }
 0x195   :  { %7617 = vmatpush3.bf16.msra.mxu1 %v9531_v43 }
 0x196   :  { %7674 = vmatprep.subr.bf16.mxu1 %v11304_v26 }
 0x198   :  { %7599 = vmatmul.mubr.msk.bf16.gmra.mxu1 %vm636_vm4, %v8801_v9 }
 0x199   :  { %7602 = vmatprep.mubr.msk.bf16.mxu1 %vm9191_vm3, %v11304_v26 }
 0x1a0   :  { %7603 = vmatmul.mubr.msk.bf16.gmra.mxu1 %vm636_vm4, %v8802_v55 }
 0x1a1   :  { %7606 = vmatprep.mubr.msk.bf16.mxu1 %vm9191_vm3, %v11304_v26 }
 0x1a8   :  { %7607 = vmatmul.mubr.msk.bf16.gmra.mxu1 %vm636_vm4, %v8803_v12 }
 0x1a9   :  { %7610 = vmatprep.mubr.msk.bf16.mxu1 %vm9191_vm3, %v11304_v26 }
 0x1b0   :  { %7611 = vmatmul.mubr.msk.bf16.gmra.mxu1 %vm636_vm4, %v8804_v13 }
 0x1b1   :  { %7618 = vmatprep.mubr.msk.bf16.mxu1 %vm9191_vm3, %v11304_v26 }
 0x1b8   :  { %7619 = vmatmul.mubr.msk.bf16.vlgmr.msra.gmra.mxu1 %vm636_vm4, %v8808_v53 }
 0x1b9   :  { %7622 = vmatprep.mubr.msk.bf16.mxu1 %vm9191_vm3, %v11304_v26  ;;  %7675 = vmatpush3.bf16.msra.mxu1 %v8821_v31 }
 0x1ba   :  { %7676 = vmatprep.subr.bf16.mxu1 %v11304_v26 }
 0x1bd   :  { %7677 = vmatpush3.bf16.msra.mxu1 %v8822_v15 }
 0x1be   :  { %7678 = vmatprep.subr.bf16.mxu1 %v11304_v26 }
 0x1c0   :  { %7623 = vmatmul.mubr.msk.bf16.gmra.mxu1 %vm636_vm4, %v8812_v14 }
 0x1c1   :  { %7626 = vmatprep.mubr.msk.bf16.mxu1 %vm9191_vm3, %v11304_v26  ;;  %7679 = vmatpush3.bf16.msra.mxu1 %v8823_v16 }
 0x1c2   :  { %7680 = vmatprep.subr.bf16.mxu1 %v11304_v26 }
 0x1c5   :  { %7681 = vmatpush3.bf16.msra.mxu1 %v8824_v27 }
 0x1c6   :  { %7682 = vmatprep.subr.bf16.mxu1 %v11304_v26 }
 0x1c8   :  { %7627 = vmatmul.mubr.msk.bf16.gmra.mxu1 %vm636_vm4, %v8816_v18 }
 0x1c9   :  { %7630 = vmatprep.mubr.msk.bf16.mxu1 %vm9191_vm3, %v11304_v26  ;;  %7683 = vmatpush3.bf16.msra.mxu1 %v8825_v20 }
 0x1ca   :  { %7684 = vmatprep.subr.bf16.mxu1 %v11304_v26 }
 0x1cd   :  { %7685 = vmatpush3.bf16.msra.mxu1 %v8826_v23 }
 0x1ce   :  { %7686 = vmatprep.subr.bf16.mxu1 %v11304_v26 }
 0x1d0   :  { %7631 = vmatmul.mubr.msk.bf16.gmra.mxu1 %vm636_vm4, %v8817_v21 }
 0x1d1   :  { %7634 = vmatprep.mubr.msk.bf16.mxu1 %vm9191_vm3, %v11304_v26  ;;  %7687 = vmatpush3.bf16.msra.mxu1 %v8827_v25 }
 0x1d2   :  { %7688 = vmatprep.subr.bf16.mxu1 %v11304_v26 }
 0x1d5   :  { %7689 = vmatpush3.bf16.msra.mxu1 %v8828_v30 }
 0x1d6   :  { %7710 = vmatprep.subr.bf16.mxu1 %v11304_v26 }
 0x1d8   :  { %7635 = vmatmul.mubr.msk.bf16.gmra.mxu1 %vm636_vm4, %v8820_v29 }
 0x1d9   :  { %7690 = vmatprep.mubr.msk.bf16.mxu1 %vm9191_vm3, %v11304_v26 }
 0x228   :  { %v6712_v32 = vpop.f32.mrf.mxu1  ;;  %v6765_v33 = vpop.f32.mrf.mxu0 }
 0x22a   :  { %v6713_v37 = vpop.f32.mrf.mxu1  ;;  %v6766_v39 = vpop.f32.mrf.mxu0 }
 0x22b   :  { %v9656_v42 = vadd.f32 %v6766_v39, %v6765_v33 }
 0x22c   :  { %v6715_v46 = vpop.f32.mrf.mxu1  ;;  %v9658_v48 = vpop.f32.mrf.mxu0 }
 0x22e   :  { %v6716_v49 = vpop.f32.mrf.mxu1  ;;  %v9660_v50 = vpop.f32.mrf.mxu0 }
 0x230   :  { %v6718_v51 = vpop.f32.mrf.mxu1  ;;  %v6771_v58 = vpop.f32.mrf.mxu0 }
 0x232   :  { %v6719_v45 = vpop.f32.mrf.mxu1  ;;  %v6772_v61 = vpop.f32.mrf.mxu0 }
 0x233   :  { %v9662_v56 = vadd.f32 %v6772_v61, %v6771_v58  ;;  %v6714_v58 = vadd.f32 %v6713_v37, %v6712_v32  ;;  %v6717_v61 = vadd.f32 %v6716_v49, %v6715_v46 }
 0x234   :  { %v6721_v62 = vpop.f32.mrf.mxu1  ;;  %v9664_v59 = vpop.f32.mrf.mxu0 }
 0x236   :  { %v6722_v0 = vpop.f32.mrf.mxu1  ;;  %v9666_v2 = vpop.f32.mrf.mxu0 }
 0x238   :  { %v6724_v3 = vpop.f32.mrf.mxu1  ;;  %v6777_v57 = vpop.f32.mrf.mxu0 }
 0x23a   :  { %v6725_v40 = vpop.f32.mrf.mxu1  ;;  %v6778_v4 = vpop.f32.mrf.mxu0 }
 0x23b   :  { %v9668_v54 = vadd.f32 %v6778_v4, %v6777_v57 }
 0x23c   :  { %v6727_v5 = vpop.f32.mrf.mxu1  ;;  %v9670_v6 = vpop.f32.mrf.mxu0 }
 0x23e   :  { %v6728_v36 = vpop.f32.mrf.mxu1  ;;  %v9672_v8 = vpop.f32.mrf.mxu0 }
 0x240   :  { %v6730_v52 = vpop.f32.mrf.mxu1  ;;  %v6783_v9 = vpop.f32.mrf.mxu0 }
 0x242   :  { %v6731_v55 = vpop.f32.mrf.mxu1  ;;  %v6784_v12 = vpop.f32.mrf.mxu0 }
 0x243   :  { %v9674_v13 = vadd.f32 %v6784_v12, %v6783_v9 }
 0x244   :  { %v6733_v53 = vpop.f32.mrf.mxu1  ;;  %v9676_v31 = vpop.f32.mrf.mxu0 }
 0x246   :  { %v6734_v14 = vpop.f32.mrf.mxu1  ;;  %v9678_v15 = vpop.f32.mrf.mxu0 }
 0x248   :  { %v6736_v16 = vpop.f32.mrf.mxu1  ;;  %v6789_v18 = vpop.f32.mrf.mxu0 }
 0x24a   :  { %v6737_v27 = vpop.f32.mrf.mxu1  ;;  %v6790_v20 = vpop.f32.mrf.mxu0 }
 0x24b   :  { %v9680_v21 = vadd.f32 %v6790_v20, %v6789_v18  ;;  %v11312_v18 = vmov 0.0   ;;  %v6720_v20 = vadd.f32 %v6719_v45, %v6718_v51  ;;  %v6729_v51 = vadd.f32 %v6728_v36, %v6727_v5 }
 0x24c   :  { %v6739_v23 = vpop.f32.mrf.mxu1  ;;  %v6792_v25 = vpop.f32.mrf.mxu0 }
 0x24d   :  { %v6723_v23 = vadd.f32 %v6722_v0, %v6721_v62 }
 0x24e   :  { %v6740_v29 = vpop.f32.mrf.mxu1  ;;  %v6793_v30 = vpop.f32.mrf.mxu0 }
 0x250   :  { %v758_v33 = vpop.f32.mrf.mxu1 }
 0x251   :  { %v759_v4 = vadd.f32 %v6714_v58, %v758_v33  ;;  %v6732_v58 = vadd.f32 %v6731_v55, %v6730_v52  ;;  %v6770_v55 = vadd.f32 %v9660_v50, %v9658_v48  ;;  %v6776_v48 = vadd.f32 %v9666_v2, %v9664_v59 }
 0x252   :  { %v7596_v39 = vpop.f32.mrf.mxu1 }
 0x254   :  { %v761_v57 = vpop.f32.mrf.mxu1 }
 0x255   :  { %v762_v9 = vadd.f32 %v6717_v61, %v761_v57  ;;  %v6735_v61 = vadd.f32 %v6734_v14, %v6733_v53 }
 0x256   :  { %v7597_v12 = vpop.f32.mrf.mxu1 }
 0x257   :  { %v796_v26 = vpack.c.bf16 %v762_v9, %v759_v4 }
 0x258   :  { %v766_v24 = vpop.f32.mrf.mxu1 }
 0x259   :  { %7691 = vmatmul.mubr.bf16.vlgmr.msra.gmra.mxu1 %v796_v26  ;;  %v767_v32 = vadd.f32 %v6720_v20, %v766_v24 }
 0x25a   :  { %7711 = vmatpush3.bf16.msra.mxu1 %v9524_v34  ;;  %v7600_v17 = vpop.f32.mrf.mxu1  ;;  %7694 = vmatprep.mubr.msk.bf16.mxu1 %vm9191_vm3, %v11312_v18 }
 0x25b   :  { %7712 = vmatprep.subr.bf16.mxu1 %v11312_v18  ;;  %v6726_v17 = vadd.f32 %v6725_v40, %v6724_v3  ;;  %v6738_v40 = vadd.f32 %v6737_v27, %v6736_v16  ;;  %v8829_v27 = vld [vmem:[%s11292_s3 + $0xe0] ss:$12 sps:$4 sm:$0xff]  }
 0x25c   :  { %v769_v25 = vpop.f32.mrf.mxu1 }
 0x25d   :  { %v770_v37 = vadd.f32 %v6723_v23, %v769_v25 }
 0x25e   :  { %7713 = vmatpush3.bf16.msra.mxu1 %v9531_v43  ;;  %v7601_v46 = vpop.f32.mrf.mxu1 }
 0x25f   :  { %v797_v49 = vpack.c.bf16 %v770_v37, %v767_v32  ;;  %6894 = vmatprep.subr.bf16.mxu1 %v9422_v19 }
 0x260   :  { %v774_v26 = vpop.f32.mrf.mxu1 }
 0x261   :  { %7695 = vmatmul.mubr.bf16.gmra.mxu1 %v797_v49  ;;  %v775_v62 = vadd.f32 %v6726_v17, %v774_v26 }
 0x262   :  { %v7604_v29 = vpop.f32.mrf.mxu1  ;;  %7698 = vmatprep.mubr.msk.bf16.mxu1 %vm9191_vm3, %v11312_v18 }
 0x264   :  { %v777_v45 = vpop.f32.mrf.mxu1 }
 0x265   :  { %v778_v0 = vadd.f32 %v6729_v51, %v777_v45  ;;  %v8833_v51 = vld [vmem:[%s11292_s3 + $0xf8] ss:$12 sps:$4 sm:$0xff]  }
 0x266   :  { %v7605_v30 = vpop.f32.mrf.mxu1 }
 0x267   :  { %v798_v24 = vpack.c.bf16 %v778_v0, %v775_v62  ;;  %v6782_v62 = vadd.f32 %v9672_v8, %v9670_v6 }
 0x268   :  { %v782_v33 = vpop.f32.mrf.mxu1 }
 0x269   :  { %7699 = vmatmul.mubr.bf16.gmra.mxu1 %v798_v24  ;;  %v783_v4 = vadd.f32 %v6732_v58, %v782_v33  ;;  %v8837_v33 = vld [vmem:[%s11292_s3 + $0x110] ss:$12 sps:$4 sm:$0xff]   ;;  %v6788_v58 = vadd.f32 %v9678_v15, %v9676_v31 }
 0x26a   :  { %v7608_v39 = vpop.f32.mrf.mxu1  ;;  %7702 = vmatprep.mubr.msk.bf16.mxu1 %vm9191_vm3, %v11312_v18 }
 0x26c   :  { %v785_v57 = vpop.f32.mrf.mxu1 }
 0x26d   :  { %v786_v9 = vadd.f32 %v6735_v61, %v785_v57 }
 0x26e   :  { %v7609_v12 = vpop.f32.mrf.mxu1 }
 0x26f   :  { %v799_v20 = vpack.c.bf16 %v786_v9, %v783_v4  ;;  %v8841_v9 = vld [vmem:[%s11292_s3 + $0x128] ss:$12 sps:$4 sm:$0xff]  }
 0x270   :  { %v790_v3 = vpop.f32.mrf.mxu1 }
 0x271   :  { %7703 = vmatmul.mubr.bf16.gmra.mxu1 %v799_v20  ;;  %v791_v36 = vadd.f32 %v6738_v40, %v790_v3  ;;  %v11313_v3 = vld [vmem:[#allocation13_spill] sm:$0xff] }
 0x272   :  { %v7612_v5 = vpop.f32.mrf.mxu1  ;;  %7706 = vmatprep.mubr.msk.bf16.mxu1 %vm9191_vm3, %v11312_v18 }
 0x273   :  { %v800_v32 = vpack.c.bf16 %v791_v36, %v791_v36  ;;  %v8847_v5 = vld [vmem:[%s11292_s3 + $0x140] ss:$0 sps:$4 sm:$0xff]   ;;  %v11314_v36 = vld [vmem:[#allocation14_spill] sm:$0xff] }
 0x274   :  { %v793_v23 = vpop.f32.mrf.mxu1 }
 0x275   :  { %v8832_v23 = vld [vmem:[%s11292_s3 + $0xdc] ss:$12 sps:$4 sm:$0xff]  }
 0x276   :  { %v7613_v25 = vpop.f32.mrf.mxu1 }
 0x278   :  { %v1027_v37 = vpop.f32.mrf.mxu1 }
 0x279   :  { %7707 = vmatmul.mubr.bf16.gmra.mxu1 %v800_v32  ;;  %v1028_v14 = vadd.f32 %v9656_v42, %v1027_v37  ;;  %v8830_v32 = vld [vmem:[%s11292_s3 + $0xd8] ss:$12 sps:$4 sm:$0xff]   ;;  %v8834_v37 = vld [vmem:[%s11292_s3 + $0xf4] ss:$12 sps:$4 sm:$0xff]  }
 0x27a   :  { %v7620_v52 = vpop.f32.mrf.mxu1  ;;  %7714 = vmatprep.mubr.msk.bf16.mxu1 %vm9191_vm3, %v11312_v18 }
 0x27b   :  { %v8836_v52 = vld [vmem:[%s11292_s3 + $0xf0] ss:$12 sps:$4 sm:$0xff]  }
 0x27c   :  { %v1030_v53 = vpop.f32.mrf.mxu1 }
 0x27d   :  { %v1031_v16 = vadd.f32 %v6770_v55, %v1030_v53  ;;  %v8838_v55 = vld [vmem:[%s11292_s3 + $0x10c] ss:$12 sps:$4 sm:$0xff]   ;;  %v8840_v53 = vld [vmem:[%s11292_s3 + $0x108] ss:$12 sps:$4 sm:$0xff]  }
 0x27e   :  { %v7621_v46 = vpop.f32.mrf.mxu1 }
 0x27f   :  { %v1065_v49 = vpack.c.bf16 %v1031_v16, %v1028_v14  ;;  %v8842_v14 = vld [vmem:[%s11292_s3 + $0x124] ss:$12 sps:$4 sm:$0xff]   ;;  %v6295_v16 = vld [vmem:[%s11292_s3 + $0x138] sm:$0xff] }
 0x280   :  { %v1035_v26 = vpop.f32.mrf.mxu1  ;;  %v6310_v46 = vcombine.high %v6295_v16, %v6295_v16 }
 0x281   :  { %7655 = vmatmul.mubr.bf16.vlgmr.msra.gmra.mxu0 %v1065_v49  ;;  %7715 = vmatmul.mubr.msk.bf16.vlgmr.msra.gmra.mxu1 %vm636_vm4, %v8829_v27  ;;  %v1036_v50 = vadd.f32 %v9662_v56, %v1035_v26  ;;  %v8844_v27 = vld [vmem:[%s11292_s3 + $0x120] ss:$12 sps:$4 sm:$0xff]   ;;  %v6309_v49 = vcombine.low %v6295_v16, %v6295_v16  ;;  %v8848_v26 = vld [vmem:[#allocation2 + $0xb8] sm:$0xff]  }
 0x282   :  { %6829 = vmatpush3.bf16.msra.mxu0 %v9425_v22  ;;  %6895 = vmatpush3.bf16.msra.mxu1 %v9425_v22  ;;  %v7624_v29 = vpop.f32.mrf.mxu1 }
 0x283   :  { %6830 = vmatprep.subr.bf16.mxu0 %v9428_v28  ;;  %6896 = vmatprep.subr.bf16.mxu1 %v9428_v28  ;;  %v8849_v29 = vld [vmem:[#allocation2 + $0xb0] sm:$0xff]  }
 0x284   :  { %v1038_v42 = vpop.f32.mrf.mxu1  ;;  %7658 = vmatprep.mubr.msk.bf16.mxu0 %vm9191_vm3, %v11312_v18  ;;  %7718 = vmatprep.mubr.msk.bf16.mxu1 %vm9191_vm3, %v11312_v18 }
 0x285   :  { %v1039_v17 = vadd.f32 %v6776_v48, %v1038_v42  ;;  %v8850_v48 = vld [vmem:[#allocation2 + $0xa8] sm:$0xff]   ;;  %v8851_v42 = vld [vmem:[#allocation2 + $0xa0] sm:$0xff]  }
 0x286   :  { %6831 = vmatpush3.bf16.msra.mxu0 %v9439_v38  ;;  %6897 = vmatpush3.bf16.msra.mxu1 %v9439_v38  ;;  %v7625_v59 = vpop.f32.mrf.mxu1 }
 0x287   :  { %v1066_v2 = vpack.c.bf16 %v1039_v17, %v1036_v50  ;;  %6832 = vmatprep.subr.bf16.mxu0 %v9442_v41  ;;  %6898 = vmatprep.subr.bf16.mxu1 %v9442_v41  ;;  %v8852_v50 = vld [vmem:[#allocation2 + $0x98] sm:$0xff]   ;;  %v8853_v17 = vld [vmem:[#allocation2 + $0x90] sm:$0xff]   ;;  %v8855_v59 = vld [vmem:[#allocation2 + $0x80] sm:$0xff]  }
 0x288   :  { %v1043_v45 = vpop.f32.mrf.mxu1 }
 0x289   :  { %7659 = vmatmul.mubr.bf16.gmra.mxu0 %v1066_v2  ;;  %7719 = vmatmul.mubr.msk.bf16.gmra.mxu1 %vm636_vm4, %v8833_v51  ;;  %v1044_v30 = vadd.f32 %v9668_v54, %v1043_v45  ;;  %v8854_v51 = vld [vmem:[#allocation2 + $0x88] sm:$0xff]   ;;  %v8856_v2 = vld [vmem:[%s11292_s3 + $0x144] ss:$12 sps:$4 sm:$0xff]  }
 0x28a   :  { %6833 = vmatpush3.bf16.msra.mxu0 %v9451_v47  ;;  %6899 = vmatpush3.bf16.msra.mxu1 %v9451_v47  ;;  %v7628_v56 = vpop.f32.mrf.mxu1  ;;  %v8858_v45 = vld [vmem:[%s11292_s3 + $0x148] ss:$12 sps:$4 sm:$0xff]  }
 0x28b   :  { %6834 = vmatprep.subr.bf16.mxu0 %v9454_v60  ;;  %6900 = vmatprep.subr.bf16.mxu1 %v9454_v60  ;;  %v8859_v56 = vld [vmem:[%s11292_s3 + $0x160] ss:$12 sps:$4 sm:$0xff]  }
 0x28c   :  { %v1046_v0 = vpop.f32.mrf.mxu1  ;;  %7662 = vmatprep.mubr.msk.bf16.mxu0 %vm9191_vm3, %v11312_v18  ;;  %7722 = vmatprep.mubr.msk.bf16.mxu1 %vm9191_vm3, %v11312_v18 }
 0x28d   :  { %v1047_v24 = vadd.f32 %v6782_v62, %v1046_v0  ;;  %v8861_v62 = vld [vmem:[%s11292_s3 + $0x15c] ss:$12 sps:$4 sm:$0xff]  }
 0x28e   :  { %6835 = vmatpush3.bf16.msra.mxu0 %v9464_v63  ;;  %6901 = vmatpush3.bf16.msra.mxu1 %v9464_v63  ;;  %v7629_v6 = vpop.f32.mrf.mxu1 }
 0x28f   :  { %v1067_v8 = vpack.c.bf16 %v1047_v24, %v1044_v30  ;;  %6836 = vmatprep.subr.bf16.mxu0 %v9468_v1  ;;  %6902 = vmatprep.subr.bf16.mxu1 %v9468_v1 }
 0x290   :  { %v1051_v39 = vpop.f32.mrf.mxu1 }
 0x291   :  { %7663 = vmatmul.mubr.bf16.gmra.mxu0 %v1067_v8  ;;  %7723 = vmatmul.mubr.msk.bf16.gmra.mxu1 %vm636_vm4, %v8837_v33  ;;  %v1052_v57 = vadd.f32 %v9674_v13, %v1051_v39  ;;  %v8863_v8 = vld [vmem:[%s11292_s3 + $0x178] ss:$12 sps:$4 sm:$0xff]  }
 0x292   :  { %6837 = vmatpush3.bf16.msra.mxu0 %v9398_v44  ;;  %6903 = vmatpush3.bf16.msra.mxu1 %v9398_v44  ;;  %v7632_v54 = vpop.f32.mrf.mxu1 }
 0x293   :  { %6838 = vmatprep.subr.bf16.mxu0 %v9480_v7  ;;  %6904 = vmatprep.subr.bf16.mxu1 %v9480_v7  ;;  %v8865_v54 = vld [vmem:[%s11292_s3 + $0x174] ss:$12 sps:$4 sm:$0xff]  }
 0x294   :  { %v1054_v61 = vpop.f32.mrf.mxu1  ;;  %7666 = vmatprep.mubr.msk.bf16.mxu0 %vm9191_vm3, %v11312_v18  ;;  %7726 = vmatprep.mubr.msk.bf16.mxu1 %vm9191_vm3, %v11312_v18 }
 0x295   :  { %v1055_v4 = vadd.f32 %v6788_v58, %v1054_v61 }
 0x296   :  { %6839 = vmatpush3.bf16.msra.mxu0 %v9490_v10  ;;  %6905 = vmatpush3.bf16.msra.mxu1 %v9490_v10  ;;  %v7633_v31 = vpop.f32.mrf.mxu1 }
 0x297   :  { %v1068_v15 = vpack.c.bf16 %v1055_v4, %v1052_v57  ;;  %6840 = vmatprep.subr.bf16.mxu0 %v9492_v11  ;;  %6906 = vmatprep.subr.bf16.mxu1 %v9492_v11  ;;  %v8869_v4 = vld [vmem:[%s11292_s3 + $0x190] ss:$12 sps:$4 sm:$0xff]   ;;  %v8867_v31 = vld [vmem:[%s11292_s3 + $0x18c] ss:$12 sps:$4 sm:$0xff]  }
 0x298   :  { %v1059_v12 = vpop.f32.mrf.mxu1 }
 0x299   :  { %7667 = vmatmul.mubr.bf16.gmra.mxu0 %v1068_v15  ;;  %7727 = vmatmul.mubr.msk.bf16.gmra.mxu1 %vm636_vm4, %v8841_v9  ;;  %v1060_v20 = vadd.f32 %v9680_v21, %v1059_v12 }
 0x29a   :  { %6841 = vmatpush3.bf16.msra.mxu0 %v9390_v35  ;;  %6907 = vmatpush3.bf16.msra.mxu1 %v9390_v35  ;;  %v7636_v13 = vpop.f32.mrf.mxu1 }
 0x29b   :  { %6842 = vmatprep.subr.bf16.mxu0 %v11313_v3  ;;  %6908 = vmatprep.subr.bf16.mxu1 %v11313_v3  ;;  %v1069_v25 = vpack.c.bf16 %v1060_v20, %v1060_v20 }
 0x29c   :  { %v1062_v40 = vpop.f32.mrf.mxu1  ;;  %7670 = vmatprep.mubr.msk.bf16.mxu0 %vm9191_vm3, %v11312_v18  ;;  %7730 = vmatprep.mubr.msk.bf16.mxu1 %vm9191_vm3, %v11312_v18 }
 0x29e   :  { %6843 = vmatpush3.bf16.msra.mxu0 %v11314_v36  ;;  %6909 = vmatpush3.bf16.msra.mxu1 %v11314_v36  ;;  %v7637_v21 = vpop.f32.mrf.mxu1 }
 0x29f   :  { %7734 = vmatprep.subr.bf16.mxu0 %v11312_v18  ;;  %7794 = vmatprep.subr.bf16.mxu1 %v11312_v18 }
 0x2a1   :  { %7671 = vmatmul.mubr.bf16.gmra.mxu0 %v1069_v25  ;;  %7731 = vmatmul.mubr.msk.bf16.gmra.mxu1 %vm636_vm4, %v8847_v5  ;;  %v6341_v5 = vld [vmem:[%s11292_s3 + $0x1a4] sm:$0xff] }
 0x2a2   :  { %1463 = vmatprep.mubr.bf16.mxu0 %v8832_v23  ;;  %1862 = vmatprep.mubr.bf16.mxu1 %v8858_v45  ;;  %v6356_v21 = vcombine.high %v6341_v5, %v6341_v5  ;;  %v6355_v25 = vcombine.low %v6341_v5, %v6341_v5 }
 0x2a9   :  { %1464 = vmatmul.mubr.bf16.vlgmr.msra.gmra.mxu0 %v8830_v32  ;;  %1863 = vmatmul.mubr.bf16.vlgmr.msra.gmra.mxu1 %v8856_v2 }
 0x2aa   :  { %1471 = vmatprep.mubr.bf16.mxu0 %v8834_v37  ;;  %7735 = vmatpush3.bf16.msra.mxu0 %v8848_v26 }
 0x2ab   :  { %7736 = vmatprep.subr.bf16.mxu0 %v11312_v18  ;;  %1870 = vmatprep.mubr.bf16.mxu1 %v8859_v56 }
 0x2ae   :  { %7737 = vmatpush3.bf16.msra.mxu0 %v8849_v29 }
 0x2af   :  { %7738 = vmatprep.subr.bf16.mxu0 %v11312_v18 }
 0x2b1   :  { %1472 = vmatmul.mubr.bf16.gmra.mxu0 %v8836_v52  ;;  %1871 = vmatmul.mubr.bf16.gmra.mxu1 %v8861_v62 }
 0x2b2   :  { %1479 = vmatprep.mubr.bf16.mxu0 %v8838_v55  ;;  %7739 = vmatpush3.bf16.msra.mxu0 %v8850_v48 }
 0x2b3   :  { %7740 = vmatprep.subr.bf16.mxu0 %v11312_v18  ;;  %1878 = vmatprep.mubr.bf16.mxu1 %v8863_v8 }
 0x2b6   :  { %7741 = vmatpush3.bf16.msra.mxu0 %v8851_v42 }
 0x2b7   :  { %7742 = vmatprep.subr.bf16.mxu0 %v11312_v18 }
 0x2b9   :  { %1480 = vmatmul.mubr.bf16.gmra.mxu0 %v8840_v53  ;;  %1879 = vmatmul.mubr.bf16.gmra.mxu1 %v8865_v54 }
 0x2ba   :  { %1487 = vmatprep.mubr.bf16.mxu0 %v8842_v14  ;;  %7743 = vmatpush3.bf16.msra.mxu0 %v8852_v50 }
 0x2bb   :  { %7744 = vmatprep.subr.bf16.mxu0 %v11312_v18  ;;  %1886 = vmatprep.mubr.bf16.mxu1 %v8869_v4 }
 0x2be   :  { %7745 = vmatpush3.bf16.msra.mxu0 %v8853_v17 }
 0x2bf   :  { %7746 = vmatprep.subr.bf16.mxu0 %v11312_v18 }
 0x2c1   :  { %1488 = vmatmul.mubr.bf16.gmra.mxu0 %v8844_v27  ;;  %1887 = vmatmul.mubr.bf16.gmra.mxu1 %v8867_v31 }
 0x2c2   :  { %1495 = vmatprep.mubr.bf16.mxu0 %v6310_v46  ;;  %7747 = vmatpush3.bf16.msra.mxu0 %v8854_v51 }
 0x2c3   :  { %7748 = vmatprep.subr.bf16.mxu0 %v11312_v18  ;;  %1894 = vmatprep.mubr.bf16.mxu1 %v6356_v21 }
 0x2c6   :  { %7749 = vmatpush3.bf16.msra.mxu0 %v8855_v59 }
 0x2c7   :  { %7770 = vmatprep.subr.bf16.mxu0 %v11312_v18 }
 0x2c9   :  { %1496 = vmatmul.mubr.bf16.gmra.mxu0 %v6309_v49  ;;  %1895 = vmatmul.mubr.bf16.gmra.mxu1 %v6355_v25 }
 0x2ca   :  { %7750 = vmatprep.mubr.msk.bf16.mxu0 %vm9191_vm3, %v11312_v18  ;;  %7810 = vmatprep.mubr.msk.bf16.mxu1 %vm9191_vm3, %v11312_v18 }
 0x319   :  { %v1289_v0 = vpop.f32.mrf.mxu1 }
 0x31b   :  { %v7692_v30 = vpop.f32.mrf.mxu1 }
 0x31d   :  { %v1292_v24 = vpop.f32.mrf.mxu1 }
 0x31f   :  { %v7693_v33 = vpop.f32.mrf.mxu1 }
 0x321   :  { %v1297_v6 = vpop.f32.mrf.mxu1 }
 0x323   :  { %v7696_v39 = vpop.f32.mrf.mxu1 }
 0x325   :  { %v1300_v58 = vpop.f32.mrf.mxu1 }
 0x327   :  { %v7697_v61 = vpop.f32.mrf.mxu1 }
 0x329   :  { %v1305_v57 = vpop.f32.mrf.mxu1 }
 0x32b   :  { %v7700_v9 = vpop.f32.mrf.mxu1 }
 0x32d   :  { %v1308_v15 = vpop.f32.mrf.mxu1 }
 0x32f   :  { %v7701_v12 = vpop.f32.mrf.mxu1 }
 0x331   :  { %v1313_v13 = vpop.f32.mrf.mxu1 }
 0x333   :  { %v7704_v20 = vpop.f32.mrf.mxu1 }
 0x335   :  { %v1316_v40 = vpop.f32.mrf.mxu1 }
 0x337   :  { %v7705_v23 = vpop.f32.mrf.mxu1 }
 0x339   :  { %v1321_v32 = vpop.f32.mrf.mxu1 }
 0x33b   :  { %v7708_v37 = vpop.f32.mrf.mxu1 }
 0x33d   :  { %v1324_v52 = vpop.f32.mrf.mxu1 }
 0x33f   :  { %v7709_v55 = vpop.f32.mrf.mxu1 }
 0x341   :  { %v1169_v53 = vpop.f32.mrf.mxu0  ;;  %v1537_v14 = vpop.f32.mrf.mxu1 }
 0x342   :  { %v9843_v16 = vadd.f32 %v1289_v0, %v1169_v53 }
 0x343   :  { %v7656_v27 = vpop.f32.mrf.mxu0  ;;  %v7716_v46 = vpop.f32.mrf.mxu1 }
 0x345   :  { %v1172_v49 = vpop.f32.mrf.mxu0  ;;  %v1540_v26 = vpop.f32.mrf.mxu1 }
 0x346   :  { %v9845_v29 = vadd.f32 %v1292_v24, %v1172_v49 }
 0x347   :  { %v7657_v48 = vpop.f32.mrf.mxu0  ;;  %v7717_v42 = vpop.f32.mrf.mxu1 }
 0x349   :  { %v1177_v50 = vpop.f32.mrf.mxu0  ;;  %v1545_v17 = vpop.f32.mrf.mxu1 }
 0x34a   :  { %v9847_v51 = vadd.f32 %v1297_v6, %v1177_v50 }
 0x34b   :  { %v7660_v59 = vpop.f32.mrf.mxu0  ;;  %v7720_v2 = vpop.f32.mrf.mxu1 }
 0x34d   :  { %v1180_v45 = vpop.f32.mrf.mxu0  ;;  %v1548_v56 = vpop.f32.mrf.mxu1 }
 0x34e   :  { %v9849_v62 = vadd.f32 %v1300_v58, %v1180_v45 }
 0x34f   :  { %v7661_v0 = vpop.f32.mrf.mxu0  ;;  %v7721_v30 = vpop.f32.mrf.mxu1 }
 0x351   :  { %v1185_v33 = vpop.f32.mrf.mxu0  ;;  %v1553_v8 = vpop.f32.mrf.mxu1 }
 0x352   :  { %v9851_v39 = vadd.f32 %v1305_v57, %v1185_v33 }
 0x353   :  { %v7664_v24 = vpop.f32.mrf.mxu0  ;;  %v7724_v54 = vpop.f32.mrf.mxu1 }
 0x355   :  { %v1188_v61 = vpop.f32.mrf.mxu0  ;;  %v1556_v4 = vpop.f32.mrf.mxu1 }
 0x356   :  { %v9853_v9 = vadd.f32 %v1308_v15, %v1188_v61 }
 0x357   :  { %v7665_v6 = vpop.f32.mrf.mxu0  ;;  %v7725_v31 = vpop.f32.mrf.mxu1 }
 0x359   :  { %v1193_v12 = vpop.f32.mrf.mxu0  ;;  %v1561_v20 = vpop.f32.mrf.mxu1 }
 0x35a   :  { %v9855_v5 = vadd.f32 %v1313_v13, %v1193_v12 }
 0x35b   :  { %v7668_v58 = vpop.f32.mrf.mxu0  ;;  %v7728_v21 = vpop.f32.mrf.mxu1 }
 0x35d   :  { %v1196_v23 = vpop.f32.mrf.mxu0  ;;  %v1564_v25 = vpop.f32.mrf.mxu1 }
 0x35e   :  { %v9857_v37 = vadd.f32 %v1316_v40, %v1196_v23 }
 0x35f   :  { %v7669_v57 = vpop.f32.mrf.mxu0  ;;  %v7729_v52 = vpop.f32.mrf.mxu1 }
 0x361   :  { %v1201_v55 = vpop.f32.mrf.mxu0  ;;  %v1569_v53 = vpop.f32.mrf.mxu1 }
 0x362   :  { %v9859_v27 = vadd.f32 %v1321_v32, %v1201_v55 }
 0x363   :  { %v7672_v15 = vpop.f32.mrf.mxu0  ;;  %v7732_v46 = vpop.f32.mrf.mxu1 }
 0x365   :  { %v1204_v49 = vpop.f32.mrf.mxu0  ;;  %v1572_v48 = vpop.f32.mrf.mxu1 }
 0x367   :  { %v7673_v42 = vpop.f32.mrf.mxu0  ;;  %v7733_v50 = vpop.f32.mrf.mxu1 }
 0x369   :  { %v6844_v13 = vpop.f32.mrf.mxu0 }
 0x36b   :  { %v6845_v59 = vpop.f32.mrf.mxu0 }
 0x36c   :  { %v6846_v45 = vadd.f32 %v6845_v59, %v6844_v13 }
 0x36d   :  { %v6847_v2 = vpop.f32.mrf.mxu0 }
 0x36e   :  { %v1538_v33 = vadd.f32 %v6846_v45, %v1537_v14 }
 0x36f   :  { %v6848_v0 = vpop.f32.mrf.mxu0 }
 0x370   :  { %v6849_v30 = vadd.f32 %v6848_v0, %v6847_v2 }
 0x371   :  { %v6850_v40 = vpop.f32.mrf.mxu0 }
 0x372   :  { %v1541_v24 = vadd.f32 %v6849_v30, %v1540_v26 }
 0x373   :  { %v6851_v54 = vpop.f32.mrf.mxu0 }
 0x374   :  { %v1575_v61 = vpack.c.bf16 %v1541_v24, %v1538_v33  ;;  %v6852_v32 = vadd.f32 %v6851_v54, %v6850_v40 }
 0x375   :  { %v6853_v6 = vpop.f32.mrf.mxu0 }
 0x376   :  { %7751 = vmatmul.mubr.bf16.vlgmr.msra.gmra.mxu0 %v1575_v61  ;;  %v1546_v21 = vadd.f32 %v6852_v32, %v1545_v17  ;;  %v8871_v61 = vld [vmem:[%s11292_s3 + $0x194] ss:$12 sps:$4 sm:$0xff]   ;;  %v8875_v32 = vld [vmem:[#allocation2 + $0xf8] sm:$0xff]  }
 0x377   :  { %7771 = vmatpush3.bf16.msra.mxu0 %v9524_v34  ;;  %v6854_v31 = vpop.f32.mrf.mxu0  ;;  %7754 = vmatprep.mubr.msk.bf16.mxu0 %vm9191_vm3, %v11312_v18 }
 0x378   :  { %v6855_v12 = vadd.f32 %v6854_v31, %v6853_v6  ;;  %7772 = vmatprep.subr.bf16.mxu0 %v11312_v18  ;;  %v8874_v6 = vld [vmem:[%s11292_s3 + $0x1ac] ss:$0 sps:$4 sm:$0xff]   ;;  %7795 = vmatpush3.bf16.msra.mxu1 %v8875_v32  ;;  %v8876_v31 = vld [vmem:[#allocation2 + $0xf0] sm:$0xff]  }
 0x379   :  { %v6856_v58 = vpop.f32.mrf.mxu0  ;;  %7796 = vmatprep.subr.bf16.mxu1 %v11312_v18  ;;  %v8886_v32 = vld [vmem:[%s11292_s3 + $0x1c8] ss:$12 sps:$4 sm:$0xff]  }
 0x37a   :  { %v1549_v23 = vadd.f32 %v6855_v12, %v1548_v56  ;;  %v8877_v12 = vld [vmem:[#allocation2 + $0xe8] sm:$0xff]  }
 0x37b   :  { %7773 = vmatpush3.bf16.msra.mxu0 %v9531_v43  ;;  %v6857_v14 = vpop.f32.mrf.mxu0 }
 0x37c   :  { %6960 = vmatprep.subr.bf16.mxu0 %v9422_v19  ;;  %v1576_v26 = vpack.c.bf16 %v1549_v23, %v1546_v21  ;;  %v6858_v52 = vadd.f32 %v6857_v14, %v6856_v58  ;;  %7797 = vmatpush3.bf16.msra.mxu1 %v8876_v31  ;;  %v8878_v58 = vld [vmem:[#allocation2 + $0xe0] sm:$0xff]   ;;  %v6910_v21 = vpop.f32.mrf.mxu1  ;;  %v8879_v23 = vld [vmem:[#allocation2 + $0xd8] sm:$0xff]  }
 0x37d   :  { %v6859_v57 = vpop.f32.mrf.mxu0  ;;  %7798 = vmatprep.subr.bf16.mxu1 %v11312_v18  ;;  %v8892_v31 = vld [vmem:[%s11292_s3 + $0x1e4] ss:$12 sps:$4 sm:$0xff]  }
 0x37e   :  { %7755 = vmatmul.mubr.bf16.gmra.mxu0 %v1576_v26  ;;  %v1554_v49 = vadd.f32 %v6858_v52, %v1553_v8  ;;  %v6911_v14 = vpop.f32.mrf.mxu1  ;;  %v8880_v52 = vld [vmem:[#allocation2 + $0xd0] sm:$0xff]  }
 0x37f   :  { %v6860_v55 = vpop.f32.mrf.mxu0  ;;  %7758 = vmatprep.mubr.msk.bf16.mxu0 %vm9191_vm3, %v11312_v18  ;;  %v9923_v26 = vadd.f32 %v6911_v14, %v6910_v21  ;;  %v8894_v21 = vld [vmem:[%s11292_s3 + $0x1f8] ss:$12 sps:$4 sm:$0xff]  }
 0x380   :  { %v6861_v15 = vadd.f32 %v6860_v55, %v6859_v57  ;;  %7799 = vmatpush3.bf16.msra.mxu1 %v8877_v12  ;;  %v9925_v57 = vpop.f32.mrf.mxu1  ;;  %v8890_v12 = vld [vmem:[%s11292_s3 + $0x1e0] ss:$12 sps:$4 sm:$0xff]  }
 0x381   :  { %v6862_v46 = vpop.f32.mrf.mxu0  ;;  %7800 = vmatprep.subr.bf16.mxu1 %v11312_v18 }
 0x382   :  { %v1557_v48 = vadd.f32 %v6861_v15, %v1556_v4  ;;  %v9928_v55 = vpop.f32.mrf.mxu1 }
 0x383   :  { %v6863_v42 = vpop.f32.mrf.mxu0 }
 0x384   :  { %v1577_v17 = vpack.c.bf16 %v1557_v48, %v1554_v49  ;;  %v6864_v50 = vadd.f32 %v6863_v42, %v6862_v46  ;;  %7801 = vmatpush3.bf16.msra.mxu1 %v8878_v58  ;;  %v6916_v15 = vpop.f32.mrf.mxu1  ;;  %v8881_v46 = vld [vmem:[#allocation2 + $0xc8] sm:$0xff]  }
 0x385   :  { %v6865_v56 = vpop.f32.mrf.mxu0  ;;  %7802 = vmatprep.subr.bf16.mxu1 %v11312_v18  ;;  %v8896_v58 = vld [vmem:[%s11292_s3 + $0x1fc] ss:$12 sps:$4 sm:$0xff]  }
 0x386   :  { %7759 = vmatmul.mubr.bf16.gmra.mxu0 %v1577_v17  ;;  %v1562_v45 = vadd.f32 %v6864_v50, %v1561_v20  ;;  %v8862_v20 = vld [vmem:[%s11292_s3 + $0x14c] ss:$12 sps:$4 sm:$0xff]   ;;  %v6917_v49 = vpop.f32.mrf.mxu1  ;;  %v8882_v17 = vld [vmem:[#allocation2 + $0xc0] sm:$0xff]  }
 0x387   :  { %v6866_v13 = vpop.f32.mrf.mxu0  ;;  %7762 = vmatprep.mubr.msk.bf16.mxu0 %vm9191_vm3, %v11312_v18  ;;  %v9931_v48 = vadd.f32 %v6917_v49, %v6916_v15 }
 0x388   :  { %v6867_v59 = vadd.f32 %v6866_v13, %v6865_v56  ;;  %7803 = vmatpush3.bf16.msra.mxu1 %v8879_v23  ;;  %v9933_v42 = vpop.f32.mrf.mxu1  ;;  %v6387_v23 = vld [vmem:[%s11292_s3 + $0x210] sm:$0xff] }
 0x389   :  { %v6868_v2 = vpop.f32.mrf.mxu0  ;;  %7804 = vmatprep.subr.bf16.mxu1 %v11312_v18  ;;  %v6402_v14 = vcombine.high %v6387_v23, %v6387_v23 }
 0x38a   :  { %v1565_v0 = vadd.f32 %v6867_v59, %v1564_v25  ;;  %v8866_v25 = vld [vmem:[%s11292_s3 + $0x164] ss:$12 sps:$4 sm:$0xff]   ;;  %v9936_v56 = vpop.f32.mrf.mxu1 }
 0x38b   :  { %v6869_v30 = vpop.f32.mrf.mxu0 }
 0x38c   :  { %v6870_v40 = vadd.f32 %v6869_v30, %v6868_v2  ;;  %v1578_v33 = vpack.c.bf16 %v1565_v0, %v1562_v45  ;;  %7805 = vmatpush3.bf16.msra.mxu1 %v8880_v52  ;;  %v6922_v50 = vpop.f32.mrf.mxu1  ;;  %v6401_v52 = vcombine.low %v6387_v23, %v6387_v23 }
 0x38d   :  { %v6871_v24 = vpop.f32.mrf.mxu0  ;;  %7806 = vmatprep.subr.bf16.mxu1 %v11312_v18 }
 0x38e   :  { %7763 = vmatmul.mubr.bf16.gmra.mxu0 %v1578_v33  ;;  %v1570_v4 = vadd.f32 %v6870_v40, %v1569_v53  ;;  %v8870_v53 = vld [vmem:[%s11292_s3 + $0x17c] ss:$12 sps:$4 sm:$0xff]   ;;  %v6923_v13 = vpop.f32.mrf.mxu1 }
 0x38f   :  { %v6872_v8 = vpop.f32.mrf.mxu0  ;;  %7766 = vmatprep.mubr.msk.bf16.mxu0 %vm9191_vm3, %v11312_v18  ;;  %v9939_v59 = vadd.f32 %v6923_v13, %v6922_v50 }
 0x390   :  { %v1579_v54 = vpack.c.bf16 %v1570_v4, %v1570_v4  ;;  %7807 = vmatpush3.bf16.msra.mxu1 %v8881_v46  ;;  %v9941_v2 = vpop.f32.mrf.mxu1 }
 0x391   :  { %7808 = vmatprep.subr.bf16.mxu1 %v11312_v18 }
 0x392   :  { %v9943_v45 = vpop.f32.mrf.mxu1 }
 0x394   :  { %7809 = vmatpush3.bf16.msra.mxu1 %v8882_v17  ;;  %v6928_v0 = vpop.f32.mrf.mxu1 }
 0x395   :  { %7830 = vmatprep.subr.bf16.mxu1 %v11312_v18 }
 0x396   :  { %7767 = vmatmul.mubr.bf16.gmra.mxu0 %v1579_v54  ;;  %v6929_v30 = vpop.f32.mrf.mxu1 }
 0x397   :  { %7774 = vmatprep.mubr.msk.bf16.mxu0 %vm9191_vm3, %v11312_v18  ;;  %v9945_v40 = vadd.f32 %v6929_v30, %v6928_v0 }
 0x398   :  { %v9947_v33 = vpop.f32.mrf.mxu1 }
 0x39a   :  { %v9949_v24 = vpop.f32.mrf.mxu1 }
 0x39c   :  { %v6934_v8 = vpop.f32.mrf.mxu1 }
 0x39e   :  { %7775 = vmatmul.mubr.msk.bf16.vlgmr.msra.gmra.mxu0 %vm636_vm4, %v8862_v20  ;;  %v6935_v4 = vpop.f32.mrf.mxu1 }
 0x39f   :  { %6961 = vmatpush3.bf16.msra.mxu0 %v9425_v22  ;;  %7778 = vmatprep.mubr.msk.bf16.mxu0 %vm9191_vm3, %v11312_v18  ;;  %v9951_v54 = vadd.f32 %v6935_v4, %v6934_v8 }
 0x3a0   :  { %6962 = vmatprep.subr.bf16.mxu0 %v9428_v28  ;;  %v6937_v20 = vpop.f32.mrf.mxu1 }
 0x3a3   :  { %6963 = vmatpush3.bf16.msra.mxu0 %v9439_v38 }
 0x3a4   :  { %6964 = vmatprep.subr.bf16.mxu0 %v9442_v41 }
 0x3a6   :  { %7779 = vmatmul.mubr.msk.bf16.gmra.mxu0 %vm636_vm4, %v8866_v25  ;;  %v6938_v25 = vpop.f32.mrf.mxu1 }
 0x3a7   :  { %6965 = vmatpush3.bf16.msra.mxu0 %v9451_v47  ;;  %7782 = vmatprep.mubr.msk.bf16.mxu0 %vm9191_vm3, %v11312_v18 }
 0x3a8   :  { %6966 = vmatprep.subr.bf16.mxu0 %v9454_v60 }
 0x3ab   :  { %6967 = vmatpush3.bf16.msra.mxu0 %v9464_v63 }
 0x3ac   :  { %6968 = vmatprep.subr.bf16.mxu0 %v9468_v1 }
 0x3ae   :  { %7783 = vmatmul.mubr.msk.bf16.gmra.mxu0 %vm636_vm4, %v8870_v53  ;;  %v8885_v53 = vld [vmem:[%s11292_s3 + $0x1b4] ss:$12 sps:$4 sm:$0xff]  }
 0x3af   :  { %6969 = vmatpush3.bf16.msra.mxu0 %v9398_v44  ;;  %7786 = vmatprep.mubr.msk.bf16.mxu0 %vm9191_vm3, %v11312_v18 }
 0x3b0   :  { %6970 = vmatprep.subr.bf16.mxu0 %v9480_v7 }
 0x3b3   :  { %6971 = vmatpush3.bf16.msra.mxu0 %v9490_v10 }
 0x3b4   :  { %6972 = vmatprep.subr.bf16.mxu0 %v9492_v11 }
 0x3b6   :  { %7787 = vmatmul.mubr.msk.bf16.gmra.mxu0 %vm636_vm4, %v8871_v61  ;;  %v8883_v61 = vld [vmem:[%s11292_s3 + $0x1b0] ss:$12 sps:$4 sm:$0xff]  }
 0x3b7   :  { %6973 = vmatpush3.bf16.msra.mxu0 %v9390_v35  ;;  %7790 = vmatprep.mubr.msk.bf16.mxu0 %vm9191_vm3, %v11312_v18 }
 0x3b8   :  { %6974 = vmatprep.subr.bf16.mxu0 %v11313_v3 }
 0x3bb   :  { %6975 = vmatpush3.bf16.msra.mxu0 %v11314_v36 }
 0x3bc   :  { %7854 = vmatprep.subr.bf16.mxu0 %v11312_v18 }
 0x3be   :  { %7791 = vmatmul.mubr.msk.bf16.gmra.mxu0 %vm636_vm4, %v8874_v6  ;;  %v8888_v6 = vld [vmem:[%s11292_s3 + $0x1cc] ss:$12 sps:$4 sm:$0xff]  }
 0x3bf   :  { %2261 = vmatprep.mubr.bf16.mxu0 %v8885_v53 }
 0x3c6   :  { %2262 = vmatmul.mubr.bf16.vlgmr.msra.gmra.mxu0 %v8883_v61 }
 0x3c7   :  { %2269 = vmatprep.mubr.bf16.mxu0 %v8888_v6 }
 0x3ce   :  { %2270 = vmatmul.mubr.bf16.gmra.mxu0 %v8886_v32 }
 0x3cf   :  { %2277 = vmatprep.mubr.bf16.mxu0 %v8892_v31 }
 0x3d6   :  { %2278 = vmatmul.mubr.bf16.gmra.mxu0 %v8890_v12 }
 0x3d7   :  { %2285 = vmatprep.mubr.bf16.mxu0 %v8896_v58 }
 0x3de   :  { %2286 = vmatmul.mubr.bf16.gmra.mxu0 %v8894_v21 }
 0x3df   :  { %2293 = vmatprep.mubr.bf16.mxu0 %v6402_v14 }
 0x3e6   :  { %2294 = vmatmul.mubr.bf16.gmra.mxu0 %v6401_v52 }
 0x3e7   :  { %7870 = vmatprep.mubr.msk.bf16.mxu0 %vm9191_vm3, %v11312_v18 }
 0x436   :  { %v1679_v15 = vpop.f32.mrf.mxu0 }
 0x437   :  { %v9983_v46 = vadd.f32 %v1679_v15, %v9843_v16 }
 0x438   :  { %v7752_v49 = vpop.f32.mrf.mxu0 }
 0x43a   :  { %v1682_v17 = vpop.f32.mrf.mxu0 }
 0x43b   :  { %v9986_v50 = vadd.f32 %v1682_v17, %v9845_v29  ;;  %v6915_v17 = vadd.f32 %v9928_v55, %v9925_v57 }
 0x43c   :  { %v7753_v13 = vpop.f32.mrf.mxu0 }
 0x43e   :  { %v1687_v0 = vpop.f32.mrf.mxu0 }
 0x43f   :  { %v9989_v30 = vadd.f32 %v1687_v0, %v9847_v51 }
 0x440   :  { %v7756_v8 = vpop.f32.mrf.mxu0 }
 0x442   :  { %v1690_v4 = vpop.f32.mrf.mxu0 }
 0x443   :  { %v9992_v20 = vadd.f32 %v1690_v4, %v9849_v62 }
 0x444   :  { %v7757_v25 = vpop.f32.mrf.mxu0 }
 0x445   :  { %v6921_v25 = vadd.f32 %v9936_v56, %v9933_v42  ;;  %v6927_v42 = vadd.f32 %v9943_v45, %v9941_v2 }
 0x446   :  { %v1695_v53 = vpop.f32.mrf.mxu0 }
 0x447   :  { %v9995_v16 = vadd.f32 %v1695_v53, %v9851_v39 }
 0x448   :  { %v7760_v61 = vpop.f32.mrf.mxu0 }
 0x44a   :  { %v1698_v6 = vpop.f32.mrf.mxu0 }
 0x44b   :  { %v9998_v29 = vadd.f32 %v1698_v6, %v9853_v9 }
 0x44c   :  { %v7761_v32 = vpop.f32.mrf.mxu0 }
 0x44e   :  { %v1703_v31 = vpop.f32.mrf.mxu0 }
 0x44f   :  { %v10001_v51 = vadd.f32 %v1703_v31, %v9855_v5 }
 0x450   :  { %v7764_v12 = vpop.f32.mrf.mxu0 }
 0x452   :  { %v1706_v58 = vpop.f32.mrf.mxu0 }
 0x453   :  { %v10004_v62 = vadd.f32 %v1706_v58, %v9857_v37 }
 0x454   :  { %v7765_v21 = vpop.f32.mrf.mxu0 }
 0x456   :  { %v1711_v23 = vpop.f32.mrf.mxu0 }
 0x457   :  { %v10007_v39 = vadd.f32 %v1711_v23, %v9859_v27 }
 0x458   :  { %v7768_v14 = vpop.f32.mrf.mxu0 }
 0x459   :  { %v6933_v14 = vadd.f32 %v9949_v24, %v9947_v33  ;;  %v8893_v33 = vld [vmem:[%s11292_s3 + $0x1d0] ss:$12 sps:$4 sm:$0xff]   ;;  %v8897_v24 = vld [vmem:[%s11292_s3 + $0x1e8] ss:$12 sps:$4 sm:$0xff]  }
 0x45a   :  { %v1714_v52 = vpop.f32.mrf.mxu0 }
 0x45c   :  { %v7769_v15 = vpop.f32.mrf.mxu0 }
 0x45e   :  { %v1936_v9 = vpop.f32.mrf.mxu0 }
 0x45f   :  { %v1937_v13 = vadd.f32 %v9923_v26, %v1936_v9 }
 0x460   :  { %v7776_v49 = vpop.f32.mrf.mxu0 }
 0x462   :  { %v1939_v5 = vpop.f32.mrf.mxu0 }
 0x463   :  { %v1940_v0 = vadd.f32 %v6915_v17, %v1939_v5 }
 0x464   :  { %v7777_v8 = vpop.f32.mrf.mxu0 }
 0x465   :  { %v1974_v37 = vpack.c.bf16 %v1940_v0, %v1937_v13  ;;  %v8901_v8 = vld [vmem:[%s11292_s3 + $0x218] ss:$0 sps:$4 sm:$0xff]  }
 0x466   :  { %v1944_v4 = vpop.f32.mrf.mxu0 }
 0x467   :  { %7811 = vmatmul.mubr.bf16.vlgmr.msra.gmra.mxu1 %v1974_v37  ;;  %v1945_v55 = vadd.f32 %v9931_v48, %v1944_v4  ;;  %v8902_v37 = vld [vmem:[#allocation2 + $0x138] sm:$0xff]   ;;  %v8903_v4 = vld [vmem:[#allocation2 + $0x130] sm:$0xff]  }
 0x468   :  { %7831 = vmatpush3.bf16.msra.mxu1 %v9524_v34  ;;  %v7780_v27 = vpop.f32.mrf.mxu0  ;;  %7814 = vmatprep.mubr.msk.bf16.mxu1 %vm9191_vm3, %v11312_v18 }
 0x469   :  { %7832 = vmatprep.subr.bf16.mxu1 %v11312_v18  ;;  %7855 = vmatpush3.bf16.msra.mxu0 %v8902_v37  ;;  %v8904_v27 = vld [vmem:[#allocation2 + $0x128] sm:$0xff]   ;;  %v8913_v37 = vld [vmem:[%s11292_s3 + $0x234] ss:$12 sps:$4 sm:$0xff]  }
 0x46a   :  { %v1947_v57 = vpop.f32.mrf.mxu0  ;;  %7856 = vmatprep.subr.bf16.mxu0 %v11312_v18 }
 0x46b   :  { %v1948_v26 = vadd.f32 %v6921_v25, %v1947_v57  ;;  %v8905_v25 = vld [vmem:[#allocation2 + $0x120] sm:$0xff]  }
 0x46c   :  { %7833 = vmatpush3.bf16.msra.mxu1 %v9531_v43  ;;  %v7781_v53 = vpop.f32.mrf.mxu0 }
 0x46d   :  { %v1975_v61 = vpack.c.bf16 %v1948_v26, %v1945_v55  ;;  %7026 = vmatprep.subr.bf16.mxu1 %v9422_v19  ;;  %7857 = vmatpush3.bf16.msra.mxu0 %v8903_v4  ;;  %v8906_v55 = vld [vmem:[#allocation2 + $0x118] sm:$0xff]  }
 0x46e   :  { %v1952_v6 = vpop.f32.mrf.mxu0  ;;  %7858 = vmatprep.subr.bf16.mxu0 %v11312_v18  ;;  %v8919_v4 = vld [vmem:[%s11292_s3 + $0x250] ss:$12 sps:$4 sm:$0xff]  }
 0x46f   :  { %7815 = vmatmul.mubr.bf16.gmra.mxu1 %v1975_v61  ;;  %v1953_v31 = vadd.f32 %v9939_v59, %v1952_v6  ;;  %v8907_v6 = vld [vmem:[#allocation2 + $0x110] sm:$0xff]  }
 0x470   :  { %v7784_v32 = vpop.f32.mrf.mxu0  ;;  %7818 = vmatprep.mubr.msk.bf16.mxu1 %vm9191_vm3, %v11312_v18 }
 0x471   :  { %7859 = vmatpush3.bf16.msra.mxu0 %v8904_v27  ;;  %v8917_v27 = vld [vmem:[%s11292_s3 + $0x24c] ss:$12 sps:$4 sm:$0xff]  }
 0x472   :  { %v1955_v56 = vpop.f32.mrf.mxu0  ;;  %7860 = vmatprep.subr.bf16.mxu0 %v11312_v18 }
 0x473   :  { %v1956_v48 = vadd.f32 %v6927_v42, %v1955_v56  ;;  %v8908_v56 = vld [vmem:[#allocation2 + $0x108] sm:$0xff]  }
 0x474   :  { %v7785_v12 = vpop.f32.mrf.mxu0 }
 0x475   :  { %v1976_v58 = vpack.c.bf16 %v1956_v48, %v1953_v31  ;;  %7861 = vmatpush3.bf16.msra.mxu0 %v8905_v25  ;;  %v8923_v25 = vld [vmem:[%s11292_s3 + $0x268] ss:$12 sps:$4 sm:$0xff]  }
 0x476   :  { %v1960_v21 = vpop.f32.mrf.mxu0  ;;  %7862 = vmatprep.subr.bf16.mxu0 %v11312_v18 }
 0x477   :  { %7819 = vmatmul.mubr.bf16.gmra.mxu1 %v1976_v58  ;;  %v1961_v15 = vadd.f32 %v9945_v40, %v1960_v21  ;;  %v8889_v40 = vld [vmem:[%s11292_s3 + $0x1b8] ss:$12 sps:$4 sm:$0xff]  }
 0x478   :  { %v7788_v23 = vpop.f32.mrf.mxu0  ;;  %7822 = vmatprep.mubr.msk.bf16.mxu1 %vm9191_vm3, %v11312_v18  ;;  %v8909_v58 = vld [vmem:[#allocation2 + $0x100] sm:$0xff]  }
 0x479   :  { %7863 = vmatpush3.bf16.msra.mxu0 %v8906_v55  ;;  %v6433_v55 = vld [vmem:[%s11292_s3 + $0x27c] sm:$0xff] }
 0x47a   :  { %v1963_v52 = vpop.f32.mrf.mxu0  ;;  %7864 = vmatprep.subr.bf16.mxu0 %v11312_v18 }
 0x47b   :  { %v1964_v9 = vadd.f32 %v6933_v14, %v1963_v52 }
 0x47c   :  { %v7789_v2 = vpop.f32.mrf.mxu0 }
 0x47d   :  { %v1977_v45 = vpack.c.bf16 %v1964_v9, %v1961_v15  ;;  %7865 = vmatpush3.bf16.msra.mxu0 %v8907_v6  ;;  %v6447_v6 = vcombine.low %v6433_v55, %v6433_v55 }
 0x47e   :  { %v1968_v49 = vpop.f32.mrf.mxu0  ;;  %7866 = vmatprep.subr.bf16.mxu0 %v11312_v18 }
 0x47f   :  { %7823 = vmatmul.mubr.bf16.gmra.mxu1 %v1977_v45  ;;  %v1969_v17 = vadd.f32 %v9951_v54, %v1968_v49  ;;  %v8898_v54 = vld [vmem:[%s11292_s3 + $0x200] ss:$12 sps:$4 sm:$0xff]  }
 0x480   :  { %v7792_v59 = vpop.f32.mrf.mxu0  ;;  %7826 = vmatprep.mubr.msk.bf16.mxu1 %vm9191_vm3, %v11312_v18 }
 0x481   :  { %v1978_v0 = vpack.c.bf16 %v1969_v17, %v1969_v17  ;;  %7867 = vmatpush3.bf16.msra.mxu0 %v8908_v56 }
 0x482   :  { %v1971_v5 = vpop.f32.mrf.mxu0  ;;  %7868 = vmatprep.subr.bf16.mxu0 %v11312_v18 }
 0x484   :  { %v7793_v13 = vpop.f32.mrf.mxu0 }
 0x485   :  { %7869 = vmatpush3.bf16.msra.mxu0 %v8909_v58 }
 0x486   :  { %v6976_v57 = vpop.f32.mrf.mxu0  ;;  %7890 = vmatprep.subr.bf16.mxu0 %v11312_v18 }
 0x487   :  { %7827 = vmatmul.mubr.bf16.gmra.mxu1 %v1978_v0 }
 0x488   :  { %7834 = vmatprep.mubr.msk.bf16.mxu1 %vm9191_vm3, %v11312_v18  ;;  %v6977_v26 = vpop.f32.mrf.mxu0 }
 0x489   :  { %v10084_v53 = vadd.f32 %v6977_v26, %v6976_v57  ;;  %v8921_v57 = vld [vmem:[%s11292_s3 + $0x264] ss:$12 sps:$4 sm:$0xff]   ;;  %v6448_v26 = vcombine.high %v6433_v55, %v6433_v55 }
 0x48a   :  { %v10086_v61 = vpop.f32.mrf.mxu0 }
 0x48c   :  { %v10089_v32 = vpop.f32.mrf.mxu0 }
 0x48e   :  { %v6982_v42 = vpop.f32.mrf.mxu0 }
 0x48f   :  { %7835 = vmatmul.mubr.msk.bf16.vlgmr.msra.gmra.mxu1 %vm636_vm4, %v8889_v40 }
 0x490   :  { %7027 = vmatpush3.bf16.msra.mxu1 %v9425_v22  ;;  %7838 = vmatprep.mubr.msk.bf16.mxu1 %vm9191_vm3, %v11312_v18  ;;  %v6983_v31 = vpop.f32.mrf.mxu0 }
 0x491   :  { %7028 = vmatprep.subr.bf16.mxu1 %v9428_v28  ;;  %v10092_v48 = vadd.f32 %v6983_v31, %v6982_v42 }
 0x492   :  { %v10094_v12 = vpop.f32.mrf.mxu0 }
 0x494   :  { %7029 = vmatpush3.bf16.msra.mxu1 %v9439_v38  ;;  %v10097_v21 = vpop.f32.mrf.mxu0 }
 0x495   :  { %7030 = vmatprep.subr.bf16.mxu1 %v9442_v41 }
 0x496   :  { %v6988_v23 = vpop.f32.mrf.mxu0 }
 0x497   :  { %7839 = vmatmul.mubr.msk.bf16.gmra.mxu1 %vm636_vm4, %v8893_v33 }
 0x498   :  { %7031 = vmatpush3.bf16.msra.mxu1 %v9451_v47  ;;  %7842 = vmatprep.mubr.msk.bf16.mxu1 %vm9191_vm3, %v11312_v18  ;;  %v6989_v14 = vpop.f32.mrf.mxu0 }
 0x499   :  { %7032 = vmatprep.subr.bf16.mxu1 %v9454_v60  ;;  %v10100_v52 = vadd.f32 %v6989_v14, %v6988_v23 }
 0x49a   :  { %v10102_v15 = vpop.f32.mrf.mxu0 }
 0x49c   :  { %7033 = vmatpush3.bf16.msra.mxu1 %v9464_v63  ;;  %v10104_v9 = vpop.f32.mrf.mxu0 }
 0x49d   :  { %7034 = vmatprep.subr.bf16.mxu1 %v9468_v1 }
 0x49e   :  { %v6994_v2 = vpop.f32.mrf.mxu0 }
 0x49f   :  { %7843 = vmatmul.mubr.msk.bf16.gmra.mxu1 %vm636_vm4, %v8897_v24  ;;  %v8912_v24 = vld [vmem:[%s11292_s3 + $0x220] ss:$12 sps:$4 sm:$0xff]  }
 0x4a0   :  { %7035 = vmatpush3.bf16.msra.mxu1 %v9398_v44  ;;  %7846 = vmatprep.mubr.msk.bf16.mxu1 %vm9191_vm3, %v11312_v18  ;;  %v6995_v45 = vpop.f32.mrf.mxu0 }
 0x4a1   :  { %7036 = vmatprep.subr.bf16.mxu1 %v9480_v7  ;;  %v10106_v49 = vadd.f32 %v6995_v45, %v6994_v2 }
 0x4a2   :  { %v10108_v59 = vpop.f32.mrf.mxu0 }
 0x4a4   :  { %7037 = vmatpush3.bf16.msra.mxu1 %v9490_v10  ;;  %v10110_v17 = vpop.f32.mrf.mxu0 }
 0x4a5   :  { %7038 = vmatprep.subr.bf16.mxu1 %v9492_v11 }
 0x4a6   :  { %v7000_v5 = vpop.f32.mrf.mxu0 }
 0x4a7   :  { %7847 = vmatmul.mubr.msk.bf16.gmra.mxu1 %vm636_vm4, %v8898_v54  ;;  %v8910_v54 = vld [vmem:[%s11292_s3 + $0x21c] ss:$12 sps:$4 sm:$0xff]  }
 0x4a8   :  { %7039 = vmatpush3.bf16.msra.mxu1 %v9390_v35  ;;  %7850 = vmatprep.mubr.msk.bf16.mxu1 %vm9191_vm3, %v11312_v18  ;;  %v7001_v13 = vpop.f32.mrf.mxu0 }
 0x4a9   :  { %7040 = vmatprep.subr.bf16.mxu1 %v11313_v3  ;;  %v10112_v0 = vadd.f32 %v7001_v13, %v7000_v5 }
 0x4aa   :  { %v7003_v40 = vpop.f32.mrf.mxu0 }
 0x4ac   :  { %7041 = vmatpush3.bf16.msra.mxu1 %v11314_v36  ;;  %v7004_v33 = vpop.f32.mrf.mxu0 }
 0x4ad   :  { %7914 = vmatprep.subr.bf16.mxu1 %v11312_v18 }
 0x4af   :  { %7851 = vmatmul.mubr.msk.bf16.gmra.mxu1 %vm636_vm4, %v8901_v8  ;;  %v8915_v8 = vld [vmem:[%s11292_s3 + $0x238] ss:$12 sps:$4 sm:$0xff]  }
 0x4b0   :  { %2660 = vmatprep.mubr.bf16.mxu1 %v8912_v24 }
 0x4b7   :  { %2661 = vmatmul.mubr.bf16.vlgmr.msra.gmra.mxu1 %v8910_v54 }
 0x4b8   :  { %2668 = vmatprep.mubr.bf16.mxu1 %v8915_v8 }
 0x4bf   :  { %2669 = vmatmul.mubr.bf16.gmra.mxu1 %v8913_v37 }
 0x4c0   :  { %2676 = vmatprep.mubr.bf16.mxu1 %v8919_v4 }
 0x4c7   :  { %2677 = vmatmul.mubr.bf16.gmra.mxu1 %v8917_v27 }
 0x4c8   :  { %2684 = vmatprep.mubr.bf16.mxu1 %v8923_v25 }
 0x4cf   :  { %2685 = vmatmul.mubr.bf16.gmra.mxu1 %v8921_v57 }
 0x4d0   :  { %2692 = vmatprep.mubr.bf16.mxu1 %v6448_v26 }
 0x4d7   :  { %2693 = vmatmul.mubr.bf16.gmra.mxu1 %v6447_v6 }
 0x4d8   :  { %7930 = vmatprep.mubr.msk.bf16.mxu1 %vm9191_vm3, %v11312_v18 }
 0x527   :  { %v2078_v42 = vpop.f32.mrf.mxu1 }
 0x528   :  { %v10144_v56 = vadd.f32 %v2078_v42, %v9983_v46 }
 0x529   :  { %v7812_v31 = vpop.f32.mrf.mxu1 }
 0x52b   :  { %v2081_v58 = vpop.f32.mrf.mxu1 }
 0x52c   :  { %v10147_v23 = vadd.f32 %v2081_v58, %v9986_v50  ;;  %v6981_v58 = vadd.f32 %v10089_v32, %v10086_v61 }
 0x52d   :  { %v7813_v14 = vpop.f32.mrf.mxu1 }
 0x52f   :  { %v2086_v2 = vpop.f32.mrf.mxu1 }
 0x530   :  { %v10150_v45 = vadd.f32 %v2086_v2, %v9989_v30 }
 0x531   :  { %v7816_v5 = vpop.f32.mrf.mxu1 }
 0x533   :  { %v2089_v13 = vpop.f32.mrf.mxu1 }
 0x534   :  { %v10153_v40 = vadd.f32 %v2089_v13, %v9992_v20 }
 0x535   :  { %v7817_v33 = vpop.f32.mrf.mxu1 }
 0x536   :  { %v6987_v33 = vadd.f32 %v10097_v21, %v10094_v12  ;;  %v6993_v12 = vadd.f32 %v10104_v9, %v10102_v15 }
 0x537   :  { %v2094_v24 = vpop.f32.mrf.mxu1 }
 0x538   :  { %v10156_v46 = vadd.f32 %v2094_v24, %v9995_v16 }
 0x539   :  { %v7820_v54 = vpop.f32.mrf.mxu1 }
 0x53b   :  { %v2097_v8 = vpop.f32.mrf.mxu1 }
 0x53c   :  { %v10159_v50 = vadd.f32 %v2097_v8, %v9998_v29 }
 0x53d   :  { %v7821_v37 = vpop.f32.mrf.mxu1 }
 0x53f   :  { %v2102_v4 = vpop.f32.mrf.mxu1 }
 0x540   :  { %v10162_v30 = vadd.f32 %v2102_v4, %v10001_v51 }
 0x541   :  { %v7824_v27 = vpop.f32.mrf.mxu1 }
 0x543   :  { %v2105_v25 = vpop.f32.mrf.mxu1 }
 0x544   :  { %v10165_v20 = vadd.f32 %v2105_v25, %v10004_v62 }
 0x545   :  { %v7825_v57 = vpop.f32.mrf.mxu1 }
 0x547   :  { %v2110_v55 = vpop.f32.mrf.mxu1 }
 0x548   :  { %v10168_v16 = vadd.f32 %v2110_v55, %v10007_v39 }
 0x549   :  { %v7828_v26 = vpop.f32.mrf.mxu1 }
 0x54a   :  { %v6999_v26 = vadd.f32 %v10110_v17, %v10108_v59  ;;  %v8920_v59 = vld [vmem:[%s11292_s3 + $0x23c] ss:$12 sps:$4 sm:$0xff]   ;;  %v8924_v17 = vld [vmem:[%s11292_s3 + $0x254] ss:$12 sps:$4 sm:$0xff]  }
 0x54b   :  { %v2113_v6 = vpop.f32.mrf.mxu1 }
 0x54d   :  { %v7829_v42 = vpop.f32.mrf.mxu1 }
 0x54f   :  { %v2335_v29 = vpop.f32.mrf.mxu1 }
 0x550   :  { %v2336_v14 = vadd.f32 %v10084_v53, %v2335_v29 }
 0x551   :  { %v7836_v31 = vpop.f32.mrf.mxu1 }
 0x553   :  { %v2338_v51 = vpop.f32.mrf.mxu1 }
 0x554   :  { %v2339_v2 = vadd.f32 %v6981_v58, %v2338_v51 }
 0x555   :  { %v7837_v5 = vpop.f32.mrf.mxu1 }
 0x556   :  { %v2373_v62 = vpack.c.bf16 %v2339_v2, %v2336_v14  ;;  %v8928_v5 = vld [vmem:[%s11292_s3 + $0x284] ss:$0 sps:$4 sm:$0xff]  }
 0x557   :  { %v2343_v13 = vpop.f32.mrf.mxu1 }
 0x558   :  { %7871 = vmatmul.mubr.bf16.vlgmr.msra.gmra.mxu0 %v2373_v62  ;;  %v2344_v32 = vadd.f32 %v10092_v48, %v2343_v13  ;;  %v8929_v62 = vld [vmem:[#allocation2 + $0x178] sm:$0xff]   ;;  %v8930_v13 = vld [vmem:[#allocation2 + $0x170] sm:$0xff]  }
 0x559   :  { %7891 = vmatpush3.bf16.msra.mxu0 %v9524_v34  ;;  %v7840_v39 = vpop.f32.mrf.mxu1  ;;  %7874 = vmatprep.mubr.msk.bf16.mxu0 %vm9191_vm3, %v11312_v18 }
 0x55a   :  { %7892 = vmatprep.subr.bf16.mxu0 %v11312_v18  ;;  %7915 = vmatpush3.bf16.msra.mxu1 %v8929_v62  ;;  %v8931_v39 = vld [vmem:[#allocation2 + $0x168] sm:$0xff]  }
 0x55b   :  { %v2346_v61 = vpop.f32.mrf.mxu1  ;;  %7916 = vmatprep.subr.bf16.mxu1 %v11312_v18  ;;  %v8940_v62 = vld [vmem:[%s11292_s3 + $0x2a0] ss:$12 sps:$4 sm:$0xff]  }
 0x55c   :  { %v2347_v53 = vadd.f32 %v6987_v33, %v2346_v61  ;;  %v8932_v33 = vld [vmem:[#allocation2 + $0x160] sm:$0xff]  }
 0x55d   :  { %7893 = vmatpush3.bf16.msra.mxu0 %v9531_v43  ;;  %v7841_v24 = vpop.f32.mrf.mxu1 }
 0x55e   :  { %v2374_v54 = vpack.c.bf16 %v2347_v53, %v2344_v32  ;;  %7092 = vmatprep.subr.bf16.mxu0 %v9422_v19  ;;  %7917 = vmatpush3.bf16.msra.mxu1 %v8930_v13  ;;  %v8933_v32 = vld [vmem:[#allocation2 + $0x158] sm:$0xff]  }
 0x55f   :  { %v2351_v8 = vpop.f32.mrf.mxu1  ;;  %7918 = vmatprep.subr.bf16.mxu1 %v11312_v18  ;;  %v8946_v13 = vld [vmem:[%s11292_s3 + $0x2bc] ss:$12 sps:$4 sm:$0xff]  }
 0x560   :  { %7875 = vmatmul.mubr.bf16.gmra.mxu0 %v2374_v54  ;;  %v2352_v4 = vadd.f32 %v10100_v52, %v2351_v8  ;;  %v8934_v8 = vld [vmem:[#allocation2 + $0x150] sm:$0xff]  }
 0x561   :  { %v7844_v37 = vpop.f32.mrf.mxu1  ;;  %7878 = vmatprep.mubr.msk.bf16.mxu0 %vm9191_vm3, %v11312_v18 }
 0x562   :  { %7919 = vmatpush3.bf16.msra.mxu1 %v8931_v39  ;;  %v8944_v39 = vld [vmem:[%s11292_s3 + $0x2b8] ss:$12 sps:$4 sm:$0xff]  }
 0x563   :  { %v2354_v21 = vpop.f32.mrf.mxu1  ;;  %7920 = vmatprep.subr.bf16.mxu1 %v11312_v18 }
 0x564   :  { %v2355_v48 = vadd.f32 %v6993_v12, %v2354_v21  ;;  %v8935_v21 = vld [vmem:[#allocation2 + $0x148] sm:$0xff]  }
 0x565   :  { %v7845_v27 = vpop.f32.mrf.mxu1 }
 0x566   :  { %v2375_v25 = vpack.c.bf16 %v2355_v48, %v2352_v4  ;;  %7921 = vmatpush3.bf16.msra.mxu1 %v8932_v33  ;;  %v8950_v33 = vld [vmem:[%s11292_s3 + $0x2d4] ss:$12 sps:$4 sm:$0xff]  }
 0x567   :  { %v2359_v57 = vpop.f32.mrf.mxu1  ;;  %7922 = vmatprep.subr.bf16.mxu1 %v11312_v18 }
 0x568   :  { %7879 = vmatmul.mubr.bf16.gmra.mxu0 %v2375_v25  ;;  %v2360_v42 = vadd.f32 %v10106_v49, %v2359_v57  ;;  %v8916_v49 = vld [vmem:[%s11292_s3 + $0x224] ss:$12 sps:$4 sm:$0xff]  }
 0x569   :  { %v7848_v55 = vpop.f32.mrf.mxu1  ;;  %7882 = vmatprep.mubr.msk.bf16.mxu0 %vm9191_vm3, %v11312_v18  ;;  %v8936_v25 = vld [vmem:[#allocation2 + $0x140] sm:$0xff]  }
 0x56a   :  { %7923 = vmatpush3.bf16.msra.mxu1 %v8933_v32  ;;  %v6479_v32 = vld [vmem:[%s11292_s3 + $0x2e8] sm:$0xff] }
 0x56b   :  { %v2362_v6 = vpop.f32.mrf.mxu1  ;;  %7924 = vmatprep.subr.bf16.mxu1 %v11312_v18 }
 0x56c   :  { %v2363_v29 = vadd.f32 %v6999_v26, %v2362_v6 }
 0x56d   :  { %v7849_v15 = vpop.f32.mrf.mxu1 }
 0x56e   :  { %v2376_v9 = vpack.c.bf16 %v2363_v29, %v2360_v42  ;;  %7925 = vmatpush3.bf16.msra.mxu1 %v8934_v8  ;;  %v6493_v8 = vcombine.low %v6479_v32, %v6479_v32 }
 0x56f   :  { %v2367_v31 = vpop.f32.mrf.mxu1  ;;  %7926 = vmatprep.subr.bf16.mxu1 %v11312_v18 }
 0x570   :  { %7883 = vmatmul.mubr.bf16.gmra.mxu0 %v2376_v9  ;;  %v2368_v58 = vadd.f32 %v10112_v0, %v2367_v31  ;;  %v8925_v0 = vld [vmem:[%s11292_s3 + $0x26c] ss:$12 sps:$4 sm:$0xff]  }
 0x571   :  { %v7852_v52 = vpop.f32.mrf.mxu1  ;;  %7886 = vmatprep.mubr.msk.bf16.mxu0 %vm9191_vm3, %v11312_v18 }
 0x572   :  { %v2377_v2 = vpack.c.bf16 %v2368_v58, %v2368_v58  ;;  %7927 = vmatpush3.bf16.msra.mxu1 %v8935_v21 }
 0x573   :  { %v2370_v51 = vpop.f32.mrf.mxu1  ;;  %7928 = vmatprep.subr.bf16.mxu1 %v11312_v18 }
 0x575   :  { %v7853_v14 = vpop.f32.mrf.mxu1 }
 0x576   :  { %7929 = vmatpush3.bf16.msra.mxu1 %v8936_v25 }
 0x577   :  { %v7042_v61 = vpop.f32.mrf.mxu1  ;;  %7950 = vmatprep.subr.bf16.mxu1 %v11312_v18 }
 0x578   :  { %7887 = vmatmul.mubr.bf16.gmra.mxu0 %v2377_v2 }
 0x579   :  { %7894 = vmatprep.mubr.msk.bf16.mxu0 %vm9191_vm3, %v11312_v18  ;;  %v7043_v53 = vpop.f32.mrf.mxu1 }
 0x57a   :  { %v10245_v24 = vadd.f32 %v7043_v53, %v7042_v61  ;;  %v8948_v61 = vld [vmem:[%s11292_s3 + $0x2d0] ss:$12 sps:$4 sm:$0xff]   ;;  %v6494_v53 = vcombine.high %v6479_v32, %v6479_v32 }
 0x57b   :  { %v10247_v54 = vpop.f32.mrf.mxu1 }
 0x57d   :  { %v10250_v37 = vpop.f32.mrf.mxu1 }
 0x57f   :  { %v7048_v12 = vpop.f32.mrf.mxu1 }
 0x580   :  { %7895 = vmatmul.mubr.msk.bf16.vlgmr.msra.gmra.mxu0 %vm636_vm4, %v8916_v49 }
 0x581   :  { %7093 = vmatpush3.bf16.msra.mxu0 %v9425_v22  ;;  %7898 = vmatprep.mubr.msk.bf16.mxu0 %vm9191_vm3, %v11312_v18  ;;  %v7049_v4 = vpop.f32.mrf.mxu1 }
 0x582   :  { %7094 = vmatprep.subr.bf16.mxu0 %v9428_v28  ;;  %v10253_v48 = vadd.f32 %v7049_v4, %v7048_v12 }
 0x583   :  { %v10255_v27 = vpop.f32.mrf.mxu1 }
 0x585   :  { %7095 = vmatpush3.bf16.msra.mxu0 %v9439_v38  ;;  %v10258_v57 = vpop.f32.mrf.mxu1 }
 0x586   :  { %7096 = vmatprep.subr.bf16.mxu0 %v9442_v41 }
 0x587   :  { %v7054_v55 = vpop.f32.mrf.mxu1 }
 0x588   :  { %7899 = vmatmul.mubr.msk.bf16.gmra.mxu0 %vm636_vm4, %v8920_v59 }
 0x589   :  { %7097 = vmatpush3.bf16.msra.mxu0 %v9451_v47  ;;  %7902 = vmatprep.mubr.msk.bf16.mxu0 %vm9191_vm3, %v11312_v18  ;;  %v7055_v26 = vpop.f32.mrf.mxu1 }
 0x58a   :  { %7098 = vmatprep.subr.bf16.mxu0 %v9454_v60  ;;  %v10261_v6 = vadd.f32 %v7055_v26, %v7054_v55 }
 0x58b   :  { %v10263_v42 = vpop.f32.mrf.mxu1 }
 0x58d   :  { %7099 = vmatpush3.bf16.msra.mxu0 %v9464_v63  ;;  %v10265_v29 = vpop.f32.mrf.mxu1 }
 0x58e   :  { %7100 = vmatprep.subr.bf16.mxu0 %v9468_v1 }
 0x58f   :  { %v7060_v15 = vpop.f32.mrf.mxu1 }
 0x590   :  { %7903 = vmatmul.mubr.msk.bf16.gmra.mxu0 %vm636_vm4, %v8924_v17  ;;  %v8939_v17 = vld [vmem:[%s11292_s3 + $0x28c] ss:$12 sps:$4 sm:$0xff]  }
 0x591   :  { %7101 = vmatpush3.bf16.msra.mxu0 %v9398_v44  ;;  %7906 = vmatprep.mubr.msk.bf16.mxu0 %vm9191_vm3, %v11312_v18  ;;  %v7061_v9 = vpop.f32.mrf.mxu1 }
 0x592   :  { %7102 = vmatprep.subr.bf16.mxu0 %v9480_v7  ;;  %v10267_v31 = vadd.f32 %v7061_v9, %v7060_v15 }
 0x593   :  { %v10269_v52 = vpop.f32.mrf.mxu1 }
 0x595   :  { %7103 = vmatpush3.bf16.msra.mxu0 %v9490_v10  ;;  %v10271_v58 = vpop.f32.mrf.mxu1 }
 0x596   :  { %7104 = vmatprep.subr.bf16.mxu0 %v9492_v11 }
 0x597   :  { %v7066_v51 = vpop.f32.mrf.mxu1 }
 0x598   :  { %7907 = vmatmul.mubr.msk.bf16.gmra.mxu0 %vm636_vm4, %v8925_v0  ;;  %v8937_v0 = vld [vmem:[%s11292_s3 + $0x288] ss:$12 sps:$4 sm:$0xff]  }
 0x599   :  { %7105 = vmatpush3.bf16.msra.mxu0 %v9390_v35  ;;  %7910 = vmatprep.mubr.msk.bf16.mxu0 %vm9191_vm3, %v11312_v18  ;;  %v7067_v14 = vpop.f32.mrf.mxu1 }
 0x59a   :  { %7106 = vmatprep.subr.bf16.mxu0 %v11313_v3  ;;  %v10273_v2 = vadd.f32 %v7067_v14, %v7066_v51 }
 0x59b   :  { %v7069_v49 = vpop.f32.mrf.mxu1 }
 0x59d   :  { %7107 = vmatpush3.bf16.msra.mxu0 %v11314_v36  ;;  %v7070_v59 = vpop.f32.mrf.mxu1 }
 0x59e   :  { %7974 = vmatprep.subr.bf16.mxu0 %v11312_v18 }
 0x5a0   :  { %7911 = vmatmul.mubr.msk.bf16.gmra.mxu0 %vm636_vm4, %v8928_v5  ;;  %v8942_v5 = vld [vmem:[%s11292_s3 + $0x2a4] ss:$12 sps:$4 sm:$0xff]  }
 0x5a1   :  { %3059 = vmatprep.mubr.bf16.mxu0 %v8939_v17 }
 0x5a8   :  { %3060 = vmatmul.mubr.bf16.vlgmr.msra.gmra.mxu0 %v8937_v0 }
 0x5a9   :  { %3067 = vmatprep.mubr.bf16.mxu0 %v8942_v5 }
 0x5b0   :  { %3068 = vmatmul.mubr.bf16.gmra.mxu0 %v8940_v62 }
 0x5b1   :  { %3075 = vmatprep.mubr.bf16.mxu0 %v8946_v13 }
 0x5b8   :  { %3076 = vmatmul.mubr.bf16.gmra.mxu0 %v8944_v39 }
 0x5b9   :  { %3083 = vmatprep.mubr.bf16.mxu0 %v8950_v33 }
 0x5c0   :  { %3084 = vmatmul.mubr.bf16.gmra.mxu0 %v8948_v61 }
 0x5c1   :  { %3091 = vmatprep.mubr.bf16.mxu0 %v6494_v53 }
 0x5c8   :  { %3092 = vmatmul.mubr.bf16.gmra.mxu0 %v6493_v8 }
 0x5c9   :  { %7990 = vmatprep.mubr.msk.bf16.mxu0 %vm9191_vm3, %v11312_v18 }
 0x618   :  { %v2477_v12 = vpop.f32.mrf.mxu0 }
 0x619   :  { %v10305_v21 = vadd.f32 %v2477_v12, %v10144_v56 }
 0x61a   :  { %v7872_v4 = vpop.f32.mrf.mxu0 }
 0x61c   :  { %v2480_v25 = vpop.f32.mrf.mxu0 }
 0x61d   :  { %v10308_v55 = vadd.f32 %v2480_v25, %v10147_v23  ;;  %v7047_v25 = vadd.f32 %v10250_v37, %v10247_v54 }
 0x61e   :  { %v7873_v26 = vpop.f32.mrf.mxu0 }
 0x620   :  { %v2485_v15 = vpop.f32.mrf.mxu0 }
 0x621   :  { %v10311_v9 = vadd.f32 %v2485_v15, %v10150_v45 }
 0x622   :  { %v7876_v51 = vpop.f32.mrf.mxu0 }
 0x624   :  { %v2488_v14 = vpop.f32.mrf.mxu0 }
 0x625   :  { %v10314_v49 = vadd.f32 %v2488_v14, %v10153_v40 }
 0x626   :  { %v7877_v59 = vpop.f32.mrf.mxu0 }
 0x627   :  { %v7053_v59 = vadd.f32 %v10258_v57, %v10255_v27  ;;  %v7059_v27 = vadd.f32 %v10265_v29, %v10263_v42 }
 0x628   :  { %v2493_v17 = vpop.f32.mrf.mxu0 }
 0x629   :  { %v10317_v56 = vadd.f32 %v2493_v17, %v10156_v46 }
 0x62a   :  { %v7880_v0 = vpop.f32.mrf.mxu0 }
 0x62c   :  { %v2496_v5 = vpop.f32.mrf.mxu0 }
 0x62d   :  { %v10320_v23 = vadd.f32 %v2496_v5, %v10159_v50 }
 0x62e   :  { %v7881_v62 = vpop.f32.mrf.mxu0 }
 0x630   :  { %v2501_v13 = vpop.f32.mrf.mxu0 }
 0x631   :  { %v10323_v45 = vadd.f32 %v2501_v13, %v10162_v30 }
 0x632   :  { %v7884_v39 = vpop.f32.mrf.mxu0 }
 0x634   :  { %v2504_v33 = vpop.f32.mrf.mxu0 }
 0x635   :  { %v10326_v40 = vadd.f32 %v2504_v33, %v10165_v20 }
 0x636   :  { %v7885_v61 = vpop.f32.mrf.mxu0 }
 0x638   :  { %v2509_v32 = vpop.f32.mrf.mxu0 }
 0x639   :  { %v10329_v46 = vadd.f32 %v2509_v32, %v10168_v16 }
 0x63a   :  { %v7888_v53 = vpop.f32.mrf.mxu0 }
 0x63b   :  { %v7065_v53 = vadd.f32 %v10271_v58, %v10269_v52  ;;  %v8947_v52 = vld [vmem:[%s11292_s3 + $0x2a8] ss:$12 sps:$4 sm:$0xff]   ;;  %v8951_v58 = vld [vmem:[%s11292_s3 + $0x2c0] ss:$12 sps:$4 sm:$0xff]  }
 0x63c   :  { %v2512_v8 = vpop.f32.mrf.mxu0 }
 0x63e   :  { %v7889_v12 = vpop.f32.mrf.mxu0 }
 0x640   :  { %v2734_v50 = vpop.f32.mrf.mxu0 }
 0x641   :  { %v2735_v26 = vadd.f32 %v10245_v24, %v2734_v50 }
 0x642   :  { %v7896_v4 = vpop.f32.mrf.mxu0 }
 0x644   :  { %v2737_v30 = vpop.f32.mrf.mxu0 }
 0x645   :  { %v2738_v15 = vadd.f32 %v7047_v25, %v2737_v30 }
 0x646   :  { %v7897_v51 = vpop.f32.mrf.mxu0 }
 0x647   :  { %v2772_v20 = vpack.c.bf16 %v2738_v15, %v2735_v26  ;;  %v8955_v51 = vld [vmem:[%s11292_s3 + $0x2f0] ss:$0 sps:$4 sm:$0xff]  }
 0x648   :  { %v2742_v14 = vpop.f32.mrf.mxu0 }
 0x649   :  { %7931 = vmatmul.mubr.bf16.vlgmr.msra.gmra.mxu1 %v2772_v20  ;;  %v2743_v37 = vadd.f32 %v10253_v48, %v2742_v14  ;;  %v8956_v20 = vld [vmem:[#allocation2 + $0x1b8] sm:$0xff]   ;;  %v8957_v14 = vld [vmem:[#allocation2 + $0x1b0] sm:$0xff]  }
 0x64a   :  { %7951 = vmatpush3.bf16.msra.mxu1 %v9524_v34  ;;  %v7900_v16 = vpop.f32.mrf.mxu0  ;;  %7934 = vmatprep.mubr.msk.bf16.mxu1 %vm9191_vm3, %v11312_v18 }
 0x64b   :  { %7952 = vmatprep.subr.bf16.mxu1 %v11312_v18  ;;  %7975 = vmatpush3.bf16.msra.mxu0 %v8956_v20  ;;  %v8958_v16 = vld [vmem:[#allocation2 + $0x1a8] sm:$0xff]  }
 0x64c   :  { %v2745_v54 = vpop.f32.mrf.mxu0  ;;  %7976 = vmatprep.subr.bf16.mxu0 %v11312_v18  ;;  %v8967_v20 = vld [vmem:[%s11292_s3 + $0x30c] ss:$12 sps:$4 sm:$0xff]  }
 0x64d   :  { %v2746_v24 = vadd.f32 %v7053_v59, %v2745_v54  ;;  %v8959_v59 = vld [vmem:[#allocation2 + $0x1a0] sm:$0xff]  }
 0x64e   :  { %7953 = vmatpush3.bf16.msra.mxu1 %v9531_v43  ;;  %v7901_v17 = vpop.f32.mrf.mxu0 }
 0x64f   :  { %v2773_v0 = vpack.c.bf16 %v2746_v24, %v2743_v37  ;;  %7158 = vmatprep.subr.bf16.mxu1 %v9422_v19  ;;  %7977 = vmatpush3.bf16.msra.mxu0 %v8957_v14  ;;  %v8960_v37 = vld [vmem:[#allocation2 + $0x198] sm:$0xff]   ;;  %v8973_v14 = vld [vmem:[%s11292_s3 + $0x328] ss:$12 sps:$4 sm:$0xff]  }
 0x650   :  { %v2750_v5 = vpop.f32.mrf.mxu0  ;;  %7978 = vmatprep.subr.bf16.mxu0 %v11312_v18 }
 0x651   :  { %7935 = vmatmul.mubr.bf16.gmra.mxu1 %v2773_v0  ;;  %v2751_v13 = vadd.f32 %v10261_v6, %v2750_v5  ;;  %v8961_v5 = vld [vmem:[#allocation2 + $0x190] sm:$0xff]  }
 0x652   :  { %v7904_v62 = vpop.f32.mrf.mxu0  ;;  %7938 = vmatprep.mubr.msk.bf16.mxu1 %vm9191_vm3, %v11312_v18 }
 0x653   :  { %7979 = vmatpush3.bf16.msra.mxu0 %v8958_v16  ;;  %v8971_v16 = vld [vmem:[%s11292_s3 + $0x324] ss:$12 sps:$4 sm:$0xff]  }
 0x654   :  { %v2753_v57 = vpop.f32.mrf.mxu0  ;;  %7980 = vmatprep.subr.bf16.mxu0 %v11312_v18 }
 0x655   :  { %v2754_v48 = vadd.f32 %v7059_v27, %v2753_v57  ;;  %v8962_v57 = vld [vmem:[#allocation2 + $0x188] sm:$0xff]  }
 0x656   :  { %v7905_v39 = vpop.f32.mrf.mxu0 }
 0x657   :  { %v2774_v33 = vpack.c.bf16 %v2754_v48, %v2751_v13  ;;  %7981 = vmatpush3.bf16.msra.mxu0 %v8959_v59  ;;  %v8977_v59 = vld [vmem:[%s11292_s3 + $0x340] ss:$12 sps:$4 sm:$0xff]  }
 0x658   :  { %v2758_v61 = vpop.f32.mrf.mxu0  ;;  %7982 = vmatprep.subr.bf16.mxu0 %v11312_v18 }
 0x659   :  { %7939 = vmatmul.mubr.bf16.gmra.mxu1 %v2774_v33  ;;  %v2759_v12 = vadd.f32 %v10267_v31, %v2758_v61  ;;  %v8943_v31 = vld [vmem:[%s11292_s3 + $0x290] ss:$12 sps:$4 sm:$0xff]   ;;  %v8963_v33 = vld [vmem:[#allocation2 + $0x180] sm:$0xff]  }
 0x65a   :  { %v7908_v32 = vpop.f32.mrf.mxu0  ;;  %7942 = vmatprep.mubr.msk.bf16.mxu1 %vm9191_vm3, %v11312_v18 }
 0x65b   :  { %7983 = vmatpush3.bf16.msra.mxu0 %v8960_v37  ;;  %v6525_v37 = vld [vmem:[%s11292_s3 + $0x354] sm:$0xff] }
 0x65c   :  { %v2761_v8 = vpop.f32.mrf.mxu0  ;;  %7984 = vmatprep.subr.bf16.mxu0 %v11312_v18 }
 0x65d   :  { %v2762_v50 = vadd.f32 %v7065_v53, %v2761_v8 }
 0x65e   :  { %v7909_v42 = vpop.f32.mrf.mxu0 }
 0x65f   :  { %v2775_v29 = vpack.c.bf16 %v2762_v50, %v2759_v12  ;;  %7985 = vmatpush3.bf16.msra.mxu0 %v8961_v5  ;;  %v6539_v5 = vcombine.low %v6525_v37, %v6525_v37 }
 0x660   :  { %v2766_v4 = vpop.f32.mrf.mxu0  ;;  %7986 = vmatprep.subr.bf16.mxu0 %v11312_v18 }
 0x661   :  { %7943 = vmatmul.mubr.bf16.gmra.mxu1 %v2775_v29  ;;  %v2767_v25 = vadd.f32 %v10273_v2, %v2766_v4  ;;  %v8952_v2 = vld [vmem:[%s11292_s3 + $0x2d8] ss:$12 sps:$4 sm:$0xff]  }
 0x662   :  { %v7912_v6 = vpop.f32.mrf.mxu0  ;;  %7946 = vmatprep.mubr.msk.bf16.mxu1 %vm9191_vm3, %v11312_v18 }
 0x663   :  { %v2776_v15 = vpack.c.bf16 %v2767_v25, %v2767_v25  ;;  %7987 = vmatpush3.bf16.msra.mxu0 %v8962_v57 }
 0x664   :  { %v2769_v30 = vpop.f32.mrf.mxu0  ;;  %7988 = vmatprep.subr.bf16.mxu0 %v11312_v18 }
 0x666   :  { %v7913_v26 = vpop.f32.mrf.mxu0 }
 0x667   :  { %7989 = vmatpush3.bf16.msra.mxu0 %v8963_v33 }
 0x668   :  { %v7108_v54 = vpop.f32.mrf.mxu0  ;;  %8010 = vmatprep.subr.bf16.mxu0 %v11312_v18 }
 0x669   :  { %7947 = vmatmul.mubr.bf16.gmra.mxu1 %v2776_v15 }
 0x66a   :  { %7954 = vmatprep.mubr.msk.bf16.mxu1 %vm9191_vm3, %v11312_v18  ;;  %v7109_v24 = vpop.f32.mrf.mxu0 }
 0x66b   :  { %v10406_v17 = vadd.f32 %v7109_v24, %v7108_v54  ;;  %v8975_v54 = vld [vmem:[%s11292_s3 + $0x33c] ss:$12 sps:$4 sm:$0xff]   ;;  %v6540_v24 = vcombine.high %v6525_v37, %v6525_v37 }
 0x66c   :  { %v10408_v0 = vpop.f32.mrf.mxu0 }
 0x66e   :  { %v10411_v62 = vpop.f32.mrf.mxu0 }
 0x670   :  { %v7114_v27 = vpop.f32.mrf.mxu0 }
 0x671   :  { %7955 = vmatmul.mubr.msk.bf16.vlgmr.msra.gmra.mxu1 %vm636_vm4, %v8943_v31 }
 0x672   :  { %7159 = vmatpush3.bf16.msra.mxu1 %v9425_v22  ;;  %7958 = vmatprep.mubr.msk.bf16.mxu1 %vm9191_vm3, %v11312_v18  ;;  %v7115_v13 = vpop.f32.mrf.mxu0 }
 0x673   :  { %7160 = vmatprep.subr.bf16.mxu1 %v9428_v28  ;;  %v10414_v48 = vadd.f32 %v7115_v13, %v7114_v27 }
 0x674   :  { %v10416_v39 = vpop.f32.mrf.mxu0 }
 0x676   :  { %7161 = vmatpush3.bf16.msra.mxu1 %v9439_v38  ;;  %v10419_v61 = vpop.f32.mrf.mxu0 }
 0x677   :  { %7162 = vmatprep.subr.bf16.mxu1 %v9442_v41 }
 0x678   :  { %v7120_v32 = vpop.f32.mrf.mxu0 }
 0x679   :  { %7959 = vmatmul.mubr.msk.bf16.gmra.mxu1 %vm636_vm4, %v8947_v52 }
 0x67a   :  { %7163 = vmatpush3.bf16.msra.mxu1 %v9451_v47  ;;  %7962 = vmatprep.mubr.msk.bf16.mxu1 %vm9191_vm3, %v11312_v18  ;;  %v7121_v53 = vpop.f32.mrf.mxu0 }
 0x67b   :  { %7164 = vmatprep.subr.bf16.mxu1 %v9454_v60  ;;  %v10422_v8 = vadd.f32 %v7121_v53, %v7120_v32 }
 0x67c   :  { %v10424_v12 = vpop.f32.mrf.mxu0 }
 0x67e   :  { %7165 = vmatpush3.bf16.msra.mxu1 %v9464_v63  ;;  %v10426_v50 = vpop.f32.mrf.mxu0 }
 0x67f   :  { %7166 = vmatprep.subr.bf16.mxu1 %v9468_v1 }
 0x680   :  { %v7126_v42 = vpop.f32.mrf.mxu0 }
 0x681   :  { %7963 = vmatmul.mubr.msk.bf16.gmra.mxu1 %vm636_vm4, %v8951_v58  ;;  %v8966_v58 = vld [vmem:[%s11292_s3 + $0x2f8] ss:$12 sps:$4 sm:$0xff]  }
 0x682   :  { %7167 = vmatpush3.bf16.msra.mxu1 %v9398_v44  ;;  %7966 = vmatprep.mubr.msk.bf16.mxu1 %vm9191_vm3, %v11312_v18  ;;  %v7127_v29 = vpop.f32.mrf.mxu0 }
 0x683   :  { %7168 = vmatprep.subr.bf16.mxu1 %v9480_v7  ;;  %v10428_v4 = vadd.f32 %v7127_v29, %v7126_v42 }
 0x684   :  { %v10430_v6 = vpop.f32.mrf.mxu0 }
 0x686   :  { %7169 = vmatpush3.bf16.msra.mxu1 %v9490_v10  ;;  %v10432_v25 = vpop.f32.mrf.mxu0 }
 0x687   :  { %7170 = vmatprep.subr.bf16.mxu1 %v9492_v11 }
 0x688   :  { %v7132_v30 = vpop.f32.mrf.mxu0 }
 0x689   :  { %7967 = vmatmul.mubr.msk.bf16.gmra.mxu1 %vm636_vm4, %v8952_v2  ;;  %v8964_v2 = vld [vmem:[%s11292_s3 + $0x2f4] ss:$12 sps:$4 sm:$0xff]  }
 0x68a   :  { %7171 = vmatpush3.bf16.msra.mxu1 %v9390_v35  ;;  %7970 = vmatprep.mubr.msk.bf16.mxu1 %vm9191_vm3, %v11312_v18  ;;  %v7133_v26 = vpop.f32.mrf.mxu0 }
 0x68b   :  { %7172 = vmatprep.subr.bf16.mxu1 %v11313_v3  ;;  %v10434_v15 = vadd.f32 %v7133_v26, %v7132_v30 }
 0x68c   :  { %v7135_v31 = vpop.f32.mrf.mxu0 }
 0x68e   :  { %7173 = vmatpush3.bf16.msra.mxu1 %v11314_v36  ;;  %v7136_v52 = vpop.f32.mrf.mxu0 }
 0x68f   :  { %8034 = vmatprep.subr.bf16.mxu1 %v11312_v18 }
 0x691   :  { %7971 = vmatmul.mubr.msk.bf16.gmra.mxu1 %vm636_vm4, %v8955_v51  ;;  %v8969_v51 = vld [vmem:[%s11292_s3 + $0x310] ss:$12 sps:$4 sm:$0xff]  }
 0x692   :  { %3458 = vmatprep.mubr.bf16.mxu1 %v8966_v58 }
 0x699   :  { %3459 = vmatmul.mubr.bf16.vlgmr.msra.gmra.mxu1 %v8964_v2 }
 0x69a   :  { %3466 = vmatprep.mubr.bf16.mxu1 %v8969_v51 }
 0x6a1   :  { %3467 = vmatmul.mubr.bf16.gmra.mxu1 %v8967_v20 }
 0x6a2   :  { %3474 = vmatprep.mubr.bf16.mxu1 %v8973_v14 }
 0x6a9   :  { %3475 = vmatmul.mubr.bf16.gmra.mxu1 %v8971_v16 }
 0x6aa   :  { %3482 = vmatprep.mubr.bf16.mxu1 %v8977_v59 }
 0x6b1   :  { %3483 = vmatmul.mubr.bf16.gmra.mxu1 %v8975_v54 }
 0x6b2   :  { %3490 = vmatprep.mubr.bf16.mxu1 %v6540_v24 }
 0x6b9   :  { %3491 = vmatmul.mubr.bf16.gmra.mxu1 %v6539_v5 }
 0x6ba   :  { %8050 = vmatprep.mubr.msk.bf16.mxu1 %vm9191_vm3, %v11312_v18 }
 0x709   :  { %v2876_v27 = vpop.f32.mrf.mxu1 }
 0x70a   :  { %v10466_v57 = vadd.f32 %v2876_v27, %v10305_v21 }
 0x70b   :  { %v7932_v13 = vpop.f32.mrf.mxu1 }
 0x70d   :  { %v2879_v33 = vpop.f32.mrf.mxu1 }
 0x70e   :  { %v10469_v32 = vadd.f32 %v2879_v33, %v10308_v55  ;;  %v7113_v33 = vadd.f32 %v10411_v62, %v10408_v0 }
 0x70f   :  { %v7933_v53 = vpop.f32.mrf.mxu1 }
 0x711   :  { %v2884_v42 = vpop.f32.mrf.mxu1 }
 0x712   :  { %v10472_v29 = vadd.f32 %v2884_v42, %v10311_v9 }
 0x713   :  { %v7936_v30 = vpop.f32.mrf.mxu1 }
 0x715   :  { %v2887_v26 = vpop.f32.mrf.mxu1 }
 0x716   :  { %v10475_v31 = vadd.f32 %v2887_v26, %v10314_v49 }
 0x717   :  { %v7937_v52 = vpop.f32.mrf.mxu1 }
 0x718   :  { %v7119_v52 = vadd.f32 %v10419_v61, %v10416_v39  ;;  %v7125_v39 = vadd.f32 %v10426_v50, %v10424_v12 }
 0x719   :  { %v2892_v58 = vpop.f32.mrf.mxu1 }
 0x71a   :  { %v10478_v21 = vadd.f32 %v2892_v58, %v10317_v56 }
 0x71b   :  { %v7940_v2 = vpop.f32.mrf.mxu1 }
 0x71d   :  { %v2895_v51 = vpop.f32.mrf.mxu1 }
 0x71e   :  { %v10481_v55 = vadd.f32 %v2895_v51, %v10320_v23 }
 0x71f   :  { %v7941_v20 = vpop.f32.mrf.mxu1 }
 0x721   :  { %v2900_v14 = vpop.f32.mrf.mxu1 }
 0x722   :  { %v10484_v9 = vadd.f32 %v2900_v14, %v10323_v45 }
 0x723   :  { %v7944_v16 = vpop.f32.mrf.mxu1 }
 0x725   :  { %v2903_v59 = vpop.f32.mrf.mxu1 }
 0x726   :  { %v10487_v49 = vadd.f32 %v2903_v59, %v10326_v40 }
 0x727   :  { %v7945_v54 = vpop.f32.mrf.mxu1 }
 0x729   :  { %v2908_v37 = vpop.f32.mrf.mxu1 }
 0x72a   :  { %v10490_v56 = vadd.f32 %v2908_v37, %v10329_v46 }
 0x72b   :  { %v7948_v24 = vpop.f32.mrf.mxu1 }
 0x72d   :  { %v2911_v5 = vpop.f32.mrf.mxu1 }
 0x72f   :  { %v7949_v27 = vpop.f32.mrf.mxu1 }
 0x731   :  { %v3133_v23 = vpop.f32.mrf.mxu1 }
 0x732   :  { %v3134_v53 = vadd.f32 %v10406_v17, %v3133_v23 }
 0x733   :  { %v7956_v13 = vpop.f32.mrf.mxu1 }
 0x735   :  { %v3136_v45 = vpop.f32.mrf.mxu1 }
 0x736   :  { %v3137_v42 = vadd.f32 %v7113_v33, %v3136_v45 }
 0x737   :  { %v7957_v30 = vpop.f32.mrf.mxu1 }
 0x738   :  { %v3171_v40 = vpack.c.bf16 %v3137_v42, %v3134_v53 }
 0x739   :  { %v3141_v26 = vpop.f32.mrf.mxu1 }
 0x73a   :  { %7991 = vmatmul.mubr.bf16.vlgmr.msra.gmra.mxu0 %v3171_v40  ;;  %v3142_v62 = vadd.f32 %v10414_v48, %v3141_v26  ;;  %v8990_v40 = vld [vmem:[#allocation2 + $0x1c0] sm:$0xff]  }
 0x73b   :  { %8011 = vmatpush3.bf16.msra.mxu0 %v9524_v34  ;;  %v7960_v46 = vpop.f32.mrf.mxu1  ;;  %7994 = vmatprep.mubr.msk.bf16.mxu0 %vm9191_vm3, %v11312_v18 }
 0x73c   :  { %8012 = vmatprep.subr.bf16.mxu0 %v11312_v18 }
 0x73d   :  { %v3144_v0 = vpop.f32.mrf.mxu1 }
 0x73e   :  { %v3145_v17 = vadd.f32 %v7119_v52, %v3144_v0 }
 0x73f   :  { %8013 = vmatpush3.bf16.msra.mxu0 %v9531_v43  ;;  %v7961_v58 = vpop.f32.mrf.mxu1 }
 0x740   :  { %v3172_v2 = vpack.c.bf16 %v3145_v17, %v3142_v62  ;;  %7224 = vmatprep.subr.bf16.mxu0 %v9422_v19  ;;  %v7131_v19 = vadd.f32 %v10432_v25, %v10430_v6  ;;  %v8974_v6 = vld [vmem:[%s11292_s3 + $0x314] ss:$12 sps:$4 sm:$0xff]   ;;  %v8989_v25 = vld [vmem:[#allocation2 + $0x1c8] sm:$0xff]  }
 0x741   :  { %v3149_v51 = vpop.f32.mrf.mxu1 }
 0x742   :  { %7995 = vmatmul.mubr.bf16.gmra.mxu0 %v3172_v2  ;;  %v3150_v14 = vadd.f32 %v10422_v8, %v3149_v51 }
 0x743   :  { %v7964_v20 = vpop.f32.mrf.mxu1  ;;  %7998 = vmatprep.mubr.msk.bf16.mxu0 %vm9191_vm3, %v11312_v18 }
 0x745   :  { %v3152_v61 = vpop.f32.mrf.mxu1 }
 0x746   :  { %v3153_v48 = vadd.f32 %v7125_v39, %v3152_v61 }
 0x747   :  { %v7965_v16 = vpop.f32.mrf.mxu1 }
 0x748   :  { %v3173_v59 = vpack.c.bf16 %v3153_v48, %v3150_v14 }
 0x749   :  { %v3157_v54 = vpop.f32.mrf.mxu1 }
 0x74a   :  { %7999 = vmatmul.mubr.bf16.gmra.mxu0 %v3173_v59  ;;  %v3158_v5 = vadd.f32 %v10428_v4, %v3157_v54  ;;  %v8970_v4 = vld [vmem:[%s11292_s3 + $0x2fc] ss:$12 sps:$4 sm:$0xff]   ;;  %v8993_v54 = vld [vmem:[%s11292_s3 + $0x364] ss:$12 sps:$4 sm:$0xff]  }
 0x74b   :  { %v7968_v37 = vpop.f32.mrf.mxu1  ;;  %8002 = vmatprep.mubr.msk.bf16.mxu0 %vm9191_vm3, %v11312_v18 }
 0x74c   :  { %v8991_v37 = vld [vmem:[%s11292_s3 + $0x360] ss:$12 sps:$4 sm:$0xff]  }
 0x74d   :  { %v3160_v24 = vpop.f32.mrf.mxu1 }
 0x74e   :  { %v3161_v27 = vadd.f32 %v7131_v19, %v3160_v24  ;;  %v8996_v19 = vld [vmem:[%s11292_s3 + $0x37c] ss:$12 sps:$4 sm:$0xff]   ;;  %v8994_v24 = vld [vmem:[%s11292_s3 + $0x378] ss:$12 sps:$4 sm:$0xff]  }
 0x74f   :  { %v7969_v12 = vpop.f32.mrf.mxu1 }
 0x750   :  { %v3174_v50 = vpack.c.bf16 %v3161_v27, %v3158_v5  ;;  %v9000_v5 = vld [vmem:[%s11292_s3 + $0x394] ss:$12 sps:$4 sm:$0xff]   ;;  %v8998_v27 = vld [vmem:[%s11292_s3 + $0x390] ss:$12 sps:$4 sm:$0xff]   ;;  %v9004_v12 = vld [vmem:[%s11292_s3 + $0x3ac] ss:$12 sps:$4 sm:$0xff]  }
 0x751   :  { %v3165_v23 = vpop.f32.mrf.mxu1 }
 0x752   :  { %8003 = vmatmul.mubr.bf16.gmra.mxu0 %v3174_v50  ;;  %v3166_v13 = vadd.f32 %v10434_v15, %v3165_v23  ;;  %v9002_v50 = vld [vmem:[%s11292_s3 + $0x3a8] ss:$12 sps:$4 sm:$0xff]   ;;  %v6571_v23 = vld [vmem:[%s11292_s3 + $0x3c0] sm:$0xff] }
 0x753   :  { %v7972_v8 = vpop.f32.mrf.mxu1  ;;  %8006 = vmatprep.mubr.msk.bf16.mxu0 %vm9191_vm3, %v11312_v18 }
 0x754   :  { %v3175_v53 = vpack.c.bf16 %v3166_v13, %v3166_v13  ;;  %v6585_v8 = vcombine.low %v6571_v23, %v6571_v23  ;;  %v6586_v13 = vcombine.high %v6571_v23, %v6571_v23 }
 0x755   :  { %v3168_v33 = vpop.f32.mrf.mxu1 }
 0x757   :  { %v7973_v45 = vpop.f32.mrf.mxu1 }
 0x75a   :  { %8007 = vmatmul.mubr.bf16.gmra.mxu0 %v3175_v53 }
 0x75b   :  { %8014 = vmatprep.mubr.msk.bf16.mxu0 %vm9191_vm3, %v11312_v18 }
 0x762   :  { %8015 = vmatmul.mubr.msk.bf16.vlgmr.msra.gmra.mxu0 %vm636_vm4, %v8970_v4 }
 0x763   :  { %7225 = vmatpush3.bf16.msra.mxu0 %v9425_v22  ;;  %8018 = vmatprep.mubr.msk.bf16.mxu0 %vm9191_vm3, %v11312_v18  ;;  %v8978_v22 = vld [vmem:[%s11292_s3 + $0x32c] ss:$12 sps:$4 sm:$0xff]  }
 0x764   :  { %7226 = vmatprep.subr.bf16.mxu0 %v9428_v28  ;;  %v8979_v28 = vld [vmem:[%s11292_s3 + $0x344] ss:$12 sps:$4 sm:$0xff]  }
 0x767   :  { %7227 = vmatpush3.bf16.msra.mxu0 %v9439_v38  ;;  %v8983_v38 = vld [vmem:[#allocation2 + $0x1f8] sm:$0xff]  }
 0x768   :  { %7228 = vmatprep.subr.bf16.mxu0 %v9442_v41  ;;  %8035 = vmatpush3.bf16.msra.mxu1 %v8983_v38  ;;  %v8985_v41 = vld [vmem:[#allocation2 + $0x1e8] sm:$0xff]  }
 0x769   :  { %8036 = vmatprep.subr.bf16.mxu1 %v11312_v18 }
 0x76a   :  { %8019 = vmatmul.mubr.msk.bf16.gmra.mxu0 %vm636_vm4, %v8974_v6 }
 0x76b   :  { %7229 = vmatpush3.bf16.msra.mxu0 %v9451_v47  ;;  %8022 = vmatprep.mubr.msk.bf16.mxu0 %vm9191_vm3, %v11312_v18  ;;  %v8986_v47 = vld [vmem:[#allocation2 + $0x1e0] sm:$0xff]  }
 0x76c   :  { %7230 = vmatprep.subr.bf16.mxu0 %v9454_v60  ;;  %v7174_v60 = vpop.f32.mrf.mxu1 }
 0x76f   :  { %7231 = vmatpush3.bf16.msra.mxu0 %v9464_v63  ;;  %v8987_v63 = vld [vmem:[#allocation2 + $0x1d8] sm:$0xff]  }
 0x770   :  { %7232 = vmatprep.subr.bf16.mxu0 %v9468_v1  ;;  %v7175_v1 = vpop.f32.mrf.mxu1 }
 0x772   :  { %8023 = vmatmul.mubr.msk.bf16.gmra.mxu0 %vm636_vm4, %v8978_v22 }
 0x773   :  { %7233 = vmatpush3.bf16.msra.mxu0 %v9398_v44  ;;  %8026 = vmatprep.mubr.msk.bf16.mxu0 %vm9191_vm3, %v11312_v18  ;;  %v8982_v44 = vld [vmem:[%s11292_s3 + $0x35c] ss:$0 sps:$4 sm:$0xff]  }
 0x774   :  { %7234 = vmatprep.subr.bf16.mxu0 %v9480_v7  ;;  %v10567_v7 = vadd.f32 %v7175_v1, %v7174_v60 }
 0x777   :  { %7235 = vmatpush3.bf16.msra.mxu0 %v9490_v10  ;;  %v10569_v10 = vpop.f32.mrf.mxu1 }
 0x778   :  { %7236 = vmatprep.subr.bf16.mxu0 %v9492_v11  ;;  %v8988_v11 = vld [vmem:[#allocation2 + $0x1d0] sm:$0xff]  }
 0x77a   :  { %8027 = vmatmul.mubr.msk.bf16.gmra.mxu0 %vm636_vm4, %v8979_v28 }
 0x77b   :  { %7237 = vmatpush3.bf16.msra.mxu0 %v9390_v35  ;;  %8030 = vmatprep.mubr.msk.bf16.mxu0 %vm9191_vm3, %v11312_v18  ;;  %v8984_v35 = vld [vmem:[#allocation2 + $0x1f0] sm:$0xff]  }
 0x77c   :  { %7238 = vmatprep.subr.bf16.mxu0 %v11313_v3  ;;  %8037 = vmatpush3.bf16.msra.mxu1 %v8984_v35  ;;  %v10572_v3 = vpop.f32.mrf.mxu1 }
 0x77d   :  { %8038 = vmatprep.subr.bf16.mxu1 %v11312_v18 }
 0x77f   :  { %7239 = vmatpush3.bf16.msra.mxu0 %v11314_v36  ;;  %v7180_v36 = vpop.f32.mrf.mxu1 }
 0x780   :  { %8094 = vmatprep.subr.bf16.mxu0 %v11312_v18  ;;  %8039 = vmatpush3.bf16.msra.mxu1 %v8985_v41 }
 0x781   :  { %8040 = vmatprep.subr.bf16.mxu1 %v11312_v18  ;;  %v7181_v15 = vpop.f32.mrf.mxu1 }
 0x782   :  { %8031 = vmatmul.mubr.msk.bf16.gmra.mxu0 %vm636_vm4, %v8982_v44  ;;  %v10575_v42 = vadd.f32 %v7181_v15, %v7180_v36 }
 0x783   :  { %v10577_v30 = vpop.f32.mrf.mxu1  ;;  %3857 = vmatprep.mubr.bf16.mxu0 %v8993_v54 }
 0x784   :  { %8041 = vmatpush3.bf16.msra.mxu1 %v8986_v47 }
 0x785   :  { %8042 = vmatprep.subr.bf16.mxu1 %v11312_v18  ;;  %v10580_v26 = vpop.f32.mrf.mxu1 }
 0x787   :  { %v7186_v46 = vpop.f32.mrf.mxu1 }
 0x788   :  { %8043 = vmatpush3.bf16.msra.mxu1 %v8987_v63 }
 0x789   :  { %8044 = vmatprep.subr.bf16.mxu1 %v11312_v18  ;;  %v7187_v52 = vpop.f32.mrf.mxu1 }
 0x78a   :  { %v10583_v0 = vadd.f32 %v7187_v52, %v7186_v46  ;;  %3858 = vmatmul.mubr.bf16.vlgmr.msra.gmra.mxu0 %v8991_v37 }
 0x78b   :  { %v10585_v62 = vpop.f32.mrf.mxu1  ;;  %3865 = vmatprep.mubr.bf16.mxu0 %v8996_v19  ;;  %v7185_v19 = vadd.f32 %v10580_v26, %v10577_v30 }
 0x78c   :  { %8045 = vmatpush3.bf16.msra.mxu1 %v8988_v11 }
 0x78d   :  { %8046 = vmatprep.subr.bf16.mxu1 %v11312_v18  ;;  %v10587_v17 = vpop.f32.mrf.mxu1 }
 0x78e   :  { %v7191_v30 = vadd.f32 %v10587_v17, %v10585_v62 }
 0x78f   :  { %v7192_v58 = vpop.f32.mrf.mxu1 }
 0x790   :  { %8047 = vmatpush3.bf16.msra.mxu1 %v8989_v25 }
 0x791   :  { %8048 = vmatprep.subr.bf16.mxu1 %v11312_v18  ;;  %v7193_v2 = vpop.f32.mrf.mxu1 }
 0x792   :  { %v10589_v51 = vadd.f32 %v7193_v2, %v7192_v58  ;;  %3866 = vmatmul.mubr.bf16.gmra.mxu0 %v8994_v24 }
 0x793   :  { %v10591_v20 = vpop.f32.mrf.mxu1  ;;  %3873 = vmatprep.mubr.bf16.mxu0 %v9000_v5 }
 0x794   :  { %8049 = vmatpush3.bf16.msra.mxu1 %v8990_v40 }
 0x795   :  { %8070 = vmatprep.subr.bf16.mxu1 %v11312_v18  ;;  %v10593_v39 = vpop.f32.mrf.mxu1 }
 0x797   :  { %v7198_v61 = vpop.f32.mrf.mxu1 }
 0x799   :  { %v7199_v14 = vpop.f32.mrf.mxu1 }
 0x79a   :  { %v10595_v48 = vadd.f32 %v7199_v14, %v7198_v61  ;;  %3874 = vmatmul.mubr.bf16.gmra.mxu0 %v8998_v27  ;;  %v7179_v14 = vadd.f32 %v10572_v3, %v10569_v10 }
 0x79b   :  { %v7201_v16 = vpop.f32.mrf.mxu1  ;;  %3881 = vmatprep.mubr.bf16.mxu0 %v9004_v12 }
 0x79d   :  { %v7202_v59 = vpop.f32.mrf.mxu1 }
 0x7a2   :  { %3882 = vmatmul.mubr.bf16.gmra.mxu0 %v9002_v50 }
 0x7a3   :  { %3889 = vmatprep.mubr.bf16.mxu0 %v6586_v13  ;;  %v7197_v13 = vadd.f32 %v10593_v39, %v10591_v20  ;;  %v9001_v20 = vld [vmem:[%s11292_s3 + $0x380] ss:$12 sps:$4 sm:$0xff]   ;;  %v9005_v39 = vld [vmem:[%s11292_s3 + $0x398] ss:$12 sps:$4 sm:$0xff]  }
 0x7aa   :  { %3890 = vmatmul.mubr.bf16.gmra.mxu0 %v6585_v8 }
 0x7ab   :  { %8110 = vmatprep.mubr.msk.bf16.mxu0 %vm9191_vm3, %v11312_v18 }
 0x7fa   :  { %v3275_v33 = vpop.f32.mrf.mxu0 }
 0x7fb   :  { %v10627_v45 = vadd.f32 %v3275_v33, %v10466_v57 }
 0x7fc   :  { %v7992_v53 = vpop.f32.mrf.mxu0 }
 0x7fe   :  { %v3278_v4 = vpop.f32.mrf.mxu0 }
 0x7ff   :  { %v10630_v6 = vadd.f32 %v3278_v4, %v10469_v32 }
 0x800   :  { %v7993_v22 = vpop.f32.mrf.mxu0 }
 0x802   :  { %v3283_v28 = vpop.f32.mrf.mxu0 }
 0x803   :  { %v10633_v44 = vadd.f32 %v3283_v28, %v10472_v29 }
 0x804   :  { %v7996_v38 = vpop.f32.mrf.mxu0 }
 0x806   :  { %v3286_v35 = vpop.f32.mrf.mxu0 }
 0x807   :  { %v10636_v41 = vadd.f32 %v3286_v35, %v10475_v31 }
 0x808   :  { %v7997_v47 = vpop.f32.mrf.mxu0 }
 0x80a   :  { %v3291_v60 = vpop.f32.mrf.mxu0 }
 0x80b   :  { %v10639_v57 = vadd.f32 %v3291_v60, %v10478_v21  ;;  %v9009_v60 = vld [vmem:[%s11292_s3 + $0x3c8] ss:$0 sps:$4 sm:$0xff]  }
 0x80c   :  { %v8000_v63 = vpop.f32.mrf.mxu0 }
 0x80d   :  { %v9010_v63 = vld [vmem:[#allocation2 + $0x238] sm:$0xff]  }
 0x80e   :  { %v3294_v1 = vpop.f32.mrf.mxu0  ;;  %8095 = vmatpush3.bf16.msra.mxu0 %v9010_v63 }
 0x80f   :  { %v10642_v32 = vadd.f32 %v3294_v1, %v10481_v55  ;;  %8096 = vmatprep.subr.bf16.mxu0 %v11312_v18  ;;  %v9011_v1 = vld [vmem:[#allocation2 + $0x230] sm:$0xff]  }
 0x810   :  { %v8001_v11 = vpop.f32.mrf.mxu0 }
 0x811   :  { %v9012_v11 = vld [vmem:[#allocation2 + $0x228] sm:$0xff]  }
 0x812   :  { %v3299_v36 = vpop.f32.mrf.mxu0  ;;  %8097 = vmatpush3.bf16.msra.mxu0 %v9011_v1 }
 0x813   :  { %v10645_v29 = vadd.f32 %v3299_v36, %v10484_v9  ;;  %8098 = vmatprep.subr.bf16.mxu0 %v11312_v18  ;;  %v9013_v36 = vld [vmem:[#allocation2 + $0x220] sm:$0xff]  }
 0x814   :  { %v8004_v25 = vpop.f32.mrf.mxu0 }
 0x816   :  { %v3302_v15 = vpop.f32.mrf.mxu0  ;;  %8099 = vmatpush3.bf16.msra.mxu0 %v9012_v11 }
 0x817   :  { %v10648_v31 = vadd.f32 %v3302_v15, %v10487_v49  ;;  %8100 = vmatprep.subr.bf16.mxu0 %v11312_v18 }
 0x818   :  { %v8005_v40 = vpop.f32.mrf.mxu0 }
 0x819   :  { %v9014_v40 = vld [vmem:[#allocation2 + $0x218] sm:$0xff]  }
 0x81a   :  { %v3307_v46 = vpop.f32.mrf.mxu0  ;;  %8101 = vmatpush3.bf16.msra.mxu0 %v9013_v36 }
 0x81b   :  { %v10651_v21 = vadd.f32 %v3307_v46, %v10490_v56  ;;  %8102 = vmatprep.subr.bf16.mxu0 %v11312_v18 }
 0x81c   :  { %v8008_v52 = vpop.f32.mrf.mxu0 }
 0x81e   :  { %v3310_v58 = vpop.f32.mrf.mxu0  ;;  %8103 = vmatpush3.bf16.msra.mxu0 %v9014_v40 }
 0x81f   :  { %8104 = vmatprep.subr.bf16.mxu0 %v11312_v18 }
 0x820   :  { %v8009_v2 = vpop.f32.mrf.mxu0 }
 0x821   :  { %v9015_v2 = vld [vmem:[#allocation2 + $0x210] sm:$0xff]  }
 0x822   :  { %v3532_v55 = vpop.f32.mrf.mxu0  ;;  %8105 = vmatpush3.bf16.msra.mxu0 %v9015_v2 }
 0x823   :  { %v3533_v16 = vadd.f32 %v10567_v7, %v3532_v55  ;;  %8106 = vmatprep.subr.bf16.mxu0 %v11312_v18 }
 0x824   :  { %v8016_v61 = vpop.f32.mrf.mxu0 }
 0x826   :  { %v3535_v9 = vpop.f32.mrf.mxu0 }
 0x827   :  { %v3536_v59 = vadd.f32 %v7179_v14, %v3535_v9  ;;  %v9016_v14 = vld [vmem:[#allocation2 + $0x208] sm:$0xff]  }
 0x828   :  { %v8017_v54 = vpop.f32.mrf.mxu0  ;;  %8107 = vmatpush3.bf16.msra.mxu0 %v9016_v14 }
 0x829   :  { %v3570_v49 = vpack.c.bf16 %v3536_v59, %v3533_v16  ;;  %8108 = vmatprep.subr.bf16.mxu0 %v11312_v18  ;;  %v9017_v54 = vld [vmem:[#allocation2 + $0x200] sm:$0xff]  }
 0x82a   :  { %v3540_v37 = vpop.f32.mrf.mxu0 }
 0x82b   :  { %8051 = vmatmul.mubr.bf16.vlgmr.msra.gmra.mxu1 %v3570_v49  ;;  %v3541_v3 = vadd.f32 %v10575_v42, %v3540_v37 }
 0x82c   :  { %8071 = vmatpush3.bf16.msra.mxu1 %v9524_v34  ;;  %v8020_v56 = vpop.f32.mrf.mxu0  ;;  %8054 = vmatprep.mubr.msk.bf16.mxu1 %vm9191_vm3, %v11312_v18 }
 0x82d   :  { %8072 = vmatprep.subr.bf16.mxu1 %v11312_v18  ;;  %8109 = vmatpush3.bf16.msra.mxu0 %v9017_v54 }
 0x82e   :  { %v3543_v10 = vpop.f32.mrf.mxu0  ;;  %8160 = vmatprep.subr.bf16.mxu0 %v11312_v18 }
 0x82f   :  { %v3544_v7 = vadd.f32 %v7185_v19, %v3543_v10 }
 0x830   :  { %8073 = vmatpush3.bf16.msra.mxu1 %v9531_v43  ;;  %v8021_v24 = vpop.f32.mrf.mxu0 }
 0x831   :  { %v3571_v5 = vpack.c.bf16 %v3544_v7, %v3541_v3  ;;  %8130 = vmatprep.subr.bf16.mxu1 %v11312_v18 }
 0x832   :  { %v3548_v34 = vpop.f32.mrf.mxu0 }
 0x833   :  { %8055 = vmatmul.mubr.bf16.gmra.mxu1 %v3571_v5  ;;  %v3549_v12 = vadd.f32 %v10583_v0, %v3548_v34 }
 0x834   :  { %v8024_v27 = vpop.f32.mrf.mxu0  ;;  %8058 = vmatprep.mubr.msk.bf16.mxu1 %vm9191_vm3, %v11312_v18 }
 0x836   :  { %v3551_v26 = vpop.f32.mrf.mxu0 }
 0x837   :  { %v3552_v42 = vadd.f32 %v7191_v30, %v3551_v26 }
 0x838   :  { %v8025_v50 = vpop.f32.mrf.mxu0 }
 0x839   :  { %v3572_v23 = vpack.c.bf16 %v3552_v42, %v3549_v12 }
 0x83a   :  { %v3556_v43 = vpop.f32.mrf.mxu0 }
 0x83b   :  { %8059 = vmatmul.mubr.bf16.gmra.mxu1 %v3572_v23  ;;  %v3557_v53 = vadd.f32 %v10589_v51, %v3556_v43  ;;  %v8997_v51 = vld [vmem:[%s11292_s3 + $0x368] ss:$12 sps:$4 sm:$0xff]  }
 0x83c   :  { %v8028_v8 = vpop.f32.mrf.mxu0  ;;  %8062 = vmatprep.mubr.msk.bf16.mxu1 %vm9191_vm3, %v11312_v18 }
 0x83e   :  { %v3559_v33 = vpop.f32.mrf.mxu0 }
 0x83f   :  { %v3560_v4 = vadd.f32 %v7197_v13, %v3559_v33 }
 0x840   :  { %v8029_v62 = vpop.f32.mrf.mxu0 }
 0x841   :  { %v3573_v17 = vpack.c.bf16 %v3560_v4, %v3557_v53 }
 0x842   :  { %v3564_v22 = vpop.f32.mrf.mxu0 }
 0x843   :  { %8063 = vmatmul.mubr.bf16.gmra.mxu1 %v3573_v17  ;;  %v3565_v28 = vadd.f32 %v10595_v48, %v3564_v22  ;;  %v9006_v48 = vld [vmem:[%s11292_s3 + $0x3b0] ss:$12 sps:$4 sm:$0xff]  }
 0x844   :  { %v8032_v0 = vpop.f32.mrf.mxu0  ;;  %8066 = vmatprep.mubr.msk.bf16.mxu1 %vm9191_vm3, %v11312_v18 }
 0x845   :  { %v3574_v47 = vpack.c.bf16 %v3565_v28, %v3565_v28 }
 0x846   :  { %v3567_v38 = vpop.f32.mrf.mxu0 }
 0x848   :  { %v8033_v35 = vpop.f32.mrf.mxu0 }
 0x84a   :  { %v7240_v25 = vpop.f32.mrf.mxu0 }
 0x84b   :  { %8067 = vmatmul.mubr.bf16.gmra.mxu1 %v3574_v47 }
 0x84c   :  { %8074 = vmatprep.mubr.msk.bf16.mxu1 %vm9191_vm3, %v11312_v18  ;;  %v7241_v15 = vpop.f32.mrf.mxu0 }
 0x84d   :  { %v10714_v46 = vadd.f32 %v7241_v15, %v7240_v25 }
 0x84e   :  { %v7243_v52 = vpop.f32.mrf.mxu0 }
 0x850   :  { %v7244_v58 = vpop.f32.mrf.mxu0 }
 0x851   :  { %v7245_v1 = vadd.f32 %v7244_v58, %v7243_v52 }
 0x852   :  { %v7246_v55 = vpop.f32.mrf.mxu0 }
 0x853   :  { %8075 = vmatmul.mubr.msk.bf16.vlgmr.msra.gmra.mxu1 %vm636_vm4, %v8997_v51 }
 0x854   :  { %8078 = vmatprep.mubr.msk.bf16.mxu1 %vm9191_vm3, %v11312_v18  ;;  %v7247_v61 = vpop.f32.mrf.mxu0 }
 0x855   :  { %v10718_v9 = vadd.f32 %v7247_v61, %v7246_v55 }
 0x856   :  { %v7249_v16 = vpop.f32.mrf.mxu0 }
 0x858   :  { %v7250_v59 = vpop.f32.mrf.mxu0 }
 0x85a   :  { %v10721_v49 = vpop.f32.mrf.mxu0 }
 0x85b   :  { %8079 = vmatmul.mubr.msk.bf16.gmra.mxu1 %vm636_vm4, %v9001_v20 }
 0x85c   :  { %8082 = vmatprep.mubr.msk.bf16.mxu1 %vm9191_vm3, %v11312_v18  ;;  %v7253_v37 = vpop.f32.mrf.mxu0 }
 0x85e   :  { %v7255_v56 = vpop.f32.mrf.mxu0 }
 0x860   :  { %v7256_v19 = vpop.f32.mrf.mxu0 }
 0x862   :  { %v10724_v10 = vpop.f32.mrf.mxu0 }
 0x863   :  { %8083 = vmatmul.mubr.msk.bf16.gmra.mxu1 %vm636_vm4, %v9005_v39 }
 0x864   :  { %8086 = vmatprep.mubr.msk.bf16.mxu1 %vm9191_vm3, %v11312_v18  ;;  %v10726_v3 = vpop.f32.mrf.mxu0 }
 0x866   :  { %v10728_v7 = vpop.f32.mrf.mxu0 }
 0x868   :  { %v10730_v24 = vpop.f32.mrf.mxu0 }
 0x86a   :  { %v10732_v5 = vpop.f32.mrf.mxu0 }
 0x86b   :  { %8087 = vmatmul.mubr.msk.bf16.gmra.mxu1 %vm636_vm4, %v9006_v48 }
 0x86c   :  { %8090 = vmatprep.mubr.msk.bf16.mxu1 %vm9191_vm3, %v11312_v18  ;;  %v10734_v34 = vpop.f32.mrf.mxu0 }
 0x86e   :  { %v7267_v27 = vpop.f32.mrf.mxu0 }
 0x86f   :  { %v7257_v27 = vadd.f32 %v7256_v19, %v7255_v56  ;;  %v7266_v19 = vadd.f32 %v10734_v34, %v10732_v5  ;;  %v6601_v5 = vld [vmem:[%s11294_s5] ss:$0 sm:$0xff] }
 0x870   :  { %v7268_v30 = vpop.f32.mrf.mxu0 }
 0x873   :  { %8091 = vmatmul.mubr.msk.bf16.gmra.mxu1 %vm636_vm4, %v9009_v60 }
 0x874   :  { %8140 = vmatprep.mubr.msk.bf16.mxu1 %vm9191_vm3, %v11312_v18 }
 0x8eb   :  { %v3674_v26 = vpop.f32.mrf.mxu1 }
 0x8ec   :  { %v10737_v12 = vadd.f32 %v3674_v26, %v10627_v45 }
 0x8ed   :  { %v8052_v42 = vpop.f32.mrf.mxu1 }
 0x8ef   :  { %v3677_v50 = vpop.f32.mrf.mxu1 }
 0x8f0   :  { %v10740_v23 = vadd.f32 %v3677_v50, %v10630_v6 }
 0x8f1   :  { %v8053_v43 = vpop.f32.mrf.mxu1 }
 0x8f2   :  { %v7260_v43 = vadd.f32 %v10726_v3, %v10724_v10 }
 0x8f3   :  { %v3682_v8 = vpop.f32.mrf.mxu1 }
 0x8f4   :  { %v10743_v13 = vadd.f32 %v3682_v8, %v10633_v44  ;;  %v7263_v8 = vadd.f32 %v10730_v24, %v10728_v7 }
 0x8f5   :  { %v8056_v33 = vpop.f32.mrf.mxu1 }
 0x8f7   :  { %v3685_v53 = vpop.f32.mrf.mxu1 }
 0x8f8   :  { %v10746_v4 = vadd.f32 %v3685_v53, %v10636_v41 }
 0x8f9   :  { %v8057_v62 = vpop.f32.mrf.mxu1 }
 0x8fb   :  { %v3690_v17 = vpop.f32.mrf.mxu1 }
 0x8fc   :  { %v10749_v45 = vadd.f32 %v3690_v17, %v10639_v57 }
 0x8fd   :  { %v8060_v22 = vpop.f32.mrf.mxu1 }
 0x8ff   :  { %v3693_v0 = vpop.f32.mrf.mxu1 }
 0x900   :  { %v10752_v6 = vadd.f32 %v3693_v0, %v10642_v32 }
 0x901   :  { %v8061_v28 = vpop.f32.mrf.mxu1 }
 0x903   :  { %v3698_v38 = vpop.f32.mrf.mxu1 }
 0x904   :  { %v10755_v44 = vadd.f32 %v3698_v38, %v10645_v29 }
 0x905   :  { %v8064_v35 = vpop.f32.mrf.mxu1 }
 0x907   :  { %v3701_v47 = vpop.f32.mrf.mxu1 }
 0x908   :  { %v10758_v41 = vadd.f32 %v3701_v47, %v10648_v31 }
 0x909   :  { %v8065_v51 = vpop.f32.mrf.mxu1 }
 0x90b   :  { %v3706_v20 = vpop.f32.mrf.mxu1 }
 0x90c   :  { %v10761_v57 = vadd.f32 %v3706_v20, %v10651_v21  ;;  %v7251_v21 = vadd.f32 %v7250_v59, %v7249_v16 }
 0x90d   :  { %v8068_v39 = vpop.f32.mrf.mxu1 }
 0x90f   :  { %v3709_v48 = vpop.f32.mrf.mxu1 }
 0x911   :  { %v8069_v60 = vpop.f32.mrf.mxu1 }
 0x913   :  { %v3931_v32 = vpop.f32.mrf.mxu1 }
 0x914   :  { %v3932_v29 = vadd.f32 %v10714_v46, %v3931_v32  ;;  %v7254_v46 = vadd.f32 %v7253_v37, %v10721_v49 }
 0x915   :  { %v8076_v63 = vpop.f32.mrf.mxu1 }
 0x917   :  { %v3934_v11 = vpop.f32.mrf.mxu1 }
 0x918   :  { %v3935_v36 = vadd.f32 %v7245_v1, %v3934_v11 }
 0x919   :  { %v8077_v25 = vpop.f32.mrf.mxu1 }
 0x91a   :  { %v3969_v15 = vpack.c.bf16 %v3935_v36, %v3932_v29 }
 0x91b   :  { %v3939_v40 = vpop.f32.mrf.mxu1 }
 0x91c   :  { %8111 = vmatmul.mubr.bf16.vlgmr.msra.gmra.mxu0 %v3969_v15  ;;  %v3940_v55 = vadd.f32 %v10718_v9, %v3939_v40 }
 0x91d   :  { %v8080_v31 = vpop.f32.mrf.mxu1  ;;  %8114 = vmatprep.mubr.msk.bf16.mxu0 %vm9191_vm3, %v11312_v18 }
 0x91f   :  { %v3942_v2 = vpop.f32.mrf.mxu1 }
 0x920   :  { %v3943_v61 = vadd.f32 %v7251_v21, %v3942_v2 }
 0x921   :  { %v8081_v14 = vpop.f32.mrf.mxu1 }
 0x922   :  { %v3970_v54 = vpack.c.bf16 %v3943_v61, %v3940_v55 }
 0x923   :  { %v3947_v52 = vpop.f32.mrf.mxu1 }
 0x924   :  { %8115 = vmatmul.mubr.bf16.gmra.mxu0 %v3970_v54  ;;  %v3948_v26 = vadd.f32 %v7254_v46, %v3947_v52 }
 0x925   :  { %v8084_v58 = vpop.f32.mrf.mxu1  ;;  %8118 = vmatprep.mubr.msk.bf16.mxu0 %vm9191_vm3, %v11312_v18 }
 0x927   :  { %v3950_v30 = vpop.f32.mrf.mxu1 }
 0x928   :  { %v3951_v42 = vadd.f32 %v7257_v27, %v3950_v30 }
 0x929   :  { %v8085_v50 = vpop.f32.mrf.mxu1 }
 0x92a   :  { %v3971_v16 = vpack.c.bf16 %v3951_v42, %v3948_v26 }
 0x92b   :  { %v3955_v59 = vpop.f32.mrf.mxu1 }
 0x92c   :  { %8119 = vmatmul.mubr.bf16.gmra.mxu0 %v3971_v16  ;;  %v3956_v49 = vadd.f32 %v7260_v43, %v3955_v59 }
 0x92d   :  { %v8088_v9 = vpop.f32.mrf.mxu1  ;;  %8122 = vmatprep.mubr.msk.bf16.mxu0 %vm9191_vm3, %v11312_v18 }
 0x92f   :  { %v3958_v33 = vpop.f32.mrf.mxu1 }
 0x930   :  { %v3959_v37 = vadd.f32 %v7263_v8, %v3958_v33 }
 0x931   :  { %v8089_v56 = vpop.f32.mrf.mxu1 }
 0x932   :  { %v3972_v53 = vpack.c.bf16 %v3959_v37, %v3956_v49 }
 0x933   :  { %v3963_v62 = vpop.f32.mrf.mxu1 }
 0x934   :  { %8123 = vmatmul.mubr.bf16.gmra.mxu0 %v3972_v53  ;;  %v3964_v22 = vadd.f32 %v7266_v19, %v3963_v62  ;;  %v9028_v53 = vld [vmem:[#allocation6 + $0x78] sm:$0xff]  }
 0x935   :  { %v8092_v17 = vpop.f32.mrf.mxu1  ;;  %8126 = vmatprep.mubr.msk.bf16.mxu0 %vm9191_vm3, %v11312_v18  ;;  %v9032_v62 = vld [vmem:[#allocation6 + $0x38] sm:$0xff]  }
 0x936   :  { %v3973_v3 = vpack.c.bf16 %v3964_v22, %v3964_v22  ;;  %v9029_v17 = vld [vmem:[#allocation6 + $0x70] sm:$0xff]  }
 0x937   :  { %v3966_v0 = vpop.f32.mrf.mxu1  ;;  %v9034_v22 = vld [vmem:[#allocation6 + $0x30] sm:$0xff]  }
 0x938   :  { %v9019_v0 = vld [vmem:[#allocation4 + $0x2c] sm:$0xff]  }
 0x939   :  { %v8093_v10 = vpop.f32.mrf.mxu1 }
 0x93a   :  { %v9022_v10 = vld [vmem:[#allocation4 + $0x8] sm:$0xff]  }
 0x93c   :  { %8127 = vmatmul.mubr.bf16.gmra.mxu0 %v3973_v3  ;;  %v9030_v3 = vld [vmem:[#allocation6 + $0x68] sm:$0xff]  }
 0x93d   :  { %8170 = vmatprep.mubr.msk.bf16.mxu0 %vm9191_vm3, %v11312_v18 }
 0x9dc   :  { %v4073_v7 = vpop.f32.mrf.mxu0 }
 0x9dd   :  { %v4111_v24 = vadd.f32 %v4073_v7, %v10737_v12  ;;  %v9036_v7 = vld [vmem:[#allocation6 + $0x28] sm:$0xff]  }
 0x9de   :  { %v8112_v34 = vpop.f32.mrf.mxu0 }
 0x9df   :  { %v4127_v38 = vadd.f32 %v6601_v5, %v4111_v24  ;;  %v9031_v24 = vld [vmem:[#allocation6 + $0x60] sm:$0xff]  }
 0x9e0   :  { %v4076_v28 = vpop.f32.mrf.mxu0  ;;  %v9024_v34 = vld [vmem:[#allocation4 + $0x10] sm:$0xff]  }
 0x9e1   :  { %v4112_v35 = vadd.f32 %v4076_v28, %v10740_v23  ;;  %v4136_v39 = vmax.f32 %v4127_v38, 0.0  ;;  %v9033_v28 = vld [vmem:[#allocation6 + $0x58] sm:$0xff]   ;;  %v9035_v38 = vld [vmem:[#allocation6 + $0x50] sm:$0xff]  }
 0x9e2   :  { %v8113_v47 = vpop.f32.mrf.mxu0 }
 0x9e3   :  { %v4128_v51 = vadd.f32 %v6601_v5, %v4112_v35  ;;  %v9023_v35 = vld [vmem:[#allocation4 + $0x3c] sm:$0xff]  }
 0x9e4   :  { %v4081_v20 = vpop.f32.mrf.mxu0  ;;  %v9026_v47 = vld [vmem:[#allocation4 + $0x18] sm:$0xff]  }
 0x9e5   :  { %v4137_v48 = vmax.f32 %v4128_v51, 0.0  ;;  %v4113_v60 = vadd.f32 %v4081_v20, %v10743_v13  ;;  %v9037_v51 = vld [vmem:[#allocation6 + $0x48] sm:$0xff]   ;;  %v9025_v20 = vld [vmem:[#allocation4 + $0x44] ss:$0 sps:$4 sm:$0xff]  }
 0x9e6   :  { %v8116_v32 = vpop.f32.mrf.mxu0 }
 0x9e7   :  { %v10788_v63 = vpack.c.bf16 %v4137_v48, %v4136_v39  ;;  %v4129_v1 = vadd.f32 %v6601_v5, %v4113_v60  ;;  %v9027_v39 = vld [vmem:[#allocation4 + $0x20] ss:$0 sps:$4 sm:$0xff]   ;;  %v9038_v48 = vld [vmem:[#allocation6 + $0x20] sm:$0xff]   ;;  %v9040_v60 = vld [vmem:[#allocation6 + $0x18] sm:$0xff]  }
 0x9e8   :  { %v4084_v12 = vpop.f32.mrf.mxu0  ;;  %v9041_v32 = vld [vmem:[#allocation6 + $0x10] sm:$0xff]  }
 0x9e9   :  { %v4114_v11 = vadd.f32 %v4084_v12, %v10746_v4  ;;  %v4138_v15 = vmax.f32 %v4129_v1, 0.0  ;;  %v9042_v12 = vld [vmem:[#allocation6 + $0x8] sm:$0xff]   ;;  %v9039_v1 = vld [vmem:[#allocation6 + $0x40] sm:$0xff]  }
 0x9ea   :  { %v8117_v29 = vpop.f32.mrf.mxu0 }
 0x9eb   :  { %v4130_v36 = vadd.f32 %v6601_v5, %v4114_v11  ;;  %v9043_v11 = vld [vmem:[#allocation6] sm:$0xff]  }
 0x9ec   :  { %v4089_v25 = vpop.f32.mrf.mxu0 }
 0x9ed   :  { %v4139_v40 = vmax.f32 %v4130_v36, 0.0  ;;  %v4115_v23 = vadd.f32 %v4089_v25, %v10749_v45 }
 0x9ee   :  { %v8120_v31 = vpop.f32.mrf.mxu0 }
 0x9ef   :  { %v10792_v21 = vpack.c.bf16 %v4139_v40, %v4138_v15  ;;  %v4131_v55 = vadd.f32 %v6601_v5, %v4115_v23 }
 0x9f0   :  { %v4092_v2 = vpop.f32.mrf.mxu0 }
 0x9f1   :  { %v4116_v13 = vadd.f32 %v4092_v2, %v10752_v6  ;;  %v4140_v52 = vmax.f32 %v4131_v55, 0.0 }
 0x9f2   :  { %v8121_v61 = vpop.f32.mrf.mxu0 }
 0x9f3   :  { %v4132_v14 = vadd.f32 %v6601_v5, %v4116_v13 }
 0x9f4   :  { %v4097_v54 = vpop.f32.mrf.mxu0 }
 0x9f5   :  { %v4141_v58 = vmax.f32 %v4132_v14, 0.0  ;;  %v4117_v4 = vadd.f32 %v4097_v54, %v10755_v44 }
 0x9f6   :  { %v8124_v46 = vpop.f32.mrf.mxu0 }
 0x9f7   :  { %v10796_v27 = vpack.c.bf16 %v4141_v58, %v4140_v52  ;;  %v4133_v26 = vadd.f32 %v6601_v5, %v4117_v4 }
 0x9f8   :  { %v4100_v30 = vpop.f32.mrf.mxu0 }
 0x9f9   :  { %v4118_v45 = vadd.f32 %v4100_v30, %v10758_v41  ;;  %v4142_v59 = vmax.f32 %v4133_v26, 0.0  ;;  %v9018_v41 = vld [vmem:[#allocation4 + $0x24] sm:$0xff]  }
 0x9fa   :  { %v8125_v42 = vpop.f32.mrf.mxu0 }
 0x9fb   :  { %v4134_v50 = vadd.f32 %v6601_v5, %v4118_v45 }
 0x9fc   :  { %v4105_v16 = vpop.f32.mrf.mxu0 }
 0x9fd   :  { %v4143_v9 = vmax.f32 %v4134_v50, 0.0  ;;  %v4119_v6 = vadd.f32 %v4105_v16, %v10761_v57  ;;  %v9020_v57 = vld [vmem:[#allocation4] sm:$0xff]  }
 0x9fe   :  { %v8128_v43 = vpop.f32.mrf.mxu0 }
 0x9ff   :  { %v10800_v8 = vpack.c.bf16 %v4143_v9, %v4142_v59  ;;  %v4135_v33 = vadd.f32 %v6601_v5, %v4119_v6  ;;  %v9021_v5 = vld [vmem:[#allocation4 + $0x34] sm:$0xff]  }
 0xa00   :  { %v4108_v49 = vpop.f32.mrf.mxu0 }
 0xa01   :  { %v4144_v44 = vmax.f32 %v4135_v33, 0.0 }
 0xa02   :  { %v8129_v37 = vpop.f32.mrf.mxu0 }
 0xa03   :  { %v4149_v56 = vpack.c.bf16 %v4144_v44, %v4144_v44 }
 0xa05   :  { %v10803_v19 = vsel %vm310_vm0, %v4149_v56, 0 }
 0xa06   :  { %8131 = vmatpush3.bf16.msra.mxu1 %v10803_v19  ;;  %8161 = vmatpush3.bf16.msra.mxu0 %v10803_v19 }
 0xa07   :  { %8132 = vmatprep.subr.bf16.mxu1 %v11312_v18  ;;  %8162 = vmatprep.subr.bf16.mxu0 %v11312_v18 }
 0xa0a   :  { %8133 = vmatpush3.bf16.msra.mxu1 %v10800_v8  ;;  %8163 = vmatpush3.bf16.msra.mxu0 %v10800_v8 }
 0xa0b   :  { %8134 = vmatprep.subr.bf16.mxu1 %v11312_v18  ;;  %8164 = vmatprep.subr.bf16.mxu0 %v11312_v18 }
 0xa0e   :  { %8135 = vmatpush3.bf16.msra.mxu1 %v10796_v27  ;;  %8165 = vmatpush3.bf16.msra.mxu0 %v10796_v27 }
 0xa0f   :  { %8136 = vmatprep.subr.bf16.mxu1 %v11312_v18  ;;  %8166 = vmatprep.subr.bf16.mxu0 %v11312_v18 }
 0xa12   :  { %8137 = vmatpush3.bf16.msra.mxu1 %v10792_v21  ;;  %8167 = vmatpush3.bf16.msra.mxu0 %v10792_v21 }
 0xa13   :  { %8138 = vmatprep.subr.bf16.mxu1 %v11312_v18  ;;  %8168 = vmatprep.subr.bf16.mxu0 %v11312_v18 }
 0xa16   :  { %8139 = vmatpush3.bf16.msra.mxu1 %v10788_v63  ;;  %8169 = vmatpush3.bf16.msra.mxu0 %v10788_v63 }
 0xa17   :  { %8190 = vmatprep.subr.bf16.mxu1 %v11312_v18  ;;  %8226 = vmatprep.subr.bf16.mxu0 %v11312_v18 }
 0xa19   :  { %8171 = vmatmul.mubr.msk.bf16.vlgmr.msra.gmra.mxu0 %vm4182_vm5, %v9018_v41  ;;  %8141 = vmatmul.mubr.msk.bf16.vlgmr.msra.gmra.mxu1 %vm4182_vm5, %v9020_v57 }
 0xa1a   :  { %8174 = vmatprep.mubr.msk.bf16.mxu0 %vm9191_vm3, %v11312_v18  ;;  %8144 = vmatprep.mubr.msk.bf16.mxu1 %vm9191_vm3, %v11312_v18 }
 0xa1b   :  { %8191 = vmatpush3.bf16.msra.mxu1 %v9028_v53  ;;  %8227 = vmatpush3.bf16.msra.mxu0 %v9032_v62 }
 0xa1c   :  { %8192 = vmatprep.subr.bf16.mxu1 %v11312_v18  ;;  %8228 = vmatprep.subr.bf16.mxu0 %v11312_v18 }
 0xa1f   :  { %8193 = vmatpush3.bf16.msra.mxu1 %v9029_v17  ;;  %8229 = vmatpush3.bf16.msra.mxu0 %v9034_v22 }
 0xa20   :  { %8194 = vmatprep.subr.bf16.mxu1 %v11312_v18  ;;  %8230 = vmatprep.subr.bf16.mxu0 %v11312_v18 }
 0xa21   :  { %8175 = vmatmul.mubr.msk.bf16.gmra.mxu0 %vm4182_vm5, %v9019_v0  ;;  %8145 = vmatmul.mubr.msk.bf16.gmra.mxu1 %vm4182_vm5, %v9022_v10 }
 0xa22   :  { %8178 = vmatprep.mubr.msk.bf16.mxu0 %vm9191_vm3, %v11312_v18  ;;  %8148 = vmatprep.mubr.msk.bf16.mxu1 %vm9191_vm3, %v11312_v18 }
 0xa23   :  { %8195 = vmatpush3.bf16.msra.mxu1 %v9030_v3  ;;  %8231 = vmatpush3.bf16.msra.mxu0 %v9036_v7 }
 0xa24   :  { %8196 = vmatprep.subr.bf16.mxu1 %v11312_v18  ;;  %8232 = vmatprep.subr.bf16.mxu0 %v11312_v18 }
 0xa27   :  { %8197 = vmatpush3.bf16.msra.mxu1 %v9031_v24  ;;  %8233 = vmatpush3.bf16.msra.mxu0 %v9038_v48  ;;  %v9054_v48 = vld [vmem:[#allocation6 + $0xb8] sm:$0xff]  }
 0xa28   :  { %8198 = vmatprep.subr.bf16.mxu1 %v11312_v18  ;;  %8234 = vmatprep.subr.bf16.mxu0 %v11312_v18 }
 0xa29   :  { %8179 = vmatmul.mubr.msk.bf16.gmra.mxu0 %vm4182_vm5, %v9021_v5  ;;  %8149 = vmatmul.mubr.msk.bf16.gmra.mxu1 %vm4182_vm5, %v9024_v34 }
 0xa2a   :  { %8182 = vmatprep.mubr.msk.bf16.mxu0 %vm9191_vm3, %v11312_v18  ;;  %8152 = vmatprep.mubr.msk.bf16.mxu1 %vm9191_vm3, %v11312_v18 }
 0xa2b   :  { %8199 = vmatpush3.bf16.msra.mxu1 %v9033_v28  ;;  %8235 = vmatpush3.bf16.msra.mxu0 %v9040_v60  ;;  %v9050_v60 = vld [vmem:[#allocation4 + $0x74] sm:$0xff]  }
 0xa2c   :  { %8200 = vmatprep.subr.bf16.mxu1 %v11312_v18  ;;  %8236 = vmatprep.subr.bf16.mxu0 %v11312_v18 }
 0xa2f   :  { %8201 = vmatpush3.bf16.msra.mxu1 %v9035_v38  ;;  %8237 = vmatpush3.bf16.msra.mxu0 %v9041_v32  ;;  %v9056_v32 = vld [vmem:[#allocation6 + $0xa8] sm:$0xff]  }
 0xa30   :  { %8202 = vmatprep.subr.bf16.mxu1 %v11312_v18  ;;  %8238 = vmatprep.subr.bf16.mxu0 %v11312_v18 }
 0xa31   :  { %8183 = vmatmul.mubr.msk.bf16.gmra.mxu0 %vm4182_vm5, %v9023_v35  ;;  %8153 = vmatmul.mubr.msk.bf16.gmra.mxu1 %vm4182_vm5, %v9026_v47 }
 0xa32   :  { %8186 = vmatprep.mubr.msk.bf16.mxu0 %vm9191_vm3, %v11312_v18  ;;  %8156 = vmatprep.mubr.msk.bf16.mxu1 %vm9191_vm3, %v11312_v18 }
 0xa33   :  { %8203 = vmatpush3.bf16.msra.mxu1 %v9037_v51  ;;  %8239 = vmatpush3.bf16.msra.mxu0 %v9042_v12  ;;  %v9057_v12 = vld [vmem:[#allocation6 + $0xa0] sm:$0xff]  }
 0xa34   :  { %8204 = vmatprep.subr.bf16.mxu1 %v11312_v18  ;;  %8240 = vmatprep.subr.bf16.mxu0 %v11312_v18 }
 0xa37   :  { %8205 = vmatpush3.bf16.msra.mxu1 %v9039_v1  ;;  %8241 = vmatpush3.bf16.msra.mxu0 %v9043_v11  ;;  %v9051_v1 = vld [vmem:[#allocation4 + $0x7c] sm:$0xff]   ;;  %v9058_v11 = vld [vmem:[#allocation6 + $0x98] sm:$0xff]  }
 0xa38   :  { %8262 = vmatprep.subr.bf16.mxu1 %v11312_v18  ;;  %8292 = vmatprep.subr.bf16.mxu0 %v11312_v18 }
 0xa39   :  { %8187 = vmatmul.mubr.msk.bf16.gmra.mxu0 %vm4182_vm5, %v9025_v20  ;;  %8157 = vmatmul.mubr.msk.bf16.gmra.mxu1 %vm4182_vm5, %v9027_v39  ;;  %v9044_v20 = vld [vmem:[#allocation4 + $0x48] sm:$0xff]   ;;  %v9045_v39 = vld [vmem:[#allocation4 + $0x50] sm:$0xff]  }
 0xa3a   :  { %8206 = vmatprep.mubr.msk.bf16.mxu1 %vm9191_vm3, %v11312_v18  ;;  %8242 = vmatprep.mubr.msk.bf16.mxu0 %vm9191_vm3, %v11312_v18 }
 0xad9   :  { %v4376_v29 = vpop.f32.mrf.mxu0  ;;  %v4235_v36 = vpop.f32.mrf.mxu1 }
 0xadb   :  { %v8172_v25 = vpop.f32.mrf.mxu0  ;;  %v8142_v15 = vpop.f32.mrf.mxu1 }
 0xadc   :  { %v9060_v25 = vld [vmem:[#allocation6 + $0x88] sm:$0xff]   ;;  %v9061_v15 = vld [vmem:[#allocation6 + $0x80] sm:$0xff]  }
 0xadd   :  { %v4379_v40 = vpop.f32.mrf.mxu0  ;;  %v4238_v23 = vpop.f32.mrf.mxu1 }
 0xade   :  { %v4414_v31 = vpack.c.bf16 %v4379_v40, %v4376_v29  ;;  %v4273_v2 = vpack.c.bf16 %v4238_v23, %v4235_v36  ;;  %v9059_v29 = vld [vmem:[#allocation6 + $0x90] sm:$0xff]   ;;  %v9053_v40 = vld [vmem:[#allocation4 + $0x8c] ss:$0 sps:$4 sm:$0xff]  }
 0xadf   :  { %v8173_v55 = vpop.f32.mrf.mxu0  ;;  %v8143_v13 = vpop.f32.mrf.mxu1  ;;  %v9052_v36 = vld [vmem:[#allocation4 + $0x84] sm:$0xff]  }
 0xae0   :  { %8207 = vmatmul.mubr.bf16.vlgmr.msra.gmra.mxu1 %v4414_v31  ;;  %8243 = vmatmul.mubr.bf16.vlgmr.msra.gmra.mxu0 %v4273_v2 }
 0xae1   :  { %8263 = vmatpush3.bf16.msra.mxu1 %v10803_v19  ;;  %v4384_v61 = vpop.f32.mrf.mxu0  ;;  %8210 = vmatprep.mubr.msk.bf16.mxu1 %vm9191_vm3, %v11312_v18  ;;  %v4243_v14 = vpop.f32.mrf.mxu1 }
 0xae2   :  { %8264 = vmatprep.subr.bf16.mxu1 %v11312_v18  ;;  %8246 = vmatprep.mubr.msk.bf16.mxu0 %vm9191_vm3, %v11312_v18 }
 0xae3   :  { %v8176_v54 = vpop.f32.mrf.mxu0  ;;  %v8146_v52 = vpop.f32.mrf.mxu1  ;;  %8293 = vmatpush3.bf16.msra.mxu0 %v9054_v48 }
 0xae4   :  { %8294 = vmatprep.subr.bf16.mxu0 %v11312_v18 }
 0xae5   :  { %8265 = vmatpush3.bf16.msra.mxu1 %v10800_v8  ;;  %v4387_v58 = vpop.f32.mrf.mxu0  ;;  %v4246_v4 = vpop.f32.mrf.mxu1 }
 0xae6   :  { %v4415_v46 = vpack.c.bf16 %v4387_v58, %v4384_v61  ;;  %8266 = vmatprep.subr.bf16.mxu1 %v11312_v18  ;;  %v4274_v30 = vpack.c.bf16 %v4246_v4, %v4243_v14 }
 0xae7   :  { %v8177_v26 = vpop.f32.mrf.mxu0  ;;  %v8147_v45 = vpop.f32.mrf.mxu1 }
 0xae8   :  { %8211 = vmatmul.mubr.bf16.gmra.mxu1 %v4415_v46  ;;  %8247 = vmatmul.mubr.bf16.gmra.mxu0 %v4274_v30 }
 0xae9   :  { %8267 = vmatpush3.bf16.msra.mxu1 %v10796_v27  ;;  %v4392_v42 = vpop.f32.mrf.mxu0  ;;  %8214 = vmatprep.mubr.msk.bf16.mxu1 %vm9191_vm3, %v11312_v18  ;;  %v4251_v50 = vpop.f32.mrf.mxu1 }
 0xaea   :  { %8268 = vmatprep.subr.bf16.mxu1 %v11312_v18  ;;  %8250 = vmatprep.mubr.msk.bf16.mxu0 %vm9191_vm3, %v11312_v18 }
 0xaeb   :  { %v8180_v16 = vpop.f32.mrf.mxu0  ;;  %v8150_v59 = vpop.f32.mrf.mxu1 }
 0xaed   :  { %8269 = vmatpush3.bf16.msra.mxu1 %v10792_v21  ;;  %v4395_v9 = vpop.f32.mrf.mxu0  ;;  %v4254_v6 = vpop.f32.mrf.mxu1 }
 0xaee   :  { %v4416_v43 = vpack.c.bf16 %v4395_v9, %v4392_v42  ;;  %8270 = vmatprep.subr.bf16.mxu1 %v11312_v18  ;;  %v4275_v33 = vpack.c.bf16 %v4254_v6, %v4251_v50 }
 0xaef   :  { %v8181_v49 = vpop.f32.mrf.mxu0  ;;  %v8151_v44 = vpop.f32.mrf.mxu1 }
 0xaf0   :  { %8215 = vmatmul.mubr.bf16.gmra.mxu1 %v4416_v43  ;;  %8251 = vmatmul.mubr.bf16.gmra.mxu0 %v4275_v33 }
 0xaf1   :  { %8271 = vmatpush3.bf16.msra.mxu1 %v10788_v63  ;;  %v4400_v37 = vpop.f32.mrf.mxu0  ;;  %8218 = vmatprep.mubr.msk.bf16.mxu1 %vm9191_vm3, %v11312_v18  ;;  %v4259_v56 = vpop.f32.mrf.mxu1 }
 0xaf2   :  { %8254 = vmatprep.mubr.msk.bf16.mxu0 %vm9191_vm3, %v11312_v18  ;;  %8328 = vmatprep.subr.bf16.mxu1 %v11312_v18 }
 0xaf3   :  { %v8184_v41 = vpop.f32.mrf.mxu0  ;;  %v8154_v57 = vpop.f32.mrf.mxu1 }
 0xaf5   :  { %v4403_v53 = vpop.f32.mrf.mxu0  ;;  %v4262_v62 = vpop.f32.mrf.mxu1 }
 0xaf6   :  { %v4417_v17 = vpack.c.bf16 %v4403_v53, %v4400_v37  ;;  %v4276_v22 = vpack.c.bf16 %v4262_v62, %v4259_v56 }
 0xaf7   :  { %v8185_v0 = vpop.f32.mrf.mxu0  ;;  %v8155_v10 = vpop.f32.mrf.mxu1 }
 0xaf8   :  { %8219 = vmatmul.mubr.bf16.gmra.mxu1 %v4417_v17  ;;  %8255 = vmatmul.mubr.bf16.gmra.mxu0 %v4276_v22 }
 0xaf9   :  { %v4408_v3 = vpop.f32.mrf.mxu0  ;;  %8222 = vmatprep.mubr.msk.bf16.mxu1 %vm9191_vm3, %v11312_v18  ;;  %v4267_v7 = vpop.f32.mrf.mxu1  ;;  %8258 = vmatprep.mubr.msk.bf16.mxu0 %vm9191_vm3, %v11312_v18 }
 0xafa   :  { %v4418_v34 = vpack.c.bf16 %v4408_v3, %v4408_v3  ;;  %v4277_v28 = vpack.c.bf16 %v4267_v7, %v4267_v7 }
 0xafb   :  { %v8188_v24 = vpop.f32.mrf.mxu0  ;;  %v8158_v5 = vpop.f32.mrf.mxu1 }
 0xafd   :  { %v4411_v38 = vpop.f32.mrf.mxu0  ;;  %v4270_v35 = vpop.f32.mrf.mxu1 }
 0xaff   :  { %v8189_v47 = vpop.f32.mrf.mxu0  ;;  %v8159_v51 = vpop.f32.mrf.mxu1 }
 0xb00   :  { %8223 = vmatmul.mubr.bf16.gmra.mxu1 %v4418_v34  ;;  %8259 = vmatmul.mubr.bf16.gmra.mxu0 %v4277_v28 }
 0xb01   :  { %8272 = vmatprep.mubr.msk.bf16.mxu1 %vm9191_vm3, %v11312_v18  ;;  %8308 = vmatprep.mubr.msk.bf16.mxu0 %vm9191_vm3, %v11312_v18 }
 0xb08   :  { %8273 = vmatmul.mubr.msk.bf16.vlgmr.msra.gmra.mxu1 %vm4182_vm5, %v9044_v20 }
 0xb09   :  { %8329 = vmatpush3.bf16.msra.mxu1 %v10803_v19  ;;  %8276 = vmatprep.mubr.msk.bf16.mxu1 %vm9191_vm3, %v11312_v18  ;;  %v9046_v19 = vld [vmem:[#allocation4 + $0x58] sm:$0xff]  }
 0xb0a   :  { %8330 = vmatprep.subr.bf16.mxu1 %v11312_v18 }
 0xb0d   :  { %8331 = vmatpush3.bf16.msra.mxu1 %v10800_v8  ;;  %v9048_v8 = vld [vmem:[#allocation4 + $0x68] ss:$0 sps:$4 sm:$0xff]  }
 0xb0e   :  { %8332 = vmatprep.subr.bf16.mxu1 %v11312_v18 }
 0xb10   :  { %8277 = vmatmul.mubr.msk.bf16.gmra.mxu1 %vm4182_vm5, %v9045_v39 }
 0xb11   :  { %8333 = vmatpush3.bf16.msra.mxu1 %v10796_v27  ;;  %8280 = vmatprep.mubr.msk.bf16.mxu1 %vm9191_vm3, %v11312_v18  ;;  %v9047_v27 = vld [vmem:[#allocation4 + $0x60] sm:$0xff]  }
 0xb12   :  { %8334 = vmatprep.subr.bf16.mxu1 %v11312_v18 }
 0xb15   :  { %8335 = vmatpush3.bf16.msra.mxu1 %v10792_v21  ;;  %v9049_v21 = vld [vmem:[#allocation4 + $0x6c] sm:$0xff]  }
 0xb16   :  { %8336 = vmatprep.subr.bf16.mxu1 %v11312_v18 }
 0xb18   :  { %8281 = vmatmul.mubr.msk.bf16.gmra.mxu1 %vm4182_vm5, %v9046_v19 }
 0xb19   :  { %8337 = vmatpush3.bf16.msra.mxu1 %v10788_v63  ;;  %8284 = vmatprep.mubr.msk.bf16.mxu1 %vm9191_vm3, %v11312_v18  ;;  %v9055_v63 = vld [vmem:[#allocation6 + $0xb0] sm:$0xff]  }
 0xb1a   :  { %8394 = vmatprep.subr.mxu1 %v11312_v18  ;;  %8295 = vmatpush3.bf16.msra.mxu0 %v9055_v63  ;;  %v9062_v63 = vld [vmem:[#allocation6 + $0xf8] sm:$0xff]  }
 0xb1b   :  { %8296 = vmatprep.subr.bf16.mxu0 %v11312_v18 }
 0xb1e   :  { %8297 = vmatpush3.bf16.msra.mxu0 %v9056_v32 }
 0xb1f   :  { %8298 = vmatprep.subr.bf16.mxu0 %v11312_v18 }
 0xb20   :  { %8285 = vmatmul.mubr.msk.bf16.gmra.mxu1 %vm4182_vm5, %v9047_v27 }
 0xb21   :  { %8288 = vmatprep.mubr.msk.bf16.mxu1 %vm9191_vm3, %v11312_v18 }
 0xb22   :  { %8299 = vmatpush3.bf16.msra.mxu0 %v9057_v12 }
 0xb23   :  { %8300 = vmatprep.subr.bf16.mxu0 %v11312_v18 }
 0xb26   :  { %8301 = vmatpush3.bf16.msra.mxu0 %v9058_v11 }
 0xb27   :  { %8302 = vmatprep.subr.bf16.mxu0 %v11312_v18 }
 0xb28   :  { %8289 = vmatmul.mubr.msk.bf16.gmra.mxu1 %vm4182_vm5, %v9048_v8 }
 0xb29   :  { %8338 = vmatprep.mubr.msk.bf16.mxu1 %vm9191_vm3, %v11312_v18 }
 0xb2a   :  { %8303 = vmatpush3.bf16.msra.mxu0 %v9059_v29 }
 0xb2b   :  { %8304 = vmatprep.subr.bf16.mxu0 %v11312_v18 }
 0xb2e   :  { %8305 = vmatpush3.bf16.msra.mxu0 %v9060_v25 }
 0xb2f   :  { %8306 = vmatprep.subr.bf16.mxu0 %v11312_v18 }
 0xb30   :  { %8339 = vmatmul.mubr.msk.bf16.vlgmr.msra.gmra.mxu1 %vm4182_vm5, %v9049_v21 }
 0xb31   :  { %8342 = vmatprep.mubr.msk.bf16.mxu1 %vm9191_vm3, %v11312_v18 }
 0xb32   :  { %8307 = vmatpush3.bf16.msra.mxu0 %v9061_v15 }
 0xb33   :  { %8358 = vmatprep.subr.bf16.mxu0 %v11312_v18 }
 0xb38   :  { %8343 = vmatmul.mubr.msk.bf16.gmra.mxu1 %vm4182_vm5, %v9050_v60 }
 0xb39   :  { %8346 = vmatprep.mubr.msk.bf16.mxu1 %vm9191_vm3, %v11312_v18 }
 0xb40   :  { %8347 = vmatmul.mubr.msk.bf16.gmra.mxu1 %vm4182_vm5, %v9051_v1  ;;  %v9063_v1 = vld [vmem:[#allocation6 + $0xf0] sm:$0xff]  }
 0xb41   :  { %8350 = vmatprep.mubr.msk.bf16.mxu1 %vm9191_vm3, %v11312_v18 }
 0xb48   :  { %8351 = vmatmul.mubr.msk.bf16.gmra.mxu1 %vm4182_vm5, %v9052_v36  ;;  %v9064_v36 = vld [vmem:[#allocation6 + $0xe8] sm:$0xff]  }
 0xb49   :  { %8354 = vmatprep.mubr.msk.bf16.mxu1 %vm9191_vm3, %v11312_v18 }
 0xb50   :  { %8355 = vmatmul.mubr.msk.bf16.gmra.mxu1 %vm4182_vm5, %v9053_v40 }
 0xb51   :  { %8426 = vmatprep.mubr.msk.f32.mxu1 %vm9191_vm3, %v11312_v18 }
 0xba0   :  { %v4518_v23 = vpop.f32.mrf.mxu1  ;;  %v4638_v31 = vpop.f32.mrf.mxu0 }
 0xba1   :  { %v10949_v2 = vadd.f32 %v4638_v31, %v4518_v23  ;;  %v9065_v23 = vld [vmem:[#allocation6 + $0xe0] sm:$0xff]  }
 0xba2   :  { %v8208_v55 = vpop.f32.mrf.mxu1  ;;  %v8244_v13 = vpop.f32.mrf.mxu0 }
 0xba3   :  { %v9066_v13 = vld [vmem:[#allocation6 + $0xd8] sm:$0xff]  }
 0xba4   :  { %v4521_v61 = vpop.f32.mrf.mxu1  ;;  %v4641_v14 = vpop.f32.mrf.mxu0 }
 0xba5   :  { %v10951_v54 = vadd.f32 %v4641_v14, %v4521_v61 }
 0xba6   :  { %v8209_v52 = vpop.f32.mrf.mxu1  ;;  %v8245_v58 = vpop.f32.mrf.mxu0 }
 0xba7   :  { %v9067_v58 = vld [vmem:[#allocation6 + $0xd0] sm:$0xff]  }
 0xba8   :  { %v4526_v4 = vpop.f32.mrf.mxu1  ;;  %v4646_v46 = vpop.f32.mrf.mxu0 }
 0xba9   :  { %v10953_v30 = vadd.f32 %v4646_v46, %v4526_v4 }
 0xbaa   :  { %v8212_v26 = vpop.f32.mrf.mxu1  ;;  %v8248_v45 = vpop.f32.mrf.mxu0 }
 0xbab   :  { %v9068_v26 = vld [vmem:[#allocation6 + $0xc8] sm:$0xff]  }
 0xbac   :  { %v4529_v42 = vpop.f32.mrf.mxu1  ;;  %v4649_v50 = vpop.f32.mrf.mxu0 }
 0xbad   :  { %v10955_v16 = vadd.f32 %v4649_v50, %v4529_v42 }
 0xbae   :  { %v8213_v59 = vpop.f32.mrf.mxu1  ;;  %v8249_v9 = vpop.f32.mrf.mxu0 }
 0xbaf   :  { %v9069_v59 = vld [vmem:[#allocation6 + $0xc0] sm:$0xff]  }
 0xbb0   :  { %v4534_v6 = vpop.f32.mrf.mxu1  ;;  %v4654_v43 = vpop.f32.mrf.mxu0 }
 0xbb1   :  { %v10957_v33 = vadd.f32 %v4654_v43, %v4534_v6 }
 0xbb2   :  { %v8216_v49 = vpop.f32.mrf.mxu1  ;;  %v8252_v44 = vpop.f32.mrf.mxu0 }
 0xbb4   :  { %v4537_v37 = vpop.f32.mrf.mxu1  ;;  %v4657_v56 = vpop.f32.mrf.mxu0 }
 0xbb5   :  { %v10959_v41 = vadd.f32 %v4657_v56, %v4537_v37 }
 0xbb6   :  { %v8217_v57 = vpop.f32.mrf.mxu1  ;;  %v8253_v53 = vpop.f32.mrf.mxu0 }
 0xbb8   :  { %v4542_v62 = vpop.f32.mrf.mxu1  ;;  %v4662_v17 = vpop.f32.mrf.mxu0 }
 0xbb9   :  { %v10961_v22 = vadd.f32 %v4662_v17, %v4542_v62 }
 0xbba   :  { %v8220_v0 = vpop.f32.mrf.mxu1  ;;  %v8256_v10 = vpop.f32.mrf.mxu0 }
 0xbbc   :  { %v4545_v3 = vpop.f32.mrf.mxu1  ;;  %v4665_v7 = vpop.f32.mrf.mxu0 }
 0xbbd   :  { %v10963_v24 = vadd.f32 %v4665_v7, %v4545_v3 }
 0xbbe   :  { %v8221_v5 = vpop.f32.mrf.mxu1  ;;  %v8257_v34 = vpop.f32.mrf.mxu0 }
 0xbc0   :  { %v4550_v28 = vpop.f32.mrf.mxu1  ;;  %v4670_v38 = vpop.f32.mrf.mxu0 }
 0xbc1   :  { %v10965_v35 = vadd.f32 %v4670_v38, %v4550_v28 }
 0xbc2   :  { %v8224_v47 = vpop.f32.mrf.mxu1  ;;  %v8260_v51 = vpop.f32.mrf.mxu0 }
 0xbc4   :  { %v4553_v20 = vpop.f32.mrf.mxu1  ;;  %v4673_v39 = vpop.f32.mrf.mxu0 }
 0xbc6   :  { %v8225_v19 = vpop.f32.mrf.mxu1  ;;  %v8261_v27 = vpop.f32.mrf.mxu0 }
 0xbc8   :  { %v4758_v8 = vpop.f32.mrf.mxu1 }
 0xbca   :  { %v8274_v21 = vpop.f32.mrf.mxu1 }
 0xbcc   :  { %v4761_v48 = vpop.f32.mrf.mxu1 }
 0xbcd   :  { %v4796_v60 = vpack.c.bf16 %v4761_v48, %v4758_v8 }
 0xbce   :  { %v8275_v32 = vpop.f32.mrf.mxu1 }
 0xbcf   :  { %8309 = vmatmul.mubr.bf16.vlgmr.msra.gmra.mxu0 %v4796_v60  ;;  %v5267_v60 = vld [vmem:[#allocation7 + $0x78] sm:$0xff]  ;;  %v5266_v32 = vld [vmem:[#allocation7 + $0x70] sm:$0xff] }
 0xbd0   :  { %v4766_v12 = vpop.f32.mrf.mxu1  ;;  %8312 = vmatprep.mubr.msk.bf16.mxu0 %vm9191_vm3, %v11312_v18  ;;  %8359 = vmatpush3.bf16.msra.mxu0 %v9062_v63 }
 0xbd1   :  { %8360 = vmatprep.subr.bf16.mxu0 %v11312_v18 }
 0xbd2   :  { %v8278_v11 = vpop.f32.mrf.mxu1 }
 0xbd3   :  { %v5283_v11 = vld [vmem:[#allocation7 + $0xf0] sm:$0xff] }
 0xbd4   :  { %v4769_v29 = vpop.f32.mrf.mxu1  ;;  %8361 = vmatpush3.bf16.msra.mxu0 %v9063_v1  ;;  %v5265_v1 = vld [vmem:[#allocation7 + $0x68] sm:$0xff] }
 0xbd5   :  { %v4797_v25 = vpack.c.bf16 %v4769_v29, %v4766_v12  ;;  %8362 = vmatprep.subr.bf16.mxu0 %v11312_v18  ;;  %v5284_v12 = vld [vmem:[#allocation7 + $0xf8] sm:$0xff]  ;;  %v5264_v29 = vld [vmem:[#allocation7 + $0x60] sm:$0xff] }
 0xbd6   :  { %v8279_v15 = vpop.f32.mrf.mxu1  ;;  %8395 = vmatpush3.msra.mxu1 %v5284_v12 }
 0xbd7   :  { %8313 = vmatmul.mubr.bf16.gmra.mxu0 %v4797_v25  ;;  %8396 = vmatprep.subr.mxu1 %v11312_v18  ;;  %v5263_v25 = vld [vmem:[#allocation7 + $0x58] sm:$0xff]  ;;  %v5281_v15 = vld [vmem:[#allocation7 + $0xe0] sm:$0xff] }
 0xbd8   :  { %v4774_v40 = vpop.f32.mrf.mxu1  ;;  %8316 = vmatprep.mubr.msk.bf16.mxu0 %vm9191_vm3, %v11312_v18  ;;  %8363 = vmatpush3.bf16.msra.mxu0 %v9064_v36  ;;  %v5282_v36 = vld [vmem:[#allocation7 + $0xe8] sm:$0xff] }
 0xbd9   :  { %8364 = vmatprep.subr.bf16.mxu0 %v11312_v18  ;;  %8397 = vmatpush3.msra.mxu1 %v5283_v11 }
 0xbda   :  { %v8282_v31 = vpop.f32.mrf.mxu1  ;;  %8398 = vmatprep.subr.mxu1 %v11312_v18 }
 0xbdb   :  { %8399 = vmatpush3.msra.mxu1 %v5282_v36  ;;  %v5261_v31 = vld [vmem:[#allocation7 + $0x48] sm:$0xff] }
 0xbdc   :  { %v4777_v55 = vpop.f32.mrf.mxu1  ;;  %8365 = vmatpush3.bf16.msra.mxu0 %v9065_v23  ;;  %8400 = vmatprep.subr.mxu1 %v11312_v18  ;;  %v5280_v23 = vld [vmem:[#allocation7 + $0xd8] sm:$0xff] }
 0xbdd   :  { %v4798_v61 = vpack.c.bf16 %v4777_v55, %v4774_v40  ;;  %8366 = vmatprep.subr.bf16.mxu0 %v11312_v18  ;;  %v5262_v40 = vld [vmem:[#allocation7 + $0x50] sm:$0xff]  ;;  %8401 = vmatpush3.msra.mxu1 %v5281_v15  ;;  %v5529_v15 = vld [vmem:[#allocation7 + $0x1f8] sm:$0xff] }
 0xbde   :  { %v8283_v14 = vpop.f32.mrf.mxu1  ;;  %8402 = vmatprep.subr.mxu1 %v11312_v18  ;;  %v5279_v55 = vld [vmem:[#allocation7 + $0xd0] sm:$0xff] }
 0xbdf   :  { %8317 = vmatmul.mubr.bf16.gmra.mxu0 %v4798_v61  ;;  %8403 = vmatpush3.msra.mxu1 %v5280_v23  ;;  %v5278_v61 = vld [vmem:[#allocation7 + $0xc8] sm:$0xff]  ;;  %v5259_v14 = vld [vmem:[#allocation7 + $0x38] sm:$0xff] }
 0xbe0   :  { %v4782_v52 = vpop.f32.mrf.mxu1  ;;  %8320 = vmatprep.mubr.msk.bf16.mxu0 %vm9191_vm3, %v11312_v18  ;;  %8367 = vmatpush3.bf16.msra.mxu0 %v9066_v13  ;;  %v5260_v13 = vld [vmem:[#allocation7 + $0x40] sm:$0xff] }
 0xbe1   :  { %8368 = vmatprep.subr.bf16.mxu0 %v11312_v18  ;;  %8404 = vmatprep.subr.mxu1 %v11312_v18 }
 0xbe2   :  { %v8286_v4 = vpop.f32.mrf.mxu1  ;;  %8405 = vmatpush3.msra.mxu1 %v5279_v55 }
 0xbe3   :  { %8406 = vmatprep.subr.mxu1 %v11312_v18  ;;  %v5276_v4 = vld [vmem:[#allocation7 + $0xb8] sm:$0xff] }
 0xbe4   :  { %v4785_v46 = vpop.f32.mrf.mxu1  ;;  %8369 = vmatpush3.bf16.msra.mxu0 %v9067_v58  ;;  %8407 = vmatpush3.msra.mxu1 %v5278_v61  ;;  %v5258_v58 = vld [vmem:[#allocation7 + $0x30] sm:$0xff]  ;;  %v5441_v61 = vld [vmem:[#allocation7 + $0x178] sm:$0xff] }
 0xbe5   :  { %v4799_v45 = vpack.c.bf16 %v4785_v46, %v4782_v52  ;;  %8370 = vmatprep.subr.bf16.mxu0 %v11312_v18  ;;  %8408 = vmatprep.subr.mxu1 %v11312_v18  ;;  %v5277_v52 = vld [vmem:[#allocation7 + $0xc0] sm:$0xff]  ;;  %v5257_v46 = vld [vmem:[#allocation7 + $0x28] sm:$0xff] }
 0xbe6   :  { %v8287_v42 = vpop.f32.mrf.mxu1  ;;  %8409 = vmatpush3.msra.mxu1 %v5277_v52 }
 0xbe7   :  { %8321 = vmatmul.mubr.bf16.gmra.mxu0 %v4799_v45  ;;  %8410 = vmatprep.subr.mxu1 %v11312_v18  ;;  %v5256_v45 = vld [vmem:[#allocation7 + $0x20] sm:$0xff]  ;;  %v5274_v42 = vld [vmem:[#allocation7 + $0xa8] sm:$0xff] }
 0xbe8   :  { %v4790_v50 = vpop.f32.mrf.mxu1  ;;  %8324 = vmatprep.mubr.msk.bf16.mxu0 %vm9191_vm3, %v11312_v18  ;;  %8371 = vmatpush3.bf16.msra.mxu0 %v9068_v26  ;;  %v5275_v26 = vld [vmem:[#allocation7 + $0xb0] sm:$0xff] }
 0xbe9   :  { %8372 = vmatprep.subr.bf16.mxu0 %v11312_v18  ;;  %v4800_v43 = vpack.c.bf16 %v4790_v50, %v4790_v50  ;;  %8411 = vmatpush3.msra.mxu1 %v5276_v4  ;;  %v5255_v50 = vld [vmem:[#allocation7 + $0x18] sm:$0xff]  ;;  %v5440_v4 = vld [vmem:[#allocation7 + $0x170] sm:$0xff] }
 0xbea   :  { %v8290_v9 = vpop.f32.mrf.mxu1  ;;  %8412 = vmatprep.subr.mxu1 %v11312_v18 }
 0xbeb   :  { %8413 = vmatpush3.msra.mxu1 %v5275_v26  ;;  %v5254_v9 = vld [vmem:[#allocation7 + $0x10] sm:$0xff] }
 0xbec   :  { %v4793_v6 = vpop.f32.mrf.mxu1  ;;  %8373 = vmatpush3.bf16.msra.mxu0 %v9069_v59  ;;  %8414 = vmatprep.subr.mxu1 %v11312_v18  ;;  %v5273_v59 = vld [vmem:[#allocation7 + $0xa0] sm:$0xff] }
 0xbed   :  { %8429 = vmatprep.subr.mxu0 %v11312_v18  ;;  %8415 = vmatpush3.msra.mxu1 %v5274_v42  ;;  %v5272_v6 = vld [vmem:[#allocation7 + $0x98] sm:$0xff] }
 0xbee   :  { %v8291_v49 = vpop.f32.mrf.mxu1  ;;  %8416 = vmatprep.subr.mxu1 %v11312_v18 }
 0xbef   :  { %8325 = vmatmul.mubr.bf16.gmra.mxu0 %v4800_v43  ;;  %8417 = vmatpush3.msra.mxu1 %v5273_v59  ;;  %v5253_v43 = vld [vmem:[#allocation7 + $0x8] sm:$0xff]  ;;  %v5271_v49 = vld [vmem:[#allocation7 + $0x90] sm:$0xff] }
 0xbf0   :  { %v5029_v44 = vpop.f32.mrf.mxu1  ;;  %8374 = vmatprep.mubr.msk.bf16.mxu0 %vm9191_vm3, %v11312_v18  ;;  %8418 = vmatprep.subr.mxu1 %v11312_v18 }
 0xbf1   :  { %8419 = vmatpush3.msra.mxu1 %v5272_v6 }
 0xbf2   :  { %v8340_v37 = vpop.f32.mrf.mxu1  ;;  %8420 = vmatprep.subr.mxu1 %v11312_v18 }
 0xbf3   :  { %8421 = vmatpush3.msra.mxu1 %v5271_v49  ;;  %v5270_v37 = vld [vmem:[#allocation7 + $0x88] sm:$0xff]  ;;  %v5524_v49 = vld [vmem:[#allocation7 + $0x1d0] sm:$0xff] }
 0xbf4   :  { %v5032_v56 = vpop.f32.mrf.mxu1  ;;  %8422 = vmatprep.subr.mxu1 %v11312_v18 }
 0xbf5   :  { %v5067_v57 = vpack.c.bf16 %v5032_v56, %v5029_v44  ;;  %v5252_v44 = vld [vmem:[#allocation7] sm:$0xff]  ;;  %8423 = vmatpush3.msra.mxu1 %v5270_v37 }
 0xbf6   :  { %v8341_v53 = vpop.f32.mrf.mxu1  ;;  %8424 = vmatprep.subr.mxu1 %v11312_v18  ;;  %v5269_v56 = vld [vmem:[#allocation7 + $0x80] sm:$0xff] }
 0xbf7   :  { %8375 = vmatmul.mubr.bf16.vlgmr.msra.gmra.mxu0 %v5067_v57  ;;  %8425 = vmatpush3.msra.mxu1 %v5269_v56  ;;  %v5437_v56 = vld [vmem:[#allocation7 + $0x158] sm:$0xff] }
 0xbf8   :  { %v5037_v62 = vpop.f32.mrf.mxu1  ;;  %8378 = vmatprep.mubr.msk.bf16.mxu0 %vm9191_vm3, %v11312_v18  ;;  %8430 = vmatpush3.msra.mxu0 %v5267_v60  ;;  %v11039_v60 = vld [vmem:[%s11297_s8] ss:$0 sm:$0xff] }
 0xbf9   :  { %8431 = vmatprep.subr.mxu0 %v11312_v18  ;;  %8464 = vmatprep.subr.mxu1 %v11312_v18 }
 0xbfa   :  { %v8344_v17 = vpop.f32.mrf.mxu1  ;;  %8432 = vmatpush3.msra.mxu0 %v5266_v32 }
 0xbfb   :  { %8433 = vmatprep.subr.mxu0 %v11312_v18 }
 0xbfc   :  { %v5040_v0 = vpop.f32.mrf.mxu1  ;;  %8434 = vmatpush3.msra.mxu0 %v5265_v1 }
 0xbfd   :  { %v5068_v10 = vpack.c.bf16 %v5040_v0, %v5037_v62  ;;  %8435 = vmatprep.subr.mxu0 %v11312_v18 }
 0xbfe   :  { %v8345_v3 = vpop.f32.mrf.mxu1  ;;  %8436 = vmatpush3.msra.mxu0 %v5264_v29 }
 0xbff   :  { %8379 = vmatmul.mubr.bf16.gmra.mxu0 %v5068_v10  ;;  %8437 = vmatprep.subr.mxu0 %v11312_v18 }
 0xc00   :  { %v5045_v7 = vpop.f32.mrf.mxu1  ;;  %8382 = vmatprep.mubr.msk.bf16.mxu0 %vm9191_vm3, %v11312_v18  ;;  %8438 = vmatpush3.msra.mxu0 %v5263_v25 }
 0xc01   :  { %8439 = vmatprep.subr.mxu0 %v11312_v18 }
 0xc02   :  { %v8348_v5 = vpop.f32.mrf.mxu1  ;;  %8440 = vmatpush3.msra.mxu0 %v5262_v40 }
 0xc03   :  { %8441 = vmatprep.subr.mxu0 %v11312_v18 }
 0xc04   :  { %v5048_v34 = vpop.f32.mrf.mxu1  ;;  %8442 = vmatpush3.msra.mxu0 %v5261_v31  ;;  %v5528_v31 = vld [vmem:[#allocation7 + $0x1f0] sm:$0xff] }
 0xc05   :  { %v5069_v28 = vpack.c.bf16 %v5048_v34, %v5045_v7  ;;  %8443 = vmatprep.subr.mxu0 %v11312_v18 }
 0xc06   :  { %v8349_v38 = vpop.f32.mrf.mxu1  ;;  %8444 = vmatpush3.msra.mxu0 %v5260_v13 }
 0xc07   :  { %8383 = vmatmul.mubr.bf16.gmra.mxu0 %v5069_v28  ;;  %8445 = vmatprep.subr.mxu0 %v11312_v18 }
 0xc08   :  { %v5053_v47 = vpop.f32.mrf.mxu1  ;;  %8386 = vmatprep.mubr.msk.bf16.mxu0 %vm9191_vm3, %v11312_v18  ;;  %8446 = vmatpush3.msra.mxu0 %v5259_v14  ;;  %v5527_v14 = vld [vmem:[#allocation7 + $0x1e8] sm:$0xff] }
 0xc09   :  { %8447 = vmatprep.subr.mxu0 %v11312_v18 }
 0xc0a   :  { %v8352_v51 = vpop.f32.mrf.mxu1  ;;  %8448 = vmatpush3.msra.mxu0 %v5258_v58 }
 0xc0b   :  { %8449 = vmatprep.subr.mxu0 %v11312_v18 }
 0xc0c   :  { %v5056_v20 = vpop.f32.mrf.mxu1  ;;  %8450 = vmatpush3.msra.mxu0 %v5257_v46  ;;  %v5526_v46 = vld [vmem:[#allocation7 + $0x1e0] sm:$0xff] }
 0xc0d   :  { %v5070_v39 = vpack.c.bf16 %v5056_v20, %v5053_v47  ;;  %8451 = vmatprep.subr.mxu0 %v11312_v18 }
 0xc0e   :  { %v8353_v19 = vpop.f32.mrf.mxu1  ;;  %8452 = vmatpush3.msra.mxu0 %v5256_v45 }
 0xc0f   :  { %8387 = vmatmul.mubr.bf16.gmra.mxu0 %v5070_v39  ;;  %8453 = vmatprep.subr.mxu0 %v11312_v18 }
 0xc10   :  { %v5061_v27 = vpop.f32.mrf.mxu1  ;;  %8390 = vmatprep.mubr.msk.bf16.mxu0 %vm9191_vm3, %v11312_v18  ;;  %8454 = vmatpush3.msra.mxu0 %v5255_v50  ;;  %v5525_v50 = vld [vmem:[#allocation7 + $0x1d8] sm:$0xff] }
 0xc11   :  { %v5071_v21 = vpack.c.bf16 %v5061_v27, %v5061_v27  ;;  %8455 = vmatprep.subr.mxu0 %v11312_v18 }
 0xc12   :  { %v8356_v8 = vpop.f32.mrf.mxu1  ;;  %8456 = vmatpush3.msra.mxu0 %v5254_v9 }
 0xc13   :  { %8457 = vmatprep.subr.mxu0 %v11312_v18 }
 0xc14   :  { %v5064_v48 = vpop.f32.mrf.mxu1  ;;  %8458 = vmatpush3.msra.mxu0 %v5253_v43  ;;  %v5438_v43 = vld [vmem:[#allocation7 + $0x160] sm:$0xff] }
 0xc15   :  { %8459 = vmatprep.subr.mxu0 %v11312_v18 }
 0xc16   :  { %v8357_v63 = vpop.f32.mrf.mxu1  ;;  %8460 = vmatpush3.msra.mxu0 %v5252_v44 }
 0xc17   :  { %8391 = vmatmul.mubr.bf16.gmra.mxu0 %v5071_v21  ;;  %8499 = vmatprep.subr.mxu0 %v11312_v18 }
 0xc18   :  { %8461 = vmatprep.mubr.msk.f32.mxu0 %vm9191_vm3, %v11312_v18 }
 0xc8f   :  { %v4900_v57 = vpop.f32.mrf.mxu0 }
 0xc90   :  { %v4938_v48 = vadd.f32 %v4900_v57, %v10949_v2  ;;  %v5523_v57 = vld [vmem:[#allocation7 + $0x1c8] sm:$0xff] }
 0xc91   :  { %v8310_v53 = vpop.f32.mrf.mxu0 }
 0xc93   :  { %v4903_v62 = vpop.f32.mrf.mxu0 }
 0xc94   :  { %v4939_v1 = vadd.f32 %v4903_v62, %v10951_v54 }
 0xc95   :  { %v8311_v17 = vpop.f32.mrf.mxu0 }
 0xc97   :  { %v4908_v0 = vpop.f32.mrf.mxu0 }
 0xc98   :  { %v4940_v23 = vadd.f32 %v4908_v0, %v10953_v30  ;;  %v5436_v0 = vld [vmem:[#allocation7 + $0x150] sm:$0xff] }
 0xc99   :  { %v8314_v10 = vpop.f32.mrf.mxu0 }
 0xc9a   :  { %v5522_v10 = vld [vmem:[#allocation7 + $0x1c0] sm:$0xff] }
 0xc9b   :  { %v4911_v3 = vpop.f32.mrf.mxu0 }
 0xc9c   :  { %v4941_v52 = vadd.f32 %v4911_v3, %v10955_v16  ;;  %v5439_v16 = vld [vmem:[#allocation7 + $0x168] sm:$0xff] }
 0xc9d   :  { %v8315_v7 = vpop.f32.mrf.mxu0 }
 0xc9f   :  { %v4916_v5 = vpop.f32.mrf.mxu0 }
 0xca0   :  { %v4942_v9 = vadd.f32 %v4916_v5, %v10957_v33  ;;  %v5435_v5 = vld [vmem:[#allocation7 + $0x148] sm:$0xff] }
 0xca1   :  { %v8318_v34 = vpop.f32.mrf.mxu0 }
 0xca2   :  { %v5521_v34 = vld [vmem:[#allocation7 + $0x1b8] sm:$0xff] }
 0xca3   :  { %v11027_v28 = vpop.f32.mrf.mxu0 }
 0xca4   :  { %v4943_v62 = vadd.f32 %v11027_v28, %v10959_v41 }
 0xca5   :  { %v8319_v38 = vpop.f32.mrf.mxu0 }
 0xca7   :  { %v11029_v47 = vpop.f32.mrf.mxu0 }
 0xca8   :  { %v4944_v38 = vadd.f32 %v11029_v47, %v10961_v22 }
 0xca9   :  { %v8322_v51 = vpop.f32.mrf.mxu0 }
 0xcab   :  { %v11031_v20 = vpop.f32.mrf.mxu0 }
 0xcad   :  { %v8323_v39 = vpop.f32.mrf.mxu0 }
 0xcae   :  { %v5434_v39 = vld [vmem:[#allocation7 + $0x140] sm:$0xff] }
 0xcaf   :  { %v11033_v19 = vpop.f32.mrf.mxu0 }
 0xcb1   :  { %v8326_v27 = vpop.f32.mrf.mxu0 }
 0xcb2   :  { %v5520_v27 = vld [vmem:[#allocation7 + $0x1b0] sm:$0xff] }
 0xcb3   :  { %v4935_v8 = vpop.f32.mrf.mxu0 }
 0xcb5   :  { %v8327_v21 = vpop.f32.mrf.mxu0 }
 0xcb6   :  { %v5433_v21 = vld [vmem:[#allocation7 + $0x138] sm:$0xff] }
 0xcb7   :  { %v5171_v63 = vpop.f32.mrf.mxu0 }
 0xcb8   :  { %v5209_v32 = vadd.f32 %v5171_v63, %v4938_v48  ;;  %v5519_v48 = vld [vmem:[#allocation7 + $0x1a8] sm:$0xff] }
 0xcb9   :  { %v8376_v12 = vpop.f32.mrf.mxu0 }
 0xcba   :  { %v5225_v11 = vadd.f32 %v11039_v60, %v5209_v32  ;;  %v4945_v32 = vadd.f32 %v11031_v20, %v10963_v24 }
 0xcbb   :  { %v5174_v29 = vpop.f32.mrf.mxu0 }
 0xcbc   :  { %v5234_v36 = vmax.f32 %v5225_v11, 0.0  ;;  %v5210_v25 = vadd.f32 %v5174_v29, %v4939_v1  ;;  %v5432_v1 = vld [vmem:[#allocation7 + $0x130] sm:$0xff]  ;;  %v5518_v11 = vld [vmem:[#allocation7 + $0x1a0] sm:$0xff] }
 0xcbd   :  { %v8377_v40 = vpop.f32.mrf.mxu0 }
 0xcbe   :  { %5243 = vst [vmem:[%s11303_s14] sm:$0xff] %v5234_v36  ;;  %v5226_v2 = vadd.f32 %v11039_v60, %v5210_v25  ;;  %8462 = vmatmul.mubr.f32.vlgmr.msra.gmra.mxu0 %v5234_v36  ;;  %v5431_v36 = vld [vmem:[#allocation7 + $0x128] sm:$0xff]  ;;  %v5517_v25 = vld [vmem:[#allocation7 + $0x198] sm:$0xff]  ;;  %v4946_v40 = vadd.f32 %v11033_v19, %v10965_v35 }
 0xcbf   :  { %8500 = vmatpush3.msra.mxu0 %v5529_v15  ;;  %v5179_v55 = vpop.f32.mrf.mxu0  ;;  %8531 = vmatprep.mubr.msk.f32.mxu0 %vm9191_vm3, %v11312_v18 }
 0xcc0   :  { %v5235_v54 = vmax.f32 %v5226_v2, 0.0  ;;  %v5211_v13 = vadd.f32 %v5179_v55, %v4940_v23  ;;  %8501 = vmatprep.subr.mxu0 %v11312_v18  ;;  %v5430_v2 = vld [vmem:[#allocation7 + $0x120] sm:$0xff] }
 0xcc1   :  { %8502 = vmatpush3.msra.mxu0 %v5528_v31  ;;  %v8380_v30 = vpop.f32.mrf.mxu0  ;;  %v5516_v31 = vld [vmem:[#allocation7 + $0x190] sm:$0xff] }
 0xcc2   :  { %5244 = vst [vmem:[%s11303_s14 + $0x8] sm:$0xff] %v5235_v54  ;;  %v11056_v58 = vadd.f32 %v11039_v60, %v5211_v13  ;;  %8503 = vmatprep.subr.mxu0 %v11312_v18  ;;  %8427 = vmatmul.mubr.f32.vlgmr.msra.gmra.mxu1 %v5235_v54  ;;  %v5429_v54 = vld [vmem:[#allocation7 + $0x118] sm:$0xff]  ;;  %v5515_v13 = vld [vmem:[#allocation7 + $0x188] sm:$0xff]  ;;  %v5428_v30 = vld [vmem:[#allocation7 + $0x110] sm:$0xff] }
 0xcc3   :  { %8465 = vmatpush3.msra.mxu1 %v5441_v61  ;;  %8504 = vmatpush3.msra.mxu0 %v5527_v14  ;;  %v5182_v26 = vpop.f32.mrf.mxu0 }
 0xcc4   :  { %v5236_v45 = vmax.f32 %v11056_v58, 0.0  ;;  %v5212_v42 = vadd.f32 %v5182_v26, %v4941_v52  ;;  %8466 = vmatprep.subr.mxu1 %v11312_v18  ;;  %8505 = vmatprep.subr.mxu0 %v11312_v18  ;;  %v5514_v52 = vld [vmem:[#allocation7 + $0x180] sm:$0xff]  ;;  %v5427_v26 = vld [vmem:[#allocation7 + $0x108] sm:$0xff] }
 0xcc5   :  { %8467 = vmatpush3.msra.mxu1 %v5440_v4  ;;  %8506 = vmatpush3.msra.mxu0 %v5526_v46  ;;  %v8381_v59 = vpop.f32.mrf.mxu0  ;;  %v5614_v58 = vld [vmem:[#allocation7 + $0x260] sm:$0xff] }
 0xcc6   :  { %5245 = vst [vmem:[%s11303_s14 + $0x10] sm:$0xff] %v5236_v45  ;;  %v11069_v6 = vadd.f32 %v11039_v60, %v5212_v42  ;;  %8468 = vmatprep.subr.mxu1 %v11312_v18  ;;  %8507 = vmatprep.subr.mxu0 %v11312_v18  ;;  %v5617_v59 = vld [vmem:[#allocation7 + $0x278] sm:$0xff] }
 0xcc7   :  { %8469 = vmatpush3.msra.mxu1 %v5439_v16  ;;  %8508 = vmatpush3.msra.mxu0 %v5525_v50  ;;  %v5187_v44 = vpop.f32.mrf.mxu0  ;;  %v5426_v16 = vld [vmem:[#allocation7 + $0x100] sm:$0xff]  ;;  %v5704_v50 = vld [vmem:[#allocation7 + $0x2f0] sm:$0xff] }
 0xcc8   :  { %v5237_v33 = vmax.f32 %v11069_v6, 0.0  ;;  %v5213_v37 = vadd.f32 %v5187_v44, %v4942_v9  ;;  %8470 = vmatprep.subr.mxu1 %v11312_v18  ;;  %8509 = vmatprep.subr.mxu0 %v11312_v18  ;;  %v5703_v9 = vld [vmem:[#allocation7 + $0x2e8] sm:$0xff]  ;;  %v5616_v6 = vld [vmem:[#allocation7 + $0x270] sm:$0xff]  ;;  %v5701_v44 = vld [vmem:[#allocation7 + $0x2d8] sm:$0xff] }
 0xcc9   :  { %8471 = vmatpush3.msra.mxu1 %v5438_v43  ;;  %8510 = vmatpush3.msra.mxu0 %v5524_v49  ;;  %v8384_v53 = vpop.f32.mrf.mxu0  ;;  %v5702_v43 = vld [vmem:[#allocation7 + $0x2e0] sm:$0xff]  ;;  %v5615_v49 = vld [vmem:[#allocation7 + $0x268] sm:$0xff] }
 0xcca   :  { %5246 = vst [vmem:[%s11303_s14 + $0x18] sm:$0xff] %v5237_v33  ;;  %v11084_v17 = vadd.f32 %v11039_v60, %v5213_v37  ;;  %8472 = vmatprep.subr.mxu1 %v11312_v18  ;;  %8511 = vmatprep.subr.mxu0 %v11312_v18  ;;  %v5699_v37 = vld [vmem:[#allocation7 + $0x2c8] sm:$0xff] }
 0xccb   :  { %8473 = vmatpush3.msra.mxu1 %v5437_v56  ;;  %8512 = vmatpush3.msra.mxu0 %v5523_v57  ;;  %v5190_v3 = vpop.f32.mrf.mxu0  ;;  %v5612_v56 = vld [vmem:[#allocation7 + $0x250] sm:$0xff]  ;;  %v5698_v57 = vld [vmem:[#allocation7 + $0x2c0] sm:$0xff]  ;;  %v5611_v53 = vld [vmem:[#allocation7 + $0x248] sm:$0xff] }
 0xccc   :  { %v5238_v41 = vmax.f32 %v11084_v17, 0.0  ;;  %v5214_v7 = vadd.f32 %v5190_v3, %v4943_v62  ;;  %8474 = vmatprep.subr.mxu1 %v11312_v18  ;;  %8513 = vmatprep.subr.mxu0 %v11312_v18  ;;  %v5697_v62 = vld [vmem:[#allocation7 + $0x2b8] sm:$0xff]  ;;  %v5790_v17 = vld [vmem:[#allocation7 + $0x360] sm:$0xff] }
 0xccd   :  { %8475 = vmatpush3.msra.mxu1 %v5436_v0  ;;  %8514 = vmatpush3.msra.mxu0 %v5522_v10  ;;  %v8385_v28 = vpop.f32.mrf.mxu0  ;;  %v5610_v0 = vld [vmem:[#allocation7 + $0x240] sm:$0xff]  ;;  %v5696_v10 = vld [vmem:[#allocation7 + $0x2b0] sm:$0xff]  ;;  %v5609_v3 = vld [vmem:[#allocation7 + $0x238] sm:$0xff] }
 0xcce   :  { %5247 = vst [vmem:[%s11303_s14 + $0x20] sm:$0xff] %v5238_v41  ;;  %v11099_v51 = vadd.f32 %v11039_v60, %v5214_v7  ;;  %8476 = vmatprep.subr.mxu1 %v11312_v18  ;;  %8515 = vmatprep.subr.mxu0 %v11312_v18  ;;  %v5695_v7 = vld [vmem:[#allocation7 + $0x2a8] sm:$0xff] }
 0xccf   :  { %8477 = vmatpush3.msra.mxu1 %v5435_v5  ;;  %8516 = vmatpush3.msra.mxu0 %v5521_v34  ;;  %v5195_v8 = vpop.f32.mrf.mxu0  ;;  %v5608_v5 = vld [vmem:[#allocation7 + $0x230] sm:$0xff]  ;;  %v5694_v34 = vld [vmem:[#allocation7 + $0x2a0] sm:$0xff]  ;;  %v5607_v28 = vld [vmem:[#allocation7 + $0x228] sm:$0xff] }
 0xcd0   :  { %v5239_v22 = vmax.f32 %v11099_v51, 0.0  ;;  %v5215_v47 = vadd.f32 %v5195_v8, %v4944_v38  ;;  %8478 = vmatprep.subr.mxu1 %v11312_v18  ;;  %8517 = vmatprep.subr.mxu0 %v11312_v18  ;;  %v5693_v38 = vld [vmem:[#allocation7 + $0x298] sm:$0xff]  ;;  %v5792_v51 = vld [vmem:[#allocation7 + $0x370] sm:$0xff] }
 0xcd1   :  { %8479 = vmatpush3.msra.mxu1 %v5434_v39  ;;  %8518 = vmatpush3.msra.mxu0 %v5520_v27  ;;  %v8388_v63 = vpop.f32.mrf.mxu0  ;;  %v5606_v39 = vld [vmem:[#allocation7 + $0x220] sm:$0xff]  ;;  %v5692_v27 = vld [vmem:[#allocation7 + $0x290] sm:$0xff]  ;;  %v5605_v8 = vld [vmem:[#allocation7 + $0x218] sm:$0xff] }
 0xcd2   :  { %5248 = vst [vmem:[%s11303_s14 + $0x28] sm:$0xff] %v5239_v22  ;;  %v11114_v12 = vadd.f32 %v11039_v60, %v5215_v47  ;;  %8480 = vmatprep.subr.mxu1 %v11312_v18  ;;  %8519 = vmatprep.subr.mxu0 %v11312_v18  ;;  %v5691_v47 = vld [vmem:[#allocation7 + $0x288] sm:$0xff] }
 0xcd3   :  { %8481 = vmatpush3.msra.mxu1 %v5433_v21  ;;  %8520 = vmatpush3.msra.mxu0 %v5519_v48  ;;  %v5198_v29 = vpop.f32.mrf.mxu0  ;;  %v5604_v21 = vld [vmem:[#allocation7 + $0x210] sm:$0xff]  ;;  %v5690_v48 = vld [vmem:[#allocation7 + $0x280] sm:$0xff]  ;;  %v5603_v63 = vld [vmem:[#allocation7 + $0x208] sm:$0xff] }
 0xcd4   :  { %v5240_v24 = vmax.f32 %v11114_v12, 0.0  ;;  %v5216_v20 = vadd.f32 %v5198_v29, %v4945_v32  ;;  %8482 = vmatprep.subr.mxu1 %v11312_v18  ;;  %8521 = vmatprep.subr.mxu0 %v11312_v18  ;;  %v5881_v32 = vld [vmem:[#allocation7 + $0x3f8] sm:$0xff]  ;;  %v5964_v12 = vld [vmem:[#allocation7 + $0x450] sm:$0xff] }
 0xcd5   :  { %8483 = vmatpush3.msra.mxu1 %v5432_v1  ;;  %8522 = vmatpush3.msra.mxu0 %v5518_v11  ;;  %v8389_v15 = vpop.f32.mrf.mxu0  ;;  %v5602_v1 = vld [vmem:[#allocation7 + $0x200] sm:$0xff]  ;;  %v5880_v11 = vld [vmem:[#allocation7 + $0x3f0] sm:$0xff]  ;;  %v5793_v29 = vld [vmem:[#allocation7 + $0x378] sm:$0xff] }
 0xcd6   :  { %5249 = vst [vmem:[%s11303_s14 + $0x30] sm:$0xff] %v5240_v24  ;;  %v11129_v23 = vadd.f32 %v11039_v60, %v5216_v20  ;;  %8484 = vmatprep.subr.mxu1 %v11312_v18  ;;  %8523 = vmatprep.subr.mxu0 %v11312_v18  ;;  %v5879_v20 = vld [vmem:[#allocation7 + $0x3e8] sm:$0xff]  ;;  %v5789_v15 = vld [vmem:[#allocation7 + $0x358] sm:$0xff] }
 0xcd7   :  { %8485 = vmatpush3.msra.mxu1 %v5431_v36  ;;  %8524 = vmatpush3.msra.mxu0 %v5517_v25  ;;  %v5203_v55 = vpop.f32.mrf.mxu0  ;;  %v5791_v36 = vld [vmem:[#allocation7 + $0x368] sm:$0xff]  ;;  %v5877_v25 = vld [vmem:[#allocation7 + $0x3d8] sm:$0xff] }
 0xcd8   :  { %v5241_v35 = vmax.f32 %v11129_v23, 0.0  ;;  %v5217_v19 = vadd.f32 %v5203_v55, %v4946_v40  ;;  %8486 = vmatprep.subr.mxu1 %v11312_v18  ;;  %8525 = vmatprep.subr.mxu0 %v11312_v18  ;;  %v5875_v40 = vld [vmem:[#allocation7 + $0x3c8] sm:$0xff]  ;;  %v5968_v23 = vld [vmem:[#allocation7 + $0x470] sm:$0xff] }
 0xcd9   :  { %8487 = vmatpush3.msra.mxu1 %v5430_v2  ;;  %8526 = vmatpush3.msra.mxu0 %v5516_v31  ;;  %v8392_v61 = vpop.f32.mrf.mxu0  ;;  %v5788_v2 = vld [vmem:[#allocation7 + $0x350] sm:$0xff]  ;;  %v5874_v31 = vld [vmem:[#allocation7 + $0x3c0] sm:$0xff]  ;;  %v5787_v55 = vld [vmem:[#allocation7 + $0x348] sm:$0xff] }
 0xcda   :  { %5250 = vst [vmem:[%s11303_s14 + $0x38] sm:$0xff] %v5241_v35  ;;  %v11142_v14 = vadd.f32 %v11039_v60, %v5217_v19  ;;  %8488 = vmatprep.subr.mxu1 %v11312_v18  ;;  %8527 = vmatprep.subr.mxu0 %v11312_v18  ;;  %v5705_v60 = vld [vmem:[#allocation7 + $0x2f8] sm:$0xff] }
 0xcdb   :  { %8489 = vmatpush3.msra.mxu1 %v5429_v54  ;;  %8528 = vmatpush3.msra.mxu0 %v5515_v13  ;;  %v5206_v4 = vpop.f32.mrf.mxu0  ;;  %v5873_v19 = vld [vmem:[#allocation7 + $0x3b8] sm:$0xff]  ;;  %v5786_v54 = vld [vmem:[#allocation7 + $0x340] sm:$0xff]  ;;  %v5872_v13 = vld [vmem:[#allocation7 + $0x3b0] sm:$0xff] }
 0xcdc   :  { %v5242_v46 = vmax.f32 %v11142_v14, 0.0  ;;  %8490 = vmatprep.subr.mxu1 %v11312_v18  ;;  %8529 = vmatprep.subr.mxu0 %v11312_v18  ;;  %v5785_v61 = vld [vmem:[#allocation7 + $0x338] sm:$0xff]  ;;  %v5870_v4 = vld [vmem:[#allocation7 + $0x3a0] sm:$0xff]  ;;  %v6058_v14 = vld [vmem:[#allocation9 + $0x48] sm:$0xff] }
 0xcdd   :  { %8491 = vmatpush3.msra.mxu1 %v5428_v30  ;;  %8530 = vmatpush3.msra.mxu0 %v5514_v52  ;;  %v8393_v42 = vpop.f32.mrf.mxu0  ;;  %v5871_v30 = vld [vmem:[#allocation7 + $0x3a8] sm:$0xff]  ;;  %v5784_v52 = vld [vmem:[#allocation7 + $0x330] sm:$0xff] }
 0xcde   :  { %5251 = vst [vmem:[%s11303_s14 + $0x40] sm:$0xff] %v5242_v46  ;;  %8492 = vmatprep.subr.mxu1 %v11312_v18  ;;  %8532 = vmatmul.mubr.f32.vlgmr.msra.gmra.mxu0 %v5237_v33  ;;  %v5613_v33 = vld [vmem:[#allocation7 + $0x258] sm:$0xff]  ;;  %v5782_v42 = vld [vmem:[#allocation7 + $0x320] sm:$0xff] }
 0xcdf   :  { %8569 = vmatprep.subr.mxu0 %v11312_v18  ;;  %8493 = vmatpush3.msra.mxu1 %v5427_v26  ;;  %v5783_v26 = vld [vmem:[#allocation7 + $0x328] sm:$0xff] }
 0xce0   :  { %8570 = vmatpush3.msra.mxu0 %v5705_v60  ;;  %8494 = vmatprep.subr.mxu1 %v11312_v18  ;;  %v5869_v60 = vld [vmem:[#allocation7 + $0x398] sm:$0xff] }
 0xce1   :  { %8571 = vmatprep.subr.mxu0 %v11312_v18  ;;  %8495 = vmatpush3.msra.mxu1 %v5426_v16  ;;  %v5868_v16 = vld [vmem:[#allocation7 + $0x390] sm:$0xff] }
 0xce2   :  { %8496 = vmatprep.mubr.msk.f32.mxu1 %vm9191_vm3, %v11312_v18  ;;  %8572 = vmatpush3.msra.mxu0 %v5704_v50  ;;  %v5781_v50 = vld [vmem:[#allocation7 + $0x318] sm:$0xff] }
 0xce3   :  { %8497 = vmatmul.mubr.f32.vlgmr.msra.gmra.mxu1 %v5236_v45  ;;  %8534 = vmatprep.subr.mxu1 %v11312_v18  ;;  %v5700_v45 = vld [vmem:[#allocation7 + $0x2d0] sm:$0xff] }
 0xce4   :  { %8573 = vmatprep.subr.mxu0 %v11312_v18  ;;  %8535 = vmatpush3.msra.mxu1 %v5617_v59  ;;  %v5867_v59 = vld [vmem:[#allocation7 + $0x388] sm:$0xff] }
 0xce5   :  { %8574 = vmatpush3.msra.mxu0 %v5703_v9  ;;  %8536 = vmatprep.subr.mxu1 %v11312_v18  ;;  %v5780_v9 = vld [vmem:[#allocation7 + $0x310] sm:$0xff] }
 0xce6   :  { %8575 = vmatprep.subr.mxu0 %v11312_v18  ;;  %8537 = vmatpush3.msra.mxu1 %v5616_v6  ;;  %v5866_v6 = vld [vmem:[#allocation7 + $0x380] sm:$0xff] }
 0xce7   :  { %8576 = vmatpush3.msra.mxu0 %v5702_v43  ;;  %8538 = vmatprep.subr.mxu1 %v11312_v18  ;;  %v5779_v43 = vld [vmem:[#allocation7 + $0x308] sm:$0xff] }
 0xce8   :  { %8577 = vmatprep.subr.mxu0 %v11312_v18  ;;  %8539 = vmatpush3.msra.mxu1 %v5615_v49  ;;  %v5778_v49 = vld [vmem:[#allocation7 + $0x300] sm:$0xff] }
 0xce9   :  { %8578 = vmatpush3.msra.mxu0 %v5701_v44  ;;  %8540 = vmatprep.subr.mxu1 %v11312_v18  ;;  %v5969_v44 = vld [vmem:[#allocation7 + $0x478] sm:$0xff] }
 0xcea   :  { %8579 = vmatprep.subr.mxu0 %v11312_v18  ;;  %8541 = vmatpush3.msra.mxu1 %v5614_v58  ;;  %v5966_v58 = vld [vmem:[#allocation7 + $0x460] sm:$0xff] }
 0xceb   :  { %8580 = vmatpush3.msra.mxu0 %v5700_v45  ;;  %8542 = vmatprep.subr.mxu1 %v11312_v18  ;;  %v5965_v45 = vld [vmem:[#allocation7 + $0x458] sm:$0xff] }
 0xcec   :  { %8581 = vmatprep.subr.mxu0 %v11312_v18  ;;  %8543 = vmatpush3.msra.mxu1 %v5613_v33  ;;  %v5962_v33 = vld [vmem:[#allocation7 + $0x440] sm:$0xff] }
 0xced   :  { %8582 = vmatpush3.msra.mxu0 %v5699_v37  ;;  %8544 = vmatprep.subr.mxu1 %v11312_v18  ;;  %v5961_v37 = vld [vmem:[#allocation7 + $0x438] sm:$0xff] }
 0xcee   :  { %8583 = vmatprep.subr.mxu0 %v11312_v18  ;;  %8545 = vmatpush3.msra.mxu1 %v5612_v56  ;;  %v5960_v56 = vld [vmem:[#allocation7 + $0x430] sm:$0xff] }
 0xcef   :  { %8584 = vmatpush3.msra.mxu0 %v5698_v57  ;;  %8546 = vmatprep.subr.mxu1 %v11312_v18  ;;  %v5959_v57 = vld [vmem:[#allocation7 + $0x428] sm:$0xff] }
 0xcf0   :  { %8585 = vmatprep.subr.mxu0 %v11312_v18  ;;  %8547 = vmatpush3.msra.mxu1 %v5611_v53  ;;  %v5958_v53 = vld [vmem:[#allocation7 + $0x420] sm:$0xff] }
 0xcf1   :  { %8586 = vmatpush3.msra.mxu0 %v5697_v62  ;;  %8548 = vmatprep.subr.mxu1 %v11312_v18  ;;  %v5957_v62 = vld [vmem:[#allocation7 + $0x418] sm:$0xff] }
 0xcf2   :  { %8587 = vmatprep.subr.mxu0 %v11312_v18  ;;  %8549 = vmatpush3.msra.mxu1 %v5610_v0  ;;  %v5956_v0 = vld [vmem:[#allocation7 + $0x410] sm:$0xff] }
 0xcf3   :  { %8588 = vmatpush3.msra.mxu0 %v5696_v10  ;;  %8550 = vmatprep.subr.mxu1 %v11312_v18  ;;  %v5955_v10 = vld [vmem:[#allocation7 + $0x408] sm:$0xff] }
 0xcf4   :  { %8589 = vmatprep.subr.mxu0 %v11312_v18  ;;  %8551 = vmatpush3.msra.mxu1 %v5609_v3  ;;  %v5954_v3 = vld [vmem:[#allocation7 + $0x400] sm:$0xff] }
 0xcf5   :  { %8590 = vmatpush3.msra.mxu0 %v5695_v7  ;;  %8552 = vmatprep.subr.mxu1 %v11312_v18  ;;  %v6064_v7 = vld [vmem:[#allocation9 + $0x78] sm:$0xff] }
 0xcf6   :  { %8591 = vmatprep.subr.mxu0 %v11312_v18  ;;  %8553 = vmatpush3.msra.mxu1 %v5608_v5  ;;  %v6063_v5 = vld [vmem:[#allocation9 + $0x70] sm:$0xff] }
 0xcf7   :  { %8592 = vmatpush3.msra.mxu0 %v5694_v34  ;;  %8554 = vmatprep.subr.mxu1 %v11312_v18  ;;  %v6062_v34 = vld [vmem:[#allocation9 + $0x68] sm:$0xff] }
 0xcf8   :  { %8593 = vmatprep.subr.mxu0 %v11312_v18  ;;  %8555 = vmatpush3.msra.mxu1 %v5607_v28  ;;  %v6061_v28 = vld [vmem:[#allocation9 + $0x60] sm:$0xff] }
 0xcf9   :  { %8594 = vmatpush3.msra.mxu0 %v5693_v38  ;;  %8556 = vmatprep.subr.mxu1 %v11312_v18  ;;  %v6060_v38 = vld [vmem:[#allocation9 + $0x58] sm:$0xff] }
 0xcfa   :  { %8595 = vmatprep.subr.mxu0 %v11312_v18  ;;  %8557 = vmatpush3.msra.mxu1 %v5606_v39  ;;  %v6059_v39 = vld [vmem:[#allocation9 + $0x50] sm:$0xff] }
 0xcfb   :  { %8596 = vmatpush3.msra.mxu0 %v5692_v27  ;;  %8558 = vmatprep.subr.mxu1 %v11312_v18  ;;  %v6056_v27 = vld [vmem:[#allocation9 + $0x38] sm:$0xff] }
 0xcfc   :  { %8597 = vmatprep.subr.mxu0 %v11312_v18  ;;  %8559 = vmatpush3.msra.mxu1 %v5605_v8  ;;  %v6055_v8 = vld [vmem:[#allocation9 + $0x30] sm:$0xff] }
 0xcfd   :  { %8598 = vmatpush3.msra.mxu0 %v5691_v47  ;;  %8560 = vmatprep.subr.mxu1 %v11312_v18  ;;  %v6054_v47 = vld [vmem:[#allocation9 + $0x28] sm:$0xff] }
 0xcfe   :  { %8599 = vmatprep.subr.mxu0 %v11312_v18  ;;  %8561 = vmatpush3.msra.mxu1 %v5604_v21  ;;  %v6053_v21 = vld [vmem:[#allocation9 + $0x20] sm:$0xff] }
 0xcff   :  { %8600 = vmatpush3.msra.mxu0 %v5690_v48  ;;  %8601 = vmatprep.mubr.msk.f32.mxu0 %vm9191_vm3, %v11312_v18 }
 0xd00   :  { %8562 = vmatprep.subr.mxu1 %v11312_v18  ;;  %8602 = vmatmul.mubr.f32.vlgmr.msra.gmra.mxu0 %v5239_v22  ;;  %v5878_v22 = vld [vmem:[#allocation7 + $0x3e0] sm:$0xff] }
 0xd01   :  { %8639 = vmatprep.subr.mxu0 %v11312_v18  ;;  %8563 = vmatpush3.msra.mxu1 %v5603_v63  ;;  %v6052_v63 = vld [vmem:[#allocation9 + $0x18] sm:$0xff] }
 0xd02   :  { %8640 = vmatpush3.msra.mxu0 %v5881_v32  ;;  %8564 = vmatprep.subr.mxu1 %v11312_v18 }
 0xd03   :  { %8641 = vmatprep.subr.mxu0 %v11312_v18  ;;  %8565 = vmatpush3.msra.mxu1 %v5602_v1 }
 0xd04   :  { %8566 = vmatprep.mubr.msk.f32.mxu1 %vm9191_vm3, %v11312_v18  ;;  %8642 = vmatpush3.msra.mxu0 %v5880_v11 }
 0xd05   :  { %8567 = vmatmul.mubr.f32.vlgmr.msra.gmra.mxu1 %v5238_v41  ;;  %8604 = vmatprep.subr.mxu1 %v11312_v18  ;;  %v5876_v41 = vld [vmem:[#allocation7 + $0x3d0] sm:$0xff] }
 0xd06   :  { %8643 = vmatprep.subr.mxu0 %v11312_v18  ;;  %8605 = vmatpush3.msra.mxu1 %v5793_v29 }
 0xd07   :  { %8644 = vmatpush3.msra.mxu0 %v5879_v20  ;;  %8606 = vmatprep.subr.mxu1 %v11312_v18  ;;  %v6051_v20 = vld [vmem:[#allocation9 + $0x10] sm:$0xff] }
 0xd08   :  { %8645 = vmatprep.subr.mxu0 %v11312_v18  ;;  %8607 = vmatpush3.msra.mxu1 %v5792_v51  ;;  %v6050_v51 = vld [vmem:[#allocation9 + $0x8] sm:$0xff] }
 0xd09   :  { %8646 = vmatpush3.msra.mxu0 %v5878_v22  ;;  %8608 = vmatprep.subr.mxu1 %v11312_v18  ;;  %v6049_v22 = vld [vmem:[#allocation9] sm:$0xff] }
 0xd0a   :  { %8647 = vmatprep.subr.mxu0 %v11312_v18  ;;  %8609 = vmatpush3.msra.mxu1 %v5791_v36 }
 0xd0b   :  { %8648 = vmatpush3.msra.mxu0 %v5877_v25  ;;  %8610 = vmatprep.subr.mxu1 %v11312_v18 }
 0xd0c   :  { %8649 = vmatprep.subr.mxu0 %v11312_v18  ;;  %8611 = vmatpush3.msra.mxu1 %v5790_v17 }
 0xd0d   :  { %8650 = vmatpush3.msra.mxu0 %v5876_v41  ;;  %8612 = vmatprep.subr.mxu1 %v11312_v18 }
 0xd0e   :  { %8651 = vmatprep.subr.mxu0 %v11312_v18  ;;  %8613 = vmatpush3.msra.mxu1 %v5789_v15 }
 0xd0f   :  { %8652 = vmatpush3.msra.mxu0 %v5875_v40  ;;  %8614 = vmatprep.subr.mxu1 %v11312_v18 }
 0xd10   :  { %8653 = vmatprep.subr.mxu0 %v11312_v18  ;;  %8615 = vmatpush3.msra.mxu1 %v5788_v2 }
 0xd11   :  { %8654 = vmatpush3.msra.mxu0 %v5874_v31  ;;  %8616 = vmatprep.subr.mxu1 %v11312_v18 }
 0xd12   :  { %8655 = vmatprep.subr.mxu0 %v11312_v18  ;;  %8617 = vmatpush3.msra.mxu1 %v5787_v55 }
 0xd13   :  { %8656 = vmatpush3.msra.mxu0 %v5873_v19  ;;  %8618 = vmatprep.subr.mxu1 %v11312_v18 }
 0xd14   :  { %8657 = vmatprep.subr.mxu0 %v11312_v18  ;;  %8619 = vmatpush3.msra.mxu1 %v5786_v54 }
 0xd15   :  { %8658 = vmatpush3.msra.mxu0 %v5872_v13  ;;  %8620 = vmatprep.subr.mxu1 %v11312_v18 }
 0xd16   :  { %8659 = vmatprep.subr.mxu0 %v11312_v18  ;;  %8621 = vmatpush3.msra.mxu1 %v5785_v61 }
 0xd17   :  { %8660 = vmatpush3.msra.mxu0 %v5871_v30  ;;  %8622 = vmatprep.subr.mxu1 %v11312_v18 }
 0xd18   :  { %8661 = vmatprep.subr.mxu0 %v11312_v18  ;;  %8623 = vmatpush3.msra.mxu1 %v5784_v52 }
 0xd19   :  { %8662 = vmatpush3.msra.mxu0 %v5870_v4  ;;  %8624 = vmatprep.subr.mxu1 %v11312_v18 }
 0xd1a   :  { %8663 = vmatprep.subr.mxu0 %v11312_v18  ;;  %8625 = vmatpush3.msra.mxu1 %v5783_v26 }
 0xd1b   :  { %8664 = vmatpush3.msra.mxu0 %v5869_v60  ;;  %8626 = vmatprep.subr.mxu1 %v11312_v18 }
 0xd1c   :  { %8665 = vmatprep.subr.mxu0 %v11312_v18  ;;  %8627 = vmatpush3.msra.mxu1 %v5782_v42  ;;  %v6675_v42 = vld [vmem:[%s11299_s10] ss:$0 sm:$0xff] }
 0xd1d   :  { %8666 = vmatpush3.msra.mxu0 %v5868_v16  ;;  %8628 = vmatprep.subr.mxu1 %v11312_v18 }
 0xd1e   :  { %8667 = vmatprep.subr.mxu0 %v11312_v18  ;;  %8629 = vmatpush3.msra.mxu1 %v5781_v50 }
 0xd1f   :  { %8668 = vmatpush3.msra.mxu0 %v5867_v59  ;;  %8630 = vmatprep.subr.mxu1 %v11312_v18 }
 0xd20   :  { %8669 = vmatprep.subr.mxu0 %v11312_v18  ;;  %8631 = vmatpush3.msra.mxu1 %v5780_v9  ;;  %v6142_v9 = vlaneseq }
 0xd21   :  { %8670 = vmatpush3.msra.mxu0 %v5866_v6  ;;  %8671 = vmatprep.mubr.msk.f32.mxu0 %vm9191_vm3, %v11312_v18 }
 0xd22   :  { %8632 = vmatprep.subr.mxu1 %v11312_v18  ;;  %8672 = vmatmul.mubr.f32.vlgmr.msra.gmra.mxu0 %v5241_v35  ;;  %v5967_v35 = vld [vmem:[#allocation7 + $0x468] sm:$0xff]  ;;  %v6143_v6 = vand.u32 127, %v6142_v9 }
 0xd23   :  { %8633 = vmatpush3.msra.mxu1 %v5779_v43  ;;  %8636 = vmatprep.mubr.msk.f32.mxu1 %vm9191_vm3, %v11312_v18  ;;  %v6676_v43 = vld [vmem:[%s11301_s12] ss:$0 sm:$0xff] }
 0xd24   :  { %8634 = vmatprep.subr.mxu1 %v11312_v18  ;;  %8709 = vmatprep.subr.mxu0 %v11312_v18  ;;  %vm6144_vm6 = vcmp.lt.s32.totalorder %v6143_v6, 10 }
 0xd25   :  { %8635 = vmatpush3.msra.mxu1 %v5778_v49  ;;  %8741 = vmatprep.mubr.msk.f32.mxu0 %vm9191_vm3, %v11312_v18 }
 0xd26   :  { %8637 = vmatmul.mubr.f32.vlgmr.msra.gmra.mxu1 %v5240_v24  ;;  %8674 = vmatprep.subr.mxu1 %v11312_v18  ;;  %v5963_v24 = vld [vmem:[#allocation7 + $0x448] sm:$0xff] }
 0xd27   :  { %8675 = vmatpush3.msra.mxu1 %v5969_v44  ;;  %8706 = vmatprep.mubr.msk.f32.mxu1 %vm9191_vm3, %v11312_v18 }
 0xd28   :  { %8676 = vmatprep.subr.mxu1 %v11312_v18  ;;  %8710 = vmatpush3.msra.mxu0 %v6064_v7 }
 0xd29   :  { %8677 = vmatpush3.msra.mxu1 %v5968_v23  ;;  %8711 = vmatprep.subr.mxu0 %v11312_v18 }
 0xd2a   :  { %8678 = vmatprep.subr.mxu1 %v11312_v18  ;;  %8712 = vmatpush3.msra.mxu0 %v6063_v5 }
 0xd2b   :  { %8679 = vmatpush3.msra.mxu1 %v5967_v35  ;;  %8713 = vmatprep.subr.mxu0 %v11312_v18 }
 0xd2c   :  { %8680 = vmatprep.subr.mxu1 %v11312_v18  ;;  %8714 = vmatpush3.msra.mxu0 %v6062_v34 }
 0xd2d   :  { %8681 = vmatpush3.msra.mxu1 %v5966_v58  ;;  %8715 = vmatprep.subr.mxu0 %v11312_v18 }
 0xd2e   :  { %8682 = vmatprep.subr.mxu1 %v11312_v18  ;;  %8716 = vmatpush3.msra.mxu0 %v6061_v28 }
 0xd2f   :  { %8683 = vmatpush3.msra.mxu1 %v5965_v45  ;;  %8717 = vmatprep.subr.mxu0 %v11312_v18 }
 0xd30   :  { %8684 = vmatprep.subr.mxu1 %v11312_v18  ;;  %8718 = vmatpush3.msra.mxu0 %v6060_v38 }
 0xd31   :  { %8685 = vmatpush3.msra.mxu1 %v5964_v12  ;;  %8719 = vmatprep.subr.mxu0 %v11312_v18 }
 0xd32   :  { %8686 = vmatprep.subr.mxu1 %v11312_v18  ;;  %8720 = vmatpush3.msra.mxu0 %v6059_v39 }
 0xd33   :  { %8687 = vmatpush3.msra.mxu1 %v5963_v24  ;;  %8721 = vmatprep.subr.mxu0 %v11312_v18 }
 0xd34   :  { %8688 = vmatprep.subr.mxu1 %v11312_v18  ;;  %8722 = vmatpush3.msra.mxu0 %v6058_v14 }
 0xd35   :  { %8689 = vmatpush3.msra.mxu1 %v5962_v33  ;;  %8723 = vmatprep.subr.mxu0 %v11312_v18 }
 0xd36   :  { %8690 = vmatprep.subr.mxu1 %v11312_v18 }
 0xd37   :  { %8691 = vmatpush3.msra.mxu1 %v5961_v37 }
 0xd38   :  { %8692 = vmatprep.subr.mxu1 %v11312_v18 }
 0xd39   :  { %8693 = vmatpush3.msra.mxu1 %v5960_v56 }
 0xd3a   :  { %8694 = vmatprep.subr.mxu1 %v11312_v18 }
 0xd3b   :  { %8695 = vmatpush3.msra.mxu1 %v5959_v57 }
 0xd3c   :  { %8696 = vmatprep.subr.mxu1 %v11312_v18 }
 0xd3d   :  { %8697 = vmatpush3.msra.mxu1 %v5958_v53 }
 0xd3e   :  { %8698 = vmatprep.subr.mxu1 %v11312_v18 }
 0xd3f   :  { %8699 = vmatpush3.msra.mxu1 %v5957_v62 }
 0xd40   :  { %8700 = vmatprep.subr.mxu1 %v11312_v18 }
 0xd41   :  { %8701 = vmatpush3.msra.mxu1 %v5956_v0 }
 0xd42   :  { %8702 = vmatprep.subr.mxu1 %v11312_v18 }
 0xd43   :  { %8703 = vmatpush3.msra.mxu1 %v5955_v10 }
 0xd44   :  { %8704 = vmatprep.subr.mxu1 %v11312_v18 }
 0xd45   :  { %8705 = vmatpush3.msra.mxu1 %v5954_v3 }
 0xd46   :  { %8707 = vmatmul.mubr.f32.vlgmr.msra.gmra.mxu1 %v5242_v46  ;;  %v6057_v46 = vld [vmem:[#allocation9 + $0x40] sm:$0xff] }
 0xd47   :  { %8724 = vmatpush3.msra.mxu0 %v6057_v46 }
 0xd48   :  { %8725 = vmatprep.subr.mxu0 %v11312_v18 }
 0xd49   :  { %8726 = vmatpush3.msra.mxu0 %v6056_v27 }
 0xd4a   :  { %8727 = vmatprep.subr.mxu0 %v11312_v18 }
 0xd4b   :  { %8728 = vmatpush3.msra.mxu0 %v6055_v8 }
 0xd4c   :  { %8729 = vmatprep.subr.mxu0 %v11312_v18 }
 0xd4d   :  { %8730 = vmatpush3.msra.mxu0 %v6054_v47 }
 0xd4e   :  { %8731 = vmatprep.subr.mxu0 %v11312_v18 }
 0xd4f   :  { %8732 = vmatpush3.msra.mxu0 %v6053_v21 }
 0xd50   :  { %8733 = vmatprep.subr.mxu0 %v11312_v18 }
 0xd51   :  { %8734 = vmatpush3.msra.mxu0 %v6052_v63 }
 0xd52   :  { %8735 = vmatprep.subr.mxu0 %v11312_v18 }
 0xd53   :  { %8736 = vmatpush3.msra.mxu0 %v6051_v20 }
 0xd54   :  { %8737 = vmatprep.subr.mxu0 %v11312_v18 }
 0xd55   :  { %8738 = vmatpush3.msra.mxu0 %v6050_v51 }
 0xd56   :  { %8739 = vmatprep.subr.mxu0 %v11312_v18 }
 0xd57   :  { %8740 = vmatpush3.msra.mxu0 %v6049_v22 }
 0xd7e   :  { %v5421_v48 = vpop.f32.mrf.mxu0 }
 0xd80   :  { %v8463_v32 = vpop.f32.mrf.mxu0 }
 0xd82   :  { %v5351_v1 = vpop.f32.mrf.mxu1 }
 0xd83   :  { %v5422_v11 = vadd.f32 %v5421_v48, %v5351_v1 }
 0xd84   :  { %v8428_v29 = vpop.f32.mrf.mxu1 }
 0xd9e   :  { %v5596_v36 = vpop.f32.mrf.mxu0 }
 0xda0   :  { %v8533_v25 = vpop.f32.mrf.mxu0 }
 0xda3   :  { %v5508_v17 = vpop.f32.mrf.mxu1 }
 0xda4   :  { %v5512_v41 = vadd.f32 %v5508_v17, %v5422_v11 }
 0xda5   :  { %v8498_v15 = vpop.f32.mrf.mxu1 }
 0xda6   :  { %v5600_v40 = vadd.f32 %v5596_v36, %v5512_v41 }
 0xdc0   :  { %v5772_v2 = vpop.f32.mrf.mxu0 }
 0xdc2   :  { %v8603_v31 = vpop.f32.mrf.mxu0 }
 0xdc5   :  { %v5684_v55 = vpop.f32.mrf.mxu1 }
 0xdc6   :  { %v5688_v19 = vadd.f32 %v5684_v55, %v5600_v40 }
 0xdc7   :  { %v8568_v54 = vpop.f32.mrf.mxu1 }
 0xdc8   :  { %v5776_v13 = vadd.f32 %v5772_v2, %v5688_v19 }
 0xde2   :  { %v5948_v61 = vpop.f32.mrf.mxu0 }
 0xde4   :  { %v8673_v30 = vpop.f32.mrf.mxu0 }
 0xde6   :  { %v5860_v52 = vpop.f32.mrf.mxu1 }
 0xde7   :  { %v5864_v26 = vadd.f32 %v5860_v52, %v5776_v13 }
 0xde8   :  { %v8638_v4 = vpop.f32.mrf.mxu1 }
 0xde9   :  { %v5952_v18 = vadd.f32 %v5948_v61, %v5864_v26 }
 0xe06   :  { %v6036_v60 = vpop.f32.mrf.mxu1 }
 0xe07   :  { %v6040_v16 = vadd.f32 %v6036_v60, %v5952_v18 }
 0xe08   :  { %v8708_v50 = vpop.f32.mrf.mxu1 }
 0xe09   :  { %v6048_v59 = vadd.f32 %v6675_v42, %v6040_v16 }
 0xe0b   :  { %8742 = vmatmul.mubr.f32.vlgmr.msra.gmra.mxu0 %v6048_v59 }
 0xecb   :  { %v6138_v49 = vpop.f32.mrf.mxu0 }
 0xecc   :  { %v6139_v44 = vadd.f32 %v6676_v43, %v6138_v49 }
 0xecd   :  { %v8743_v23 = vpop.f32.mrf.mxu0 }
 0xece   :  { %v6145_v35 = vsel %vm6144_vm6, %v6139_v44, -1e+30 }
 0xecf   :  { %6146 = vmax.xlane.f32.xlu0 %v6145_v35 }
 0xf58   :  { %v6147_v58 = vpop.xlane.xlu0 %6146 }
 0xf59   :  { %v6148_v45 = vsub.f32 %v6145_v35, %v6147_v58 }
 0xf5b   :  { %v6149_v12 = vmul.f32 1.442695, %v6148_v45 }
 0xf5d   :  { %9070 = vpow2.f32 %v6149_v12 }
 0xf6a   :  { %v9071_v24 = vpop.eup %9070 }
 0xf6b   :  { %6151 = vadd.xlane.f32.xlu0 %v9071_v24 }
 0xff4   :  { %v6152_v33 = vpop.xlane.xlu0 %6151 }
 0xff5   :  { %9072 = vrcp.f32 %v6152_v33 }
0x1002   :  { %v9073_v37 = vpop.eup %9072 }
0x1003   :  { %v6154_v56 = vmul.f32 %v9073_v37, %v9071_v24 }
0x1005   :  { %6155 = vst [vmem:[%s11302_s13] sm:$0xff] %v6154_v56 }
0x1006   :  { %6164 = vsyncpa [#allocation3], 1 }
0x1007   :  { %6165 = vsyncpa [#allocation5], 1 }
0x1008   :  { %6166 = vsyncpa [#allocation8], 1 }

</bundles_post_ra>
